<compile_context>
chip_gen: v7x
topology: tpu7x:2x2x1
jax: 0.10.0
libtpu: 0.0.40
codegen_flags: <defaults>
</compile_context>

<pallas_src>
import functools
import math

import jax
import jax.numpy as jnp
from jax.experimental import pallas as pl
from jax.experimental.pallas import tpu as pltpu

_BN_EPS = 1e-5
_VMEM = pl.BlockSpec(memory_space=pltpu.MemorySpace.VMEM)


# ---------------------------------------------------------------------------
# Pallas kernels
# ---------------------------------------------------------------------------

def _matmul_shift_relu_kernel(x_ref, w_ref, shift_ref, o_ref, acc_ref, *, relu):
    """Tiled matmul with K-reduction grid: out = relu((x @ w) + shift).

    BN scale is pre-folded into `w`; `shift` is the per-channel BN shift (f32).
    x/w are bf16, accumulation is f32 in a VMEM scratch, output is bf16.
    """
    @pl.when(pl.program_id(2) == 0)
    def _init():
        acc_ref[...] = jnp.zeros_like(acc_ref)

    acc_ref[...] += jnp.dot(x_ref[...], w_ref[...],
                            preferred_element_type=jnp.float32)

    @pl.when(pl.program_id(2) == pl.num_programs(2) - 1)
    def _finalize():
        y = acc_ref[...] + shift_ref[...]
        if relu:
            y = jnp.maximum(y, 0.0)
        o_ref[...] = y.astype(o_ref.dtype)


def _maxpool_3x3_kernel(x_ref, o_ref):
    """3x3/s2 max pool from a 2x2 space-to-depth (phase) decomposed padded input.

    x_ref: (1, 4*hh, ww, c) — 4 phase planes stacked along the row axis.
    o_ref: (1, ho, wo, c).  Each of the 9 taps is a statically-offset contiguous
    window of one phase plane, so no strided access and no 9x tap duplication.
    """
    _, ho, wo, _ = o_ref.shape
    hh = x_ref.shape[1] // 4
    x = x_ref[...].astype(jnp.float32)
    acc = None
    for dy in range(3):
        for dx in range(3):
            base = ((dy % 2) * 2 + (dx % 2)) * hh + dy // 2
            ox = dx // 2
            tap = x[:, base:base + ho, ox:ox + wo, :]
            acc = tap if acc is None else jnp.maximum(acc, tap)
    o_ref[...] = acc.astype(o_ref.dtype)


def _head_reparam_kernel(x_ref, wm_ref, wv_ref, bm_ref, bv_ref, eps_ref,
                         z_ref, mean_ref, logvar_ref):
    """Fused AdaptiveAvgPool2d((1,1)) + Linear + split + reparameterize.

    mean   = pooled @ w_mean   + b_mean
    logvar = pooled @ w_logvar + b_logvar
    z      = mean + eps * exp(0.5 * logvar)
    """
    pooled = jnp.mean(x_ref[...].astype(jnp.float32), axis=1)       # (N, C) f32
    pooled_bf = pooled.astype(jnp.bfloat16)
    mean = jnp.dot(pooled_bf, wm_ref[...],
                   preferred_element_type=jnp.float32) + bm_ref[...]
    logvar = jnp.dot(pooled_bf, wv_ref[...],
                     preferred_element_type=jnp.float32) + bv_ref[...]
    mean_ref[...] = mean
    logvar_ref[...] = logvar
    z_ref[...] = mean + eps_ref[...] * jnp.exp(0.5 * logvar)


# ---------------------------------------------------------------------------
# Wrappers (glue: padding, im2col, tiling decisions)
# ---------------------------------------------------------------------------

def _pick_tile(total, unit, target):
    """Largest multiple of `unit` that divides `total` and is <= target.

    Falls back to the full extent (always legal as a BlockSpec 'full dim')."""
    if total % unit != 0 or total <= target:
        return total
    best = unit
    m = 1
    while m * unit <= target:
        t = m * unit
        if total % t == 0:
            best = t
        m += 1
    return best


def matmul_shift_relu(x, w, shift, relu=True):
    """x:(M,K) bf16 @ w:(K,N) bf16 + shift:(1,N) f32, ReLU, bf16 out."""
    m, k = x.shape
    _, n = w.shape
    tm = _pick_tile(m, 8, 256)      # >=2 M steps for conv1 (M=512) — v7x 2 TCs
    tn = _pick_tile(n, 128, 256)    # >=2 N steps for conv4 (N=512)
    tk = _pick_tile(k, 128, 1152)   # stream the big conv4 weight in K chunks
    grid = (m // tm, n // tn, k // tk)
    cost = pl.CostEstimate(
        flops=2 * m * k * n,
        transcendentals=0,
        bytes_accessed=m * k * 2 + k * n * 2 + m * n * 2 + n * 4)
    return pl.pallas_call(
        functools.partial(_matmul_shift_relu_kernel, relu=relu),
        out_shape=jax.ShapeDtypeStruct((m, n), jnp.bfloat16),
        grid=grid,
        in_specs=[
            pl.BlockSpec((tm, tk), lambda i, j, kk: (i, kk)),
            pl.BlockSpec((tk, tn), lambda i, j, kk: (kk, j)),
            pl.BlockSpec((1, tn), lambda i, j, kk: (0, j)),
        ],
        out_specs=pl.BlockSpec((tm, tn), lambda i, j, kk: (i, j)),
        scratch_shapes=[pltpu.VMEM((tm, tn), jnp.float32)],
        compiler_params=pltpu.CompilerParams(
            dimension_semantics=("parallel", "parallel", "arbitrary"),
            vmem_limit_bytes=32 * 1024 * 1024),
        cost_estimate=cost,
    )(x, w, shift)


def _im2col(x_nhwc, kh, kw, stride, pad):
    """bf16 patch extraction (XLA glue).  K ordering = (dy, dx, cin)."""
    n, h, w, c = x_nhwc.shape
    ho = (h + 2 * pad - kh) // stride + 1
    wo = (w + 2 * pad - kw) // stride + 1
    xp = jnp.pad(x_nhwc, ((0, 0), (pad, pad), (pad, pad), (0, 0)))
    cols = []
    for dy in range(kh):
        for dx in range(kw):
            cols.append(xp[:, dy:dy + stride * (ho - 1) + 1:stride,
                           dx:dx + stride * (wo - 1) + 1:stride, :])
    patches = jnp.concatenate(cols, axis=-1)               # (n, ho, wo, kh*kw*c)
    return patches.reshape(n * ho * wo, kh * kw * c), (n, ho, wo)


def ecblock(x_nhwc, w_oihw, gamma, beta, run_mean, run_var, stride):
    """Conv2d(bias=False) + BatchNorm2d (inference) + ReLU  (PyTorch ECBlock)."""
    cout, cin, kh, kw = w_oihw.shape
    pad = math.ceil((kh - stride) / 2)
    patches, (n, ho, wo) = _im2col(x_nhwc, kh, kw, stride, pad)     # bf16
    # BN folded (running stats): y = conv(x) * scale + shift
    scale = gamma / jnp.sqrt(run_var + _BN_EPS)                     # f32
    shift = (beta - run_mean * scale).reshape(1, cout).astype(jnp.float32)
    # weight (Cout,Cin,KH,KW) -> (KH,KW,Cin,Cout) matches patch ordering; fold scale.
    wmat = jnp.transpose(w_oihw, (2, 3, 1, 0)).reshape(kh * kw * cin, cout)
    wmat = (wmat * scale[None, :]).astype(jnp.bfloat16)
    y = matmul_shift_relu(patches, wmat, shift, relu=True)          # bf16
    return y.reshape(n, ho, wo, cout)


def maxpool_3x3_s2_p1(x_nhwc):
    """MaxPool2d(kernel=3, stride=2, padding=1), NHWC, bf16 in/out."""
    n, h, w, c = x_nhwc.shape
    k, s, p = 3, 2, 1
    ho = (h + 2 * p - k) // s + 1
    wo = (w + 2 * p - k) // s + 1
    # Pad (with -inf) so the padded extents are even; 2x2 space-to-depth gives 4
    # phase planes of shape (hh, ww) with hh >= ho+1, ww >= wo+1 (covers all offsets).
    hp = h + 2 * p + (h % 2)
    wp = w + 2 * p + (w % 2)
    xp = jnp.pad(x_nhwc, ((0, 0), (p, hp - h - p), (p, wp - w - p), (0, 0)),
                 constant_values=-jnp.inf)
    hh, ww = hp // 2, wp // 2
    # (n, hp, wp, c) -> (n, py, px, hh, ww, c) -> (n, 4*hh, ww, c); zero duplication.
    xph = (xp.reshape(n, hh, 2, ww, 2, c)
             .transpose(0, 2, 4, 1, 3, 5)
             .reshape(n, 4 * hh, ww, c))
    cost = pl.CostEstimate(flops=9 * n * ho * wo * c, transcendentals=0,
                           bytes_accessed=n * 4 * hh * ww * c * 2 + n * ho * wo * c * 2)
    return pl.pallas_call(
        _maxpool_3x3_kernel,
        out_shape=jax.ShapeDtypeStruct((n, ho, wo, c), x_nhwc.dtype),
        grid=(n,),
        in_specs=[pl.BlockSpec((1, 4 * hh, ww, c), lambda b: (b, 0, 0, 0))],
        out_specs=pl.BlockSpec((1, ho, wo, c), lambda b: (b, 0, 0, 0)),
        compiler_params=pltpu.CompilerParams(dimension_semantics=("parallel",)),
        cost_estimate=cost,
    )(xph)


def head_reparam(x_nhwc, fc_w, fc_b, eps):
    """Fused GlobalAvgPool + Linear(512, 2*out_dim) + split + reparameterize."""
    n, h, w, c = x_nhwc.shape
    xf = x_nhwc.reshape(n, h * w, c)                        # bf16
    d2 = fc_w.shape[0]
    d = d2 // 2
    # Pre-split the FC so the kernel never slices a sub-128-lane logits tensor.
    wm = fc_w[:d, :].T.astype(jnp.bfloat16)                 # (C, d)
    wv = fc_w[d:, :].T.astype(jnp.bfloat16)                 # (C, d)
    bm = fc_b[:d].reshape(1, d).astype(jnp.float32)
    bv = fc_b[d:].reshape(1, d).astype(jnp.float32)
    out_sds = jax.ShapeDtypeStruct((n, d), jnp.float32)
    cost = pl.CostEstimate(flops=2 * n * c * d2 + n * h * w * c,
                           transcendentals=n * d,
                           bytes_accessed=n * h * w * c * 2 + c * d2 * 2 + 3 * n * d * 4)
    z, mean, logvar = pl.pallas_call(
        _head_reparam_kernel,
        out_shape=(out_sds, out_sds, out_sds),
        in_specs=[_VMEM] * 6,
        out_specs=(_VMEM, _VMEM, _VMEM),
        cost_estimate=cost,
    )(xf, wm, wv, bm, bv, eps.astype(jnp.float32))
    return z, mean, logvar


def encoder_forward(params, x_nchw, eps_noise, L=1):
    # TODO(synk): only L=1 is implemented (mean.repeat(L,1,1) replication omitted).
    assert L == 1
    x = jnp.transpose(x_nchw, (0, 2, 3, 1)).astype(jnp.bfloat16)    # NCHW -> NHWC bf16
    x = ecblock(x, params["conv1_w"], *params["bn1"], stride=2)     # 7x7, s2
    x = maxpool_3x3_s2_p1(x)
    x = ecblock(x, params["conv2_w"], *params["bn2"], stride=2)     # 3x3, s2
    x = ecblock(x, params["conv3_w"], *params["bn3"], stride=2)
    x = ecblock(x, params["conv4_w"], *params["bn4"], stride=2)
    z, mean, logvar = head_reparam(x, params["fc_w"], params["fc_b"], eps_noise)
    z = z.reshape(x_nchw.shape[0] * L, -1)
    return z, mean, logvar


# ---------------------------------------------------------------------------
# Deterministic parameter init (same shapes as the PyTorch module, kept in f32)
# ---------------------------------------------------------------------------

def init_params(key, in_channels, out_dim):
    ks = jax.random.split(key, 5)

    def conv(k, cout, cin, ksize):
        fan_in = cin * ksize * ksize
        return jax.random.normal(k, (cout, cin, ksize, ksize), jnp.float32) / math.sqrt(fan_in)

    def bn(c):  # (gamma, beta, running_mean, running_var) — PyTorch defaults
        return (jnp.ones((c,), jnp.float32), jnp.zeros((c,), jnp.float32),
                jnp.zeros((c,), jnp.float32), jnp.ones((c,), jnp.float32))

    d2 = out_dim * 2
    return {
        "conv1_w": conv(ks[0], 64, in_channels, 7), "bn1": bn(64),
        "conv2_w": conv(ks[1], 128, 64, 3),         "bn2": bn(128),
        "conv3_w": conv(ks[2], 256, 128, 3),        "bn3": bn(256),
        "conv4_w": conv(ks[3], 512, 256, 3),        "bn4": bn(512),
        "fc_w": jax.random.normal(ks[4], (d2, 512), jnp.float32) / math.sqrt(512.0),
        "fc_b": jnp.zeros((d2,), jnp.float32),
    }


if __name__ == "__main__":
    key = jax.random.PRNGKey(0)
    k_param, k_x, k_eps = jax.random.split(key, 3)

    in_channels, out_dim = 4, 32
    params = init_params(k_param, in_channels, out_dim)

    # 32x32 input -> 16 -> 8 (maxpool) -> 4 -> 2 -> 1 spatial before the head.
    x = jax.random.normal(k_x, (2, in_channels, 32, 32), jnp.float32)
    eps = jax.random.normal(k_eps, (2, out_dim), jnp.float32)   # torch.randn_like(mean)

    fwd = jax.jit(functools.partial(encoder_forward, L=1))
    z, mean, logvar = fwd(params, x, eps)
    jax.block_until_ready((z, mean, logvar))

    assert z.shape == (2, out_dim)
    assert mean.shape == (2, out_dim)
    assert logvar.shape == (2, out_dim)
    assert bool(jnp.all(jnp.isfinite(z))) and bool(jnp.all(jnp.isfinite(mean)))
    print("KERNEL_OK")
</pallas_src>

<mosaic_0001>
module attributes {stable_mosaic.version = 11 : i64} {
  func.func @_matmul_shift_relu_kernel(%arg0: i32, %arg1: i32, %arg2: i32, %arg3: memref<256x196xbf16, #tpu.memory_space<vmem>>, %arg4: memref<196x64xbf16, #tpu.memory_space<vmem>>, %arg5: memref<1x64xf32, #tpu.memory_space<vmem>>, %arg6: memref<256x64xbf16, #tpu.memory_space<vmem>>, %arg7: memref<256x64xf32, #tpu.memory_space<vmem>>) attributes {dimension_semantics = [#tpu.dimension_semantics<parallel>, #tpu.dimension_semantics<parallel>, #tpu.dimension_semantics<arbitrary>], iteration_bounds = array<i64: 2, 1, 1>, scalar_prefetch = 0 : i64, scratch_operands = 1 : i64, tpu.core_type = #tpu.core_type<tc>, window_params = [{transform_indices = @transform_0, window_bounds = array<i64: 256, 196>}, {transform_indices = @transform_1, window_bounds = array<i64: 196, 64>}, {transform_indices = @transform_2, window_bounds = array<i64: 1, 64>}, {transform_indices = @transform_3, window_bounds = array<i64: 256, 64>}]} {
    %c0_i32 = arith.constant 0 : i32
    %0 = arith.cmpi eq, %arg2, %c0_i32 : i32
    %1 = arith.extui %0 : i1 to i32
    %c0_i32_0 = arith.constant 0 : i32
    %2 = arith.cmpi ne, %1, %c0_i32_0 : i32
    scf.if %2 {
      %cst_10 = arith.constant 0.000000e+00 : f32
      %12 = vector.broadcast %cst_10 : f32 to vector<256x64xf32>
      %c0_11 = arith.constant 0 : index
      %c0_12 = arith.constant 0 : index
      %13 = vector.load %arg7[%c0_11, %c0_12] : memref<256x64xf32, #tpu.memory_space<vmem>>, vector<256x64xf32>
      tpu.vector_store %arg7[%c0_11, %c0_12], %12 {strides = array<i32>} : memref<256x64xf32, #tpu.memory_space<vmem>>, vector<256x64xf32>,
    } else {
    }
    %c0 = arith.constant 0 : index
    %c0_1 = arith.constant 0 : index
    %3 = vector.load %arg7[%c0, %c0_1] : memref<256x64xf32, #tpu.memory_space<vmem>>, vector<256x64xf32>
    %c0_2 = arith.constant 0 : index
    %c0_3 = arith.constant 0 : index
    %4 = vector.load %arg3[%c0_2, %c0_3] : memref<256x196xbf16, #tpu.memory_space<vmem>>, vector<256x196xbf16>
    %c0_4 = arith.constant 0 : index
    %c0_5 = arith.constant 0 : index
    %5 = vector.load %arg4[%c0_4, %c0_5] : memref<196x64xbf16, #tpu.memory_space<vmem>>, vector<196x64xbf16>
    %cst = arith.constant dense<0.000000e+00> : vector<256x64xf32>
    %6 = tpu.matmul %4, %5, %cst {dimension_numbers = #tpu.dot_dimension_numbers<[1], [0], [0], [1], [0, 0, 1, 1], [], []>} : vector<256x196xbf16>, vector<196x64xbf16>, vector<256x64xf32> -> vector<256x64xf32>
    %7 = arith.addf %3, %6 : vector<256x64xf32>
    %c0_6 = arith.constant 0 : index
    %c0_7 = arith.constant 0 : index
    %8 = vector.load %arg7[%c0_6, %c0_7] : memref<256x64xf32, #tpu.memory_space<vmem>>, vector<256x64xf32>
    tpu.vector_store %arg7[%c0_6, %c0_7], %7 {strides = array<i32>} : memref<256x64xf32, #tpu.memory_space<vmem>>, vector<256x64xf32>,
    %c0_i32_8 = arith.constant 0 : i32
    %9 = arith.cmpi eq, %arg2, %c0_i32_8 : i32
    %10 = arith.extui %9 : i1 to i32
    %c0_i32_9 = arith.constant 0 : i32
    %11 = arith.cmpi ne, %10, %c0_i32_9 : i32
    scf.if %11 {
      %c0_10 = arith.constant 0 : index
      %c0_11 = arith.constant 0 : index
      %12 = vector.load %arg7[%c0_10, %c0_11] : memref<256x64xf32, #tpu.memory_space<vmem>>, vector<256x64xf32>
      %c0_12 = arith.constant 0 : index
      %c0_13 = arith.constant 0 : index
      %13 = vector.load %arg5[%c0_12, %c0_13] : memref<1x64xf32, #tpu.memory_space<vmem>>, vector<1x64xf32>
      %14 = vector.broadcast %13 : vector<1x64xf32> to vector<256x64xf32>
      %15 = arith.addf %12, %14 : vector<256x64xf32>
      %cst_14 = arith.constant 0.000000e+00 : f32
      %16 = vector.broadcast %cst_14 : f32 to vector<256x64xf32>
      %17 = arith.maximumf %15, %16 : vector<256x64xf32>
      %18 = arith.truncf %17 : vector<256x64xf32> to vector<256x64xbf16>
      %c0_15 = arith.constant 0 : index
      %c0_16 = arith.constant 0 : index
      %19 = vector.load %arg6[%c0_15, %c0_16] : memref<256x64xbf16, #tpu.memory_space<vmem>>, vector<256x64xbf16>
      tpu.vector_store %arg6[%c0_15, %c0_16], %18 {strides = array<i32>} : memref<256x64xbf16, #tpu.memory_space<vmem>>, vector<256x64xbf16>,
    } else {
    }
    return
  }
  func.func @transform_0(%arg0: i32, %arg1: i32, %arg2: i32) -> (i32, i32) {
    %c0_i32 = arith.constant 0 : i32
    return %arg0, %arg2 : i32, i32
  }
  func.func @transform_1(%arg0: i32, %arg1: i32, %arg2: i32) -> (i32, i32) {
    %c0_i32 = arith.constant 0 : i32
    return %arg2, %arg1 : i32, i32
  }
  func.func @transform_2(%arg0: i32, %arg1: i32, %arg2: i32) -> (i32, i32) {
    %c0_i32 = arith.constant 0 : i32
    %c0_i32_0 = arith.constant 0 : i32
    return %c0_i32, %arg1 : i32, i32
  }
  func.func @transform_3(%arg0: i32, %arg1: i32, %arg2: i32) -> (i32, i32) {
    %c0_i32 = arith.constant 0 : i32
    return %arg0, %arg1 : i32, i32
  }
}

module attributes {stable_mosaic.version = 11 : i64} {
  func.func @_maxpool_3x3_kernel(%arg0: i32, %arg1: memref<1x36x9x64xbf16, #tpu.memory_space<vmem>>, %arg2: memref<1x8x8x64xbf16, #tpu.memory_space<vmem>>) attributes {dimension_semantics = [#tpu.dimension_semantics<parallel>], iteration_bounds = array<i64: 2>, scalar_prefetch = 0 : i64, scratch_operands = 0 : i64, tpu.core_type = #tpu.core_type<tc>, window_params = [{transform_indices = @transform_0, window_bounds = array<i64: 1, 36, 9, 64>}, {transform_indices = @transform_1, window_bounds = array<i64: 1, 8, 8, 64>}]} {
    %c0 = arith.constant 0 : index
    %c0_0 = arith.constant 0 : index
    %c0_1 = arith.constant 0 : index
    %c0_2 = arith.constant 0 : index
    %0 = vector.load %arg1[%c0, %c0_0, %c0_1, %c0_2] : memref<1x36x9x64xbf16, #tpu.memory_space<vmem>>, vector<1x36x9x64xbf16>
    %1 = arith.extf %0 : vector<1x36x9x64xbf16> to vector<1x36x9x64xf32>
    %2 = vector.extract_strided_slice %1 {offsets = [0, 0, 0, 0], sizes = [1, 8, 8, 64], strides = [1, 1, 1, 1]} : vector<1x36x9x64xf32> to vector<1x8x8x64xf32>
    %3 = vector.extract_strided_slice %1 {offsets = [0, 9, 0, 0], sizes = [1, 8, 8, 64], strides = [1, 1, 1, 1]} : vector<1x36x9x64xf32> to vector<1x8x8x64xf32>
    %4 = arith.maximumf %2, %3 : vector<1x8x8x64xf32>
    %5 = vector.extract_strided_slice %1 {offsets = [0, 0, 1, 0], sizes = [1, 8, 8, 64], strides = [1, 1, 1, 1]} : vector<1x36x9x64xf32> to vector<1x8x8x64xf32>
    %6 = arith.maximumf %4, %5 : vector<1x8x8x64xf32>
    %7 = vector.extract_strided_slice %1 {offsets = [0, 18, 0, 0], sizes = [1, 8, 8, 64], strides = [1, 1, 1, 1]} : vector<1x36x9x64xf32> to vector<1x8x8x64xf32>
    %8 = arith.maximumf %6, %7 : vector<1x8x8x64xf32>
    %9 = vector.extract_strided_slice %1 {offsets = [0, 27, 0, 0], sizes = [1, 8, 8, 64], strides = [1, 1, 1, 1]} : vector<1x36x9x64xf32> to vector<1x8x8x64xf32>
    %10 = arith.maximumf %8, %9 : vector<1x8x8x64xf32>
    %11 = vector.extract_strided_slice %1 {offsets = [0, 18, 1, 0], sizes = [1, 8, 8, 64], strides = [1, 1, 1, 1]} : vector<1x36x9x64xf32> to vector<1x8x8x64xf32>
    %12 = arith.maximumf %10, %11 : vector<1x8x8x64xf32>
    %13 = vector.extract_strided_slice %1 {offsets = [0, 1, 0, 0], sizes = [1, 8, 8, 64], strides = [1, 1, 1, 1]} : vector<1x36x9x64xf32> to vector<1x8x8x64xf32>
    %14 = arith.maximumf %12, %13 : vector<1x8x8x64xf32>
    %15 = vector.extract_strided_slice %1 {offsets = [0, 10, 0, 0], sizes = [1, 8, 8, 64], strides = [1, 1, 1, 1]} : vector<1x36x9x64xf32> to vector<1x8x8x64xf32>
    %16 = arith.maximumf %14, %15 : vector<1x8x8x64xf32>
    %17 = vector.extract_strided_slice %1 {offsets = [0, 1, 1, 0], sizes = [1, 8, 8, 64], strides = [1, 1, 1, 1]} : vector<1x36x9x64xf32> to vector<1x8x8x64xf32>
    %18 = arith.maximumf %16, %17 : vector<1x8x8x64xf32>
    %19 = arith.truncf %18 : vector<1x8x8x64xf32> to vector<1x8x8x64xbf16>
    %c0_3 = arith.constant 0 : index
    %c0_4 = arith.constant 0 : index
    %c0_5 = arith.constant 0 : index
    %c0_6 = arith.constant 0 : index
    %20 = vector.load %arg2[%c0_3, %c0_4, %c0_5, %c0_6] : memref<1x8x8x64xbf16, #tpu.memory_space<vmem>>, vector<1x8x8x64xbf16>
    tpu.vector_store %arg2[%c0_3, %c0_4, %c0_5, %c0_6], %19 {strides = array<i32>} : memref<1x8x8x64xbf16, #tpu.memory_space<vmem>>, vector<1x8x8x64xbf16>,
    return
  }
  func.func @transform_0(%arg0: i32) -> (i32, i32, i32, i32) {
    %c0_i32 = arith.constant 0 : i32
    %c0_i32_0 = arith.constant 0 : i32
    %c0_i32_1 = arith.constant 0 : i32
    %c0_i32_2 = arith.constant 0 : i32
    return %arg0, %c0_i32, %c0_i32_0, %c0_i32_1 : i32, i32, i32, i32
  }
  func.func @transform_1(%arg0: i32) -> (i32, i32, i32, i32) {
    %c0_i32 = arith.constant 0 : i32
    %c0_i32_0 = arith.constant 0 : i32
    %c0_i32_1 = arith.constant 0 : i32
    %c0_i32_2 = arith.constant 0 : i32
    return %arg0, %c0_i32, %c0_i32_0, %c0_i32_1 : i32, i32, i32, i32
  }
}

module attributes {stable_mosaic.version = 11 : i64} {
  func.func @_matmul_shift_relu_kernel(%arg0: i32, %arg1: i32, %arg2: i32, %arg3: memref<32x576xbf16, #tpu.memory_space<vmem>>, %arg4: memref<576x128xbf16, #tpu.memory_space<vmem>>, %arg5: memref<1x128xf32, #tpu.memory_space<vmem>>, %arg6: memref<32x128xbf16, #tpu.memory_space<vmem>>, %arg7: memref<32x128xf32, #tpu.memory_space<vmem>>) attributes {dimension_semantics = [#tpu.dimension_semantics<parallel>, #tpu.dimension_semantics<parallel>, #tpu.dimension_semantics<arbitrary>], iteration_bounds = array<i64: 1, 1, 1>, scalar_prefetch = 0 : i64, scratch_operands = 1 : i64, tpu.core_type = #tpu.core_type<tc>, window_params = [{transform_indices = @transform_0, window_bounds = array<i64: 32, 576>}, {transform_indices = @transform_1, window_bounds = array<i64: 576, 128>}, {transform_indices = @transform_2, window_bounds = array<i64: 1, 128>}, {transform_indices = @transform_3, window_bounds = array<i64: 32, 128>}]} {
    %c0_i32 = arith.constant 0 : i32
    %0 = arith.cmpi eq, %arg2, %c0_i32 : i32
    %1 = arith.extui %0 : i1 to i32
    %c0_i32_0 = arith.constant 0 : i32
    %2 = arith.cmpi ne, %1, %c0_i32_0 : i32
    scf.if %2 {
      %cst_10 = arith.constant 0.000000e+00 : f32
      %12 = vector.broadcast %cst_10 : f32 to vector<32x128xf32>
      %c0_11 = arith.constant 0 : index
      %c0_12 = arith.constant 0 : index
      %13 = vector.load %arg7[%c0_11, %c0_12] : memref<32x128xf32, #tpu.memory_space<vmem>>, vector<32x128xf32>
      tpu.vector_store %arg7[%c0_11, %c0_12], %12 {strides = array<i32>} : memref<32x128xf32, #tpu.memory_space<vmem>>, vector<32x128xf32>,
    } else {
    }
    %c0 = arith.constant 0 : index
    %c0_1 = arith.constant 0 : index
    %3 = vector.load %arg7[%c0, %c0_1] : memref<32x128xf32, #tpu.memory_space<vmem>>, vector<32x128xf32>
    %c0_2 = arith.constant 0 : index
    %c0_3 = arith.constant 0 : index
    %4 = vector.load %arg3[%c0_2, %c0_3] : memref<32x576xbf16, #tpu.memory_space<vmem>>, vector<32x576xbf16>
    %c0_4 = arith.constant 0 : index
    %c0_5 = arith.constant 0 : index
    %5 = vector.load %arg4[%c0_4, %c0_5] : memref<576x128xbf16, #tpu.memory_space<vmem>>, vector<576x128xbf16>
    %cst = arith.constant dense<0.000000e+00> : vector<32x128xf32>
    %6 = tpu.matmul %4, %5, %cst {dimension_numbers = #tpu.dot_dimension_numbers<[1], [0], [0], [1], [0, 0, 1, 1], [], []>} : vector<32x576xbf16>, vector<576x128xbf16>, vector<32x128xf32> -> vector<32x128xf32>
    %7 = arith.addf %3, %6 : vector<32x128xf32>
    %c0_6 = arith.constant 0 : index
    %c0_7 = arith.constant 0 : index
    %8 = vector.load %arg7[%c0_6, %c0_7] : memref<32x128xf32, #tpu.memory_space<vmem>>, vector<32x128xf32>
    tpu.vector_store %arg7[%c0_6, %c0_7], %7 {strides = array<i32>} : memref<32x128xf32, #tpu.memory_space<vmem>>, vector<32x128xf32>,
    %c0_i32_8 = arith.constant 0 : i32
    %9 = arith.cmpi eq, %arg2, %c0_i32_8 : i32
    %10 = arith.extui %9 : i1 to i32
    %c0_i32_9 = arith.constant 0 : i32
    %11 = arith.cmpi ne, %10, %c0_i32_9 : i32
    scf.if %11 {
      %c0_10 = arith.constant 0 : index
      %c0_11 = arith.constant 0 : index
      %12 = vector.load %arg7[%c0_10, %c0_11] : memref<32x128xf32, #tpu.memory_space<vmem>>, vector<32x128xf32>
      %c0_12 = arith.constant 0 : index
      %c0_13 = arith.constant 0 : index
      %13 = vector.load %arg5[%c0_12, %c0_13] : memref<1x128xf32, #tpu.memory_space<vmem>>, vector<1x128xf32>
      %14 = vector.broadcast %13 : vector<1x128xf32> to vector<32x128xf32>
      %15 = arith.addf %12, %14 : vector<32x128xf32>
      %cst_14 = arith.constant 0.000000e+00 : f32
      %16 = vector.broadcast %cst_14 : f32 to vector<32x128xf32>
      %17 = arith.maximumf %15, %16 : vector<32x128xf32>
      %18 = arith.truncf %17 : vector<32x128xf32> to vector<32x128xbf16>
      %c0_15 = arith.constant 0 : index
      %c0_16 = arith.constant 0 : index
      %19 = vector.load %arg6[%c0_15, %c0_16] : memref<32x128xbf16, #tpu.memory_space<vmem>>, vector<32x128xbf16>
      tpu.vector_store %arg6[%c0_15, %c0_16], %18 {strides = array<i32>} : memref<32x128xbf16, #tpu.memory_space<vmem>>, vector<32x128xbf16>,
    } else {
    }
    return
  }
  func.func @transform_0(%arg0: i32, %arg1: i32, %arg2: i32) -> (i32, i32) {
    %c0_i32 = arith.constant 0 : i32
    return %arg0, %arg2 : i32, i32
  }
  func.func @transform_1(%arg0: i32, %arg1: i32, %arg2: i32) -> (i32, i32) {
    %c0_i32 = arith.constant 0 : i32
    return %arg2, %arg1 : i32, i32
  }
  func.func @transform_2(%arg0: i32, %arg1: i32, %arg2: i32) -> (i32, i32) {
    %c0_i32 = arith.constant 0 : i32
    %c0_i32_0 = arith.constant 0 : i32
    return %c0_i32, %arg1 : i32, i32
  }
  func.func @transform_3(%arg0: i32, %arg1: i32, %arg2: i32) -> (i32, i32) {
    %c0_i32 = arith.constant 0 : i32
    return %arg0, %arg1 : i32, i32
  }
}

module attributes {stable_mosaic.version = 11 : i64} {
  func.func @_matmul_shift_relu_kernel(%arg0: i32, %arg1: i32, %arg2: i32, %arg3: memref<8x1152xbf16, #tpu.memory_space<vmem>>, %arg4: memref<1152x256xbf16, #tpu.memory_space<vmem>>, %arg5: memref<1x256xf32, #tpu.memory_space<vmem>>, %arg6: memref<8x256xbf16, #tpu.memory_space<vmem>>, %arg7: memref<8x256xf32, #tpu.memory_space<vmem>>) attributes {dimension_semantics = [#tpu.dimension_semantics<parallel>, #tpu.dimension_semantics<parallel>, #tpu.dimension_semantics<arbitrary>], iteration_bounds = array<i64: 1, 1, 1>, scalar_prefetch = 0 : i64, scratch_operands = 1 : i64, tpu.core_type = #tpu.core_type<tc>, window_params = [{transform_indices = @transform_0, window_bounds = array<i64: 8, 1152>}, {transform_indices = @transform_1, window_bounds = array<i64: 1152, 256>}, {transform_indices = @transform_2, window_bounds = array<i64: 1, 256>}, {transform_indices = @transform_3, window_bounds = array<i64: 8, 256>}]} {
    %c0_i32 = arith.constant 0 : i32
    %0 = arith.cmpi eq, %arg2, %c0_i32 : i32
    %1 = arith.extui %0 : i1 to i32
    %c0_i32_0 = arith.constant 0 : i32
    %2 = arith.cmpi ne, %1, %c0_i32_0 : i32
    scf.if %2 {
      %cst_10 = arith.constant 0.000000e+00 : f32
      %12 = vector.broadcast %cst_10 : f32 to vector<8x256xf32>
      %c0_11 = arith.constant 0 : index
      %c0_12 = arith.constant 0 : index
      %13 = vector.load %arg7[%c0_11, %c0_12] : memref<8x256xf32, #tpu.memory_space<vmem>>, vector<8x256xf32>
      tpu.vector_store %arg7[%c0_11, %c0_12], %12 {strides = array<i32>} : memref<8x256xf32, #tpu.memory_space<vmem>>, vector<8x256xf32>,
    } else {
    }
    %c0 = arith.constant 0 : index
    %c0_1 = arith.constant 0 : index
    %3 = vector.load %arg7[%c0, %c0_1] : memref<8x256xf32, #tpu.memory_space<vmem>>, vector<8x256xf32>
    %c0_2 = arith.constant 0 : index
    %c0_3 = arith.constant 0 : index
    %4 = vector.load %arg3[%c0_2, %c0_3] : memref<8x1152xbf16, #tpu.memory_space<vmem>>, vector<8x1152xbf16>
    %c0_4 = arith.constant 0 : index
    %c0_5 = arith.constant 0 : index
    %5 = vector.load %arg4[%c0_4, %c0_5] : memref<1152x256xbf16, #tpu.memory_space<vmem>>, vector<1152x256xbf16>
    %cst = arith.constant dense<0.000000e+00> : vector<8x256xf32>
    %6 = tpu.matmul %4, %5, %cst {dimension_numbers = #tpu.dot_dimension_numbers<[1], [0], [0], [1], [0, 0, 1, 1], [], []>} : vector<8x1152xbf16>, vector<1152x256xbf16>, vector<8x256xf32> -> vector<8x256xf32>
    %7 = arith.addf %3, %6 : vector<8x256xf32>
    %c0_6 = arith.constant 0 : index
    %c0_7 = arith.constant 0 : index
    %8 = vector.load %arg7[%c0_6, %c0_7] : memref<8x256xf32, #tpu.memory_space<vmem>>, vector<8x256xf32>
    tpu.vector_store %arg7[%c0_6, %c0_7], %7 {strides = array<i32>} : memref<8x256xf32, #tpu.memory_space<vmem>>, vector<8x256xf32>,
    %c0_i32_8 = arith.constant 0 : i32
    %9 = arith.cmpi eq, %arg2, %c0_i32_8 : i32
    %10 = arith.extui %9 : i1 to i32
    %c0_i32_9 = arith.constant 0 : i32
    %11 = arith.cmpi ne, %10, %c0_i32_9 : i32
    scf.if %11 {
      %c0_10 = arith.constant 0 : index
      %c0_11 = arith.constant 0 : index
      %12 = vector.load %arg7[%c0_10, %c0_11] : memref<8x256xf32, #tpu.memory_space<vmem>>, vector<8x256xf32>
      %c0_12 = arith.constant 0 : index
      %c0_13 = arith.constant 0 : index
      %13 = vector.load %arg5[%c0_12, %c0_13] : memref<1x256xf32, #tpu.memory_space<vmem>>, vector<1x256xf32>
      %14 = vector.broadcast %13 : vector<1x256xf32> to vector<8x256xf32>
      %15 = arith.addf %12, %14 : vector<8x256xf32>
      %cst_14 = arith.constant 0.000000e+00 : f32
      %16 = vector.broadcast %cst_14 : f32 to vector<8x256xf32>
      %17 = arith.maximumf %15, %16 : vector<8x256xf32>
      %18 = arith.truncf %17 : vector<8x256xf32> to vector<8x256xbf16>
      %c0_15 = arith.constant 0 : index
      %c0_16 = arith.constant 0 : index
      %19 = vector.load %arg6[%c0_15, %c0_16] : memref<8x256xbf16, #tpu.memory_space<vmem>>, vector<8x256xbf16>
      tpu.vector_store %arg6[%c0_15, %c0_16], %18 {strides = array<i32>} : memref<8x256xbf16, #tpu.memory_space<vmem>>, vector<8x256xbf16>,
    } else {
    }
    return
  }
  func.func @transform_0(%arg0: i32, %arg1: i32, %arg2: i32) -> (i32, i32) {
    %c0_i32 = arith.constant 0 : i32
    return %arg0, %arg2 : i32, i32
  }
  func.func @transform_1(%arg0: i32, %arg1: i32, %arg2: i32) -> (i32, i32) {
    %c0_i32 = arith.constant 0 : i32
    return %arg2, %arg1 : i32, i32
  }
  func.func @transform_2(%arg0: i32, %arg1: i32, %arg2: i32) -> (i32, i32) {
    %c0_i32 = arith.constant 0 : i32
    %c0_i32_0 = arith.constant 0 : i32
    return %c0_i32, %arg1 : i32, i32
  }
  func.func @transform_3(%arg0: i32, %arg1: i32, %arg2: i32) -> (i32, i32) {
    %c0_i32 = arith.constant 0 : i32
    return %arg0, %arg1 : i32, i32
  }
}

module attributes {stable_mosaic.version = 11 : i64} {
  func.func @_matmul_shift_relu_kernel(%arg0: i32, %arg1: i32, %arg2: i32, %arg3: memref<2x1152xbf16, #tpu.memory_space<vmem>>, %arg4: memref<1152x256xbf16, #tpu.memory_space<vmem>>, %arg5: memref<1x256xf32, #tpu.memory_space<vmem>>, %arg6: memref<2x256xbf16, #tpu.memory_space<vmem>>, %arg7: memref<2x256xf32, #tpu.memory_space<vmem>>) attributes {dimension_semantics = [#tpu.dimension_semantics<parallel>, #tpu.dimension_semantics<parallel>, #tpu.dimension_semantics<arbitrary>], iteration_bounds = array<i64: 1, 2, 2>, scalar_prefetch = 0 : i64, scratch_operands = 1 : i64, tpu.core_type = #tpu.core_type<tc>, window_params = [{transform_indices = @transform_0, window_bounds = array<i64: 2, 1152>}, {transform_indices = @transform_1, window_bounds = array<i64: 1152, 256>}, {transform_indices = @transform_2, window_bounds = array<i64: 1, 256>}, {transform_indices = @transform_3, window_bounds = array<i64: 2, 256>}]} {
    %c0_i32 = arith.constant 0 : i32
    %0 = arith.cmpi eq, %arg2, %c0_i32 : i32
    %1 = arith.extui %0 : i1 to i32
    %c0_i32_0 = arith.constant 0 : i32
    %2 = arith.cmpi ne, %1, %c0_i32_0 : i32
    scf.if %2 {
      %cst_9 = arith.constant 0.000000e+00 : f32
      %12 = vector.broadcast %cst_9 : f32 to vector<2x256xf32>
      %c0_10 = arith.constant 0 : index
      %c0_11 = arith.constant 0 : index
      %13 = vector.load %arg7[%c0_10, %c0_11] : memref<2x256xf32, #tpu.memory_space<vmem>>, vector<2x256xf32>
      tpu.vector_store %arg7[%c0_10, %c0_11], %12 {strides = array<i32>} : memref<2x256xf32, #tpu.memory_space<vmem>>, vector<2x256xf32>,
    } else {
    }
    %c0 = arith.constant 0 : index
    %c0_1 = arith.constant 0 : index
    %3 = vector.load %arg7[%c0, %c0_1] : memref<2x256xf32, #tpu.memory_space<vmem>>, vector<2x256xf32>
    %c0_2 = arith.constant 0 : index
    %c0_3 = arith.constant 0 : index
    %4 = vector.load %arg3[%c0_2, %c0_3] : memref<2x1152xbf16, #tpu.memory_space<vmem>>, vector<2x1152xbf16>
    %c0_4 = arith.constant 0 : index
    %c0_5 = arith.constant 0 : index
    %5 = vector.load %arg4[%c0_4, %c0_5] : memref<1152x256xbf16, #tpu.memory_space<vmem>>, vector<1152x256xbf16>
    %cst = arith.constant dense<0.000000e+00> : vector<2x256xf32>
    %6 = tpu.matmul %4, %5, %cst {dimension_numbers = #tpu.dot_dimension_numbers<[1], [0], [0], [1], [0, 0, 1, 1], [], []>} : vector<2x1152xbf16>, vector<1152x256xbf16>, vector<2x256xf32> -> vector<2x256xf32>
    %7 = arith.addf %3, %6 : vector<2x256xf32>
    %c0_6 = arith.constant 0 : index
    %c0_7 = arith.constant 0 : index
    %8 = vector.load %arg7[%c0_6, %c0_7] : memref<2x256xf32, #tpu.memory_space<vmem>>, vector<2x256xf32>
    tpu.vector_store %arg7[%c0_6, %c0_7], %7 {strides = array<i32>} : memref<2x256xf32, #tpu.memory_space<vmem>>, vector<2x256xf32>,
    %c1_i32 = arith.constant 1 : i32
    %9 = arith.cmpi eq, %arg2, %c1_i32 : i32
    %10 = arith.extui %9 : i1 to i32
    %c0_i32_8 = arith.constant 0 : i32
    %11 = arith.cmpi ne, %10, %c0_i32_8 : i32
    scf.if %11 {
      %c0_9 = arith.constant 0 : index
      %c0_10 = arith.constant 0 : index
      %12 = vector.load %arg7[%c0_9, %c0_10] : memref<2x256xf32, #tpu.memory_space<vmem>>, vector<2x256xf32>
      %c0_11 = arith.constant 0 : index
      %c0_12 = arith.constant 0 : index
      %13 = vector.load %arg5[%c0_11, %c0_12] : memref<1x256xf32, #tpu.memory_space<vmem>>, vector<1x256xf32>
      %14 = vector.broadcast %13 : vector<1x256xf32> to vector<2x256xf32>
      %15 = arith.addf %12, %14 : vector<2x256xf32>
      %cst_13 = arith.constant 0.000000e+00 : f32
      %16 = vector.broadcast %cst_13 : f32 to vector<2x256xf32>
      %17 = arith.maximumf %15, %16 : vector<2x256xf32>
      %18 = arith.truncf %17 : vector<2x256xf32> to vector<2x256xbf16>
      %c0_14 = arith.constant 0 : index
      %c0_15 = arith.constant 0 : index
      %19 = vector.load %arg6[%c0_14, %c0_15] : memref<2x256xbf16, #tpu.memory_space<vmem>>, vector<2x256xbf16>
      tpu.vector_store %arg6[%c0_14, %c0_15], %18 {strides = array<i32>} : memref<2x256xbf16, #tpu.memory_space<vmem>>, vector<2x256xbf16>,
    } else {
    }
    return
  }
  func.func @transform_0(%arg0: i32, %arg1: i32, %arg2: i32) -> (i32, i32) {
    %c0_i32 = arith.constant 0 : i32
    return %arg0, %arg2 : i32, i32
  }
  func.func @transform_1(%arg0: i32, %arg1: i32, %arg2: i32) -> (i32, i32) {
    %c0_i32 = arith.constant 0 : i32
    return %arg2, %arg1 : i32, i32
  }
  func.func @transform_2(%arg0: i32, %arg1: i32, %arg2: i32) -> (i32, i32) {
    %c0_i32 = arith.constant 0 : i32
    %c0_i32_0 = arith.constant 0 : i32
    return %c0_i32, %arg1 : i32, i32
  }
  func.func @transform_3(%arg0: i32, %arg1: i32, %arg2: i32) -> (i32, i32) {
    %c0_i32 = arith.constant 0 : i32
    return %arg0, %arg1 : i32, i32
  }
}

module attributes {stable_mosaic.version = 11 : i64} {
  func.func @_head_reparam_kernel(%arg0: memref<2x1x512xbf16, #tpu.memory_space<vmem>>, %arg1: memref<512x32xbf16, #tpu.memory_space<vmem>>, %arg2: memref<512x32xbf16, #tpu.memory_space<vmem>>, %arg3: memref<1x32xf32, #tpu.memory_space<vmem>>, %arg4: memref<1x32xf32, #tpu.memory_space<vmem>>, %arg5: memref<2x32xf32, #tpu.memory_space<vmem>>, %arg6: memref<2x32xf32, #tpu.memory_space<vmem>>, %arg7: memref<2x32xf32, #tpu.memory_space<vmem>>, %arg8: memref<2x32xf32, #tpu.memory_space<vmem>>) attributes {dimension_semantics = [], scalar_prefetch = 0 : i64, scratch_operands = 0 : i64, tpu.core_type = #tpu.core_type<tc>} {
    %c0 = arith.constant 0 : index
    %c0_0 = arith.constant 0 : index
    %c0_1 = arith.constant 0 : index
    %0 = vector.load %arg0[%c0, %c0_0, %c0_1] : memref<2x1x512xbf16, #tpu.memory_space<vmem>>, vector<2x1x512xbf16>
    %1 = arith.extf %0 : vector<2x1x512xbf16> to vector<2x1x512xf32>
    %cst = arith.constant dense<0.000000e+00> : vector<2x512xf32>
    %2 = vector.multi_reduction <add>, %1, %cst [1] : vector<2x1x512xf32> to vector<2x512xf32>
    %cst_2 = arith.constant 1.000000e+00 : f32
    %3 = vector.broadcast %cst_2 : f32 to vector<2x512xf32>
    %4 = arith.divf %2, %3 : vector<2x512xf32>
    %5 = arith.truncf %4 : vector<2x512xf32> to vector<2x512xbf16>
    %c0_3 = arith.constant 0 : index
    %c0_4 = arith.constant 0 : index
    %6 = vector.load %arg1[%c0_3, %c0_4] : memref<512x32xbf16, #tpu.memory_space<vmem>>, vector<512x32xbf16>
    %cst_5 = arith.constant dense<0.000000e+00> : vector<2x32xf32>
    %7 = tpu.matmul %5, %6, %cst_5 {dimension_numbers = #tpu.dot_dimension_numbers<[1], [0], [0], [1], [0, 0, 1, 1], [], []>} : vector<2x512xbf16>, vector<512x32xbf16>, vector<2x32xf32> -> vector<2x32xf32>
    %c0_6 = arith.constant 0 : index
    %c0_7 = arith.constant 0 : index
    %8 = vector.load %arg3[%c0_6, %c0_7] : memref<1x32xf32, #tpu.memory_space<vmem>>, vector<1x32xf32>
    %9 = vector.broadcast %8 : vector<1x32xf32> to vector<2x32xf32>
    %10 = arith.addf %7, %9 : vector<2x32xf32>
    %c0_8 = arith.constant 0 : index
    %c0_9 = arith.constant 0 : index
    %11 = vector.load %arg2[%c0_8, %c0_9] : memref<512x32xbf16, #tpu.memory_space<vmem>>, vector<512x32xbf16>
    %cst_10 = arith.constant dense<0.000000e+00> : vector<2x32xf32>
    %12 = tpu.matmul %5, %11, %cst_10 {dimension_numbers = #tpu.dot_dimension_numbers<[1], [0], [0], [1], [0, 0, 1, 1], [], []>} : vector<2x512xbf16>, vector<512x32xbf16>, vector<2x32xf32> -> vector<2x32xf32>
    %c0_11 = arith.constant 0 : index
    %c0_12 = arith.constant 0 : index
    %13 = vector.load %arg4[%c0_11, %c0_12] : memref<1x32xf32, #tpu.memory_space<vmem>>, vector<1x32xf32>
    %14 = vector.broadcast %13 : vector<1x32xf32> to vector<2x32xf32>
    %15 = arith.addf %12, %14 : vector<2x32xf32>
    %c0_13 = arith.constant 0 : index
    %c0_14 = arith.constant 0 : index
    %16 = vector.load %arg7[%c0_13, %c0_14] : memref<2x32xf32, #tpu.memory_space<vmem>>, vector<2x32xf32>
    tpu.vector_store %arg7[%c0_13, %c0_14], %10 {strides = array<i32>} : memref<2x32xf32, #tpu.memory_space<vmem>>, vector<2x32xf32>,
    %c0_15 = arith.constant 0 : index
    %c0_16 = arith.constant 0 : index
    %17 = vector.load %arg8[%c0_15, %c0_16] : memref<2x32xf32, #tpu.memory_space<vmem>>, vector<2x32xf32>
    tpu.vector_store %arg8[%c0_15, %c0_16], %15 {strides = array<i32>} : memref<2x32xf32, #tpu.memory_space<vmem>>, vector<2x32xf32>,
    %c0_17 = arith.constant 0 : index
    %c0_18 = arith.constant 0 : index
    %18 = vector.load %arg5[%c0_17, %c0_18] : memref<2x32xf32, #tpu.memory_space<vmem>>, vector<2x32xf32>
    %cst_19 = arith.constant 5.000000e-01 : f32
    %19 = vector.broadcast %cst_19 : f32 to vector<2x32xf32>
    %20 = arith.mulf %19, %15 : vector<2x32xf32>
    %21 = math.exp %20 : vector<2x32xf32>
    %22 = arith.mulf %18, %21 : vector<2x32xf32>
    %23 = arith.addf %10, %22 : vector<2x32xf32>
    %c0_20 = arith.constant 0 : index
    %c0_21 = arith.constant 0 : index
    %24 = vector.load %arg6[%c0_20, %c0_21] : memref<2x32xf32, #tpu.memory_space<vmem>>, vector<2x32xf32>
    tpu.vector_store %arg6[%c0_20, %c0_21], %23 {strides = array<i32>} : memref<2x32xf32, #tpu.memory_space<vmem>>, vector<2x32xf32>,
    return
  }
}

</mosaic_0001>

<bundles_post_ra>
// kernel: encoder_forward.7
= control target key start
LH: loop header
LB: loop body
LE: loop exit
PB: predicated region body
PF: predicated region fallthrough
CT: control target
= control target key end

     0   :  { %s496_s6 = smov 0   ;;  %s621_s0 = inlined_call_operand.vmem [shape: bf16[2,36,9,64], index: 0, kind: input, shape index: {}]   ;;  %s622_s1 = inlined_call_operand.vmem [shape: bf16[2,8,8,64], index: 1, kind: output, shape index: {}]  }
   0x1 LB: > { %s458_s7 = sadd.s32 4294967295, %s484_s6   ;;  %p462_p0 = scmp.ge.s32.totalorder %s484_s6, 1  ;;  %s484_s6 = sphi %s496_s6, %s11_s6  }
   0x2   : > { %p87_p1 = scmp.lt.s32.totalorder %s484_s6, 3 }
   0x4   : > { %p88_p2 = pnand %p462_p0, %p87_p1 }
   0x5   : > { %p107_p3 = scmp.lt.s32.totalorder (!%p88_p2), %s458_s7, 1  ;;  %vm243_vm0 = vcmask (!%p88_p2), 1046528   ;;  %vm394_vm1 = vcmask (!%p88_p2), 519168  }
   0x6   : > { %91 = sbr.rel (%p88_p2) target bundleno = 72 (0x48), region = 24 }
   0xd   : > { %s624_s7 = smov (!%p107_p3, %s458_s7), 1 }
   0xe   : > { %s469_s8 = smul.u32 288, %s624_s7  ;;  %s468_s12 = sshll.u32 %s624_s7, 5 }
   0xf   : > { %s570_s15 = scalar_lea.vmem %s622_s1, %s468_s12 }
  0x10   : > { %s510_s11 = scalar_lea.vmem %s621_s0, %s469_s8 }
  0x11   : > { %v117_v0 = vld [vmem:[%s510_s11] ss:$8 sps:$4 sm:$0xff]   ;;  %v118_v1 = vld [vmem:[%s510_s11 + $0x4] sm:$0x1]  ;;  %v120_v2 = vld [vmem:[%s510_s11 + $0xc] sm:$0x1] }
  0x12   : > { %v516_v3 = vld [vmem:[%s510_s11 + $0x48] ss:$8 sps:$4 sm:$0xff]   ;;  %v145_v5 = vld [vmem:[%s510_s11 + $0x94] sm:$0x1]  ;;  %v168_v6 = vunpack.c.l.bf16 %v117_v0  ;;  %v169_v7 = vunpack.c.l.bf16 %v118_v1  ;;  %v520_v8 = vunpack.c.h.bf16 %v117_v0  ;;  %v171_v9 = vunpack.c.l.bf16 %v120_v2  ;;  %v160_v10 = vld [vmem:[%s510_s11 + $0xd8] ss:$8 sps:$4 sm:$0xff]  }
  0x13   : > { %v144_v4 = vld [vmem:[%s510_s11 + $0x90] ss:$8 sps:$4 sm:$0xff]   ;;  %v186_v11 = vunpack.c.l.bf16 %v516_v3  ;;  %v187_v12 = vunpack.c.h.bf16 %v516_v3  ;;  %v196_v14 = vunpack.c.l.bf16 %v145_v5  ;;  %v211_v16 = vunpack.c.l.bf16 %v160_v10  ;;  %v122_v19 = vld [vmem:[%s510_s11 + $0x14] sm:$0x1]  ;;  %v147_v24 = vld [vmem:[%s510_s11 + $0x9c] sm:$0x1] }
  0x14   : > { %v195_v13 = vunpack.c.l.bf16 %v144_v4  ;;  %v197_v15 = vunpack.c.h.bf16 %v144_v4  ;;  %v244_v17 = vrot.slane %v168_v6, 1  ;;  %v526_v18 = vld [vmem:[%s510_s11 + $0x10] ss:$72 sps:$4 sm:$0xff]   ;;  %v245_v22 = vrot.slane %v169_v7, 1  ;;  %v148_v29 = vld [vmem:[%s510_s11 + $0xa0] ss:$72 sps:$4 sm:$0xff]  }
  0x15   : > { %v219_v20 = vmax.f32 %v168_v6, %v186_v11  ;;  %v220_v21 = vmax.f32 %v520_v8, %v187_v12  ;;  %v247_v23 = vrot.slane %v520_v8, 1  ;;  %v212_v25 = vunpack.c.h.bf16 %v160_v10  ;;  %v540_v38 = vld [vmem:[%s510_s11 + $0x18] ss:$72 sps:$4 sm:$0xff]   ;;  %v124_v39 = vld [vmem:[%s510_s11 + $0x1c] sm:$0x1] }
  0x16   : > { %v248_v26 = vrot.slane %v171_v9, 1  ;;  %v316_v27 = vrot.slane %v195_v13, 1  ;;  %v317_v28 = vrot.slane %v196_v14, 1  ;;  %v246_v30 = vsel %vm243_vm0, %v244_v17, %v245_v22  ;;  %v149_v48 = vld [vmem:[%s510_s11 + $0xa4] sm:$0x1] }
  0x17   : > { %v172_v31 = vunpack.c.l.bf16 %v526_v18  ;;  %v173_v32 = vunpack.c.l.bf16 %v122_v19  ;;  %v188_v33 = vunpack.c.h.bf16 %v526_v18  ;;  %v276_v35 = vmax.f32 %v219_v20, %v246_v30  ;;  %v150_v51 = vld [vmem:[%s510_s11 + $0xa8] ss:$72 sps:$4 sm:$0xff]   ;;  %v126_v63 = vld [vmem:[%s510_s11 + $0x24] sm:$0x1]  ;;  %v151_v10 = vld [vmem:[%s510_s11 + $0xac] sm:$0x1] }
  0x18   : > { %v249_v34 = vsel %vm243_vm0, %v247_v23, %v248_v26  ;;  %v319_v36 = vrot.slane %v197_v15, 1  ;;  %v198_v37 = vunpack.c.l.bf16 %v147_v24  ;;  %v318_v41 = vsel %vm243_vm0, %v316_v27, %v317_v28  ;;  %v551_v62 = vld [vmem:[%s510_s11 + $0x20] ss:$72 sps:$4 sm:$0xff]   ;;  %v152_v14 = vld [vmem:[%s510_s11 + $0xb0] ss:$72 sps:$4 sm:$0xff]  }
  0x19   : > { %v277_v40 = vmax.f32 %v220_v21, %v249_v34  ;;  %v199_v42 = vunpack.c.l.bf16 %v148_v29  ;;  %v221_v43 = vmax.f32 %v172_v31, %v188_v33  ;;  %v284_v44 = vmax.f32 %v276_v35, %v195_v13  ;;  %v565_v28 = vld [vmem:[%s510_s11 + $0x28] ss:$72 sps:$4 sm:$0xff]  }
  0x1a   : > { %v250_v45 = vrot.slane %v172_v31, 1  ;;  %v251_v46 = vrot.slane %v173_v32, 1  ;;  %v320_v47 = vrot.slane %v198_v37, 1  ;;  %v213_v50 = vunpack.c.h.bf16 %v148_v29 }
  0x1b   : > { %v285_v49 = vmax.f32 %v277_v40, %v197_v15  ;;  %v174_v52 = vunpack.c.l.bf16 %v540_v38  ;;  %v175_v53 = vunpack.c.l.bf16 %v124_v39  ;;  %v292_v54 = vmax.f32 %v284_v44, %v211_v16  ;;  %v153_v40 = vld [vmem:[%s510_s11 + $0xb4] sm:$0x1] }
  0x1c   : > { %v252_v55 = vsel %vm243_vm0, %v250_v45, %v251_v46  ;;  %v321_v56 = vsel %vm243_vm0, %v319_v36, %v320_v47  ;;  %v189_v57 = vunpack.c.h.bf16 %v540_v38  ;;  %v322_v60 = vrot.slane %v199_v42, 1  ;;  %v128_v36 = vld [vmem:[%s510_s11 + $0x2c] sm:$0x1] }
  0x1d   : > { %v293_v58 = vmax.f32 %v285_v49, %v212_v25  ;;  %v278_v59 = vmax.f32 %v221_v43, %v252_v55  ;;  %v200_v61 = vunpack.c.l.bf16 %v149_v48  ;;  %v348_v0 = vmax.f32 %v292_v54, %v318_v41  ;;  %v584_v54 = vld [vmem:[%s510_s11 + $0x30] ss:$72 sps:$4 sm:$0xff]  }
  0x1e   : > { %v201_v1 = vunpack.c.l.bf16 %v150_v51  ;;  %v222_v2 = vmax.f32 %v174_v52, %v189_v57  ;;  %v253_v4 = vrot.slane %v174_v52, 1  ;;  %v254_v7 = vrot.slane %v175_v53, 1 }
  0x1f   : > { %v286_v5 = vmax.f32 %v278_v59, %v199_v42  ;;  %v349_v6 = vmax.f32 %v293_v58, %v321_v56  ;;  %v323_v9 = vrot.slane %v200_v61, 1  ;;  %v356_v11 = vmax.f32 %v348_v0, %v520_v8 }
  0x20   : > { %v214_v13 = vunpack.c.h.bf16 %v150_v51  ;;  %v176_v15 = vunpack.c.l.bf16 %v551_v62  ;;  %v177_v16 = vunpack.c.l.bf16 %v126_v63  ;;  %v255_v19 = vsel %vm243_vm0, %v253_v4, %v254_v7  ;;  %v156_v4 = vld [vmem:[%s510_s11 + $0xc0] ss:$72 sps:$4 sm:$0xff]  }
  0x21   : > { %v294_v17 = vmax.f32 %v286_v5, %v213_v50  ;;  %v357_v18 = vmax.f32 %v349_v6, %v172_v31  ;;  %v324_v20 = vsel %vm243_vm0, %v322_v60, %v323_v9  ;;  %v364_v21 = vmax.f32 %v356_v11, %v187_v12  ;;  %v155_v60 = vld [vmem:[%s510_s11 + $0xbc] sm:$0x1] }
  0x22   : > { %v279_v22 = vmax.f32 %v222_v2, %v255_v19  ;;  %v190_v23 = vunpack.c.h.bf16 %v551_v62  ;;  %v202_v8 = vunpack.c.l.bf16 %v151_v10  ;;  %v325_v25 = vrot.slane %v201_v1, 1 }
  0x23   : > { %v365_v24 = vmax.f32 %v357_v18, %v188_v33  ;;  %v350_v26 = vmax.f32 %v294_v17, %v324_v20  ;;  %v203_v27 = vunpack.c.l.bf16 %v152_v14  ;;  %v378_v29 = vmax.f32 %v364_v21, %v249_v34  ;;  %v154_v34 = vld [vmem:[%s510_s11 + $0xb8] ss:$72 sps:$4 sm:$0xff]   ;;  %v132_v18 = vld [vmem:[%s510_s11 + $0x3c] sm:$0x1] }
  0x24   : > { %v287_v30 = vmax.f32 %v279_v22, %v201_v1  ;;  %v223_v31 = vmax.f32 %v176_v15, %v190_v23  ;;  %v256_v32 = vrot.slane %v176_v15, 1  ;;  %v257_v33 = vrot.slane %v177_v16, 1  ;;  %v131_v17 = vld [vmem:[%s510_s11 + $0x38] ss:$72 sps:$4 sm:$0xff]  }
  0x25   : > { %v379_v3 = vmax.f32 %v365_v24, %v252_v55  ;;  %v358_v12 = vmax.f32 %v350_v26, %v174_v52  ;;  %v326_v35 = vrot.slane %v202_v8, 1  ;;  %v386_v37 = vpack.c.bf16 %v378_v29, %v378_v29  ;;  %v130_v55 = vld [vmem:[%s510_s11 + $0x34] sm:$0x1]  ;;  %v157_v26 = vld [vmem:[%s510_s11 + $0xc4] sm:$0x1] }
  0x26   : > { %v295_v38 = vmax.f32 %v287_v30, %v214_v13  ;;  %v215_v39 = vunpack.c.h.bf16 %v152_v14  ;;  %v178_v41 = vunpack.c.l.bf16 %v565_v28  ;;  %v258_v44 = vsel %vm243_vm0, %v256_v32, %v257_v33 }
  0x27   : > { %v387_v42 = vpack.c.bf16 %v379_v3, %v379_v3  ;;  %v366_v43 = vmax.f32 %v358_v12, %v189_v57  ;;  %v327_v45 = vsel %vm243_vm0, %v325_v25, %v326_v35  ;;  %395 = vst.msk [vmem:[%s570_s15] sm:$0xf] %vm394_vm1, %v386_v37  ;;  %v280_v46 = vmax.f32 %v223_v31, %v258_v44 }
  0x28   : > { %v351_v47 = vmax.f32 %v295_v38, %v327_v45  ;;  %v179_v48 = vunpack.c.l.bf16 %v128_v36  ;;  %v191_v49 = vunpack.c.h.bf16 %v565_v28  ;;  %v328_v51 = vrot.slane %v203_v27, 1  ;;  %v159_v45 = vld [vmem:[%s510_s11 + $0xcc] sm:$0x1] }
  0x29   : > { %396 = vst.msk [vmem:[%s570_s15 + $0x4] sm:$0xf] %vm394_vm1, %v387_v42  ;;  %v380_v50 = vmax.f32 %v366_v43, %v255_v19  ;;  %v204_v52 = vunpack.c.l.bf16 %v153_v40  ;;  %v205_v53 = vunpack.c.l.bf16 %v154_v34  ;;  %v288_v56 = vmax.f32 %v280_v46, %v203_v27  ;;  %v158_v27 = vld [vmem:[%s510_s11 + $0xc8] ss:$72 sps:$4 sm:$0xff]  }
  0x2a   : > { %v359_v57 = vmax.f32 %v351_v47, %v176_v15  ;;  %v224_v58 = vmax.f32 %v178_v41, %v191_v49  ;;  %v259_v59 = vrot.slane %v178_v41, 1  ;;  %v216_v62 = vunpack.c.h.bf16 %v154_v34 }
  0x2b   : > { %v388_v61 = vpack.c.bf16 %v380_v50, %v380_v50  ;;  %v260_v63 = vrot.slane %v179_v48, 1  ;;  %v329_v0 = vrot.slane %v204_v52, 1  ;;  %v296_v1 = vmax.f32 %v288_v56, %v215_v39  ;;  %v134_v50 = vld [vmem:[%s510_s11 + $0x44] sm:$0x1] }
  0x2c   : > { %v367_v2 = vmax.f32 %v359_v57, %v190_v23  ;;  %v180_v5 = vunpack.c.l.bf16 %v584_v54  ;;  %v181_v6 = vunpack.c.l.bf16 %v130_v55  ;;  %v192_v10 = vunpack.c.h.bf16 %v584_v54 }
  0x2d   : > { %397 = vst.msk [vmem:[%s570_s15 + $0x8] sm:$0xf] %vm394_vm1, %v388_v61  ;;  %v261_v7 = vsel %vm243_vm0, %v259_v59, %v260_v63  ;;  %v330_v9 = vsel %vm243_vm0, %v328_v51, %v329_v0  ;;  %v206_v11 = vunpack.c.l.bf16 %v155_v60  ;;  %v331_v15 = vrot.slane %v205_v53, 1 }
  0x2e   : > { %v381_v13 = vmax.f32 %v367_v2, %v258_v44  ;;  %v281_v14 = vmax.f32 %v224_v58, %v261_v7  ;;  %v352_v16 = vmax.f32 %v296_v1, %v330_v9  ;;  %v207_v19 = vunpack.c.l.bf16 %v156_v4 }
  0x2f   : > { %v225_v20 = vmax.f32 %v180_v5, %v192_v10  ;;  %v262_v21 = vrot.slane %v180_v5, 1  ;;  %v263_v22 = vrot.slane %v181_v6, 1  ;;  %v332_v25 = vrot.slane %v206_v11, 1 }
  0x30   : > { %v389_v23 = vpack.c.bf16 %v381_v13, %v381_v13  ;;  %v289_v8 = vmax.f32 %v281_v14, %v205_v53  ;;  %v360_v24 = vmax.f32 %v352_v16, %v178_v41  ;;  %v217_v28 = vunpack.c.h.bf16 %v156_v4 }
  0x31   : > { %v264_v29 = vsel %vm243_vm0, %v262_v21, %v263_v22  ;;  %v182_v30 = vunpack.c.l.bf16 %v131_v17  ;;  %v183_v31 = vunpack.c.l.bf16 %v132_v18  ;;  %v333_v33 = vsel %vm243_vm0, %v331_v15, %v332_v25 }
  0x32   : > { %398 = vst.msk [vmem:[%s570_s15 + $0xc] sm:$0xf] %vm394_vm1, %v389_v23  ;;  %v297_v32 = vmax.f32 %v289_v8, %v216_v62  ;;  %v368_v3 = vmax.f32 %v360_v24, %v191_v49  ;;  %v282_v12 = vmax.f32 %v225_v20, %v264_v29  ;;  %v334_v35 = vrot.slane %v207_v19, 1  ;;  %v133_v49 = vld [vmem:[%s510_s11 + $0x40] ss:$72 sps:$4 sm:$0xff]  }
  0x33   : > { %v193_v36 = vunpack.c.h.bf16 %v131_v17  ;;  %v208_v37 = vunpack.c.l.bf16 %v157_v26  ;;  %v209_v38 = vunpack.c.l.bf16 %v158_v27  ;;  %v265_v41 = vrot.slane %v182_v30, 1 }
  0x34   : > { %v382_v39 = vmax.f32 %v368_v3, %v261_v7  ;;  %v290_v40 = vmax.f32 %v282_v12, %v207_v19  ;;  %v353_v34 = vmax.f32 %v297_v32, %v333_v33  ;;  %v266_v43 = vrot.slane %v183_v31, 1 }
  0x35   : > { %v226_v42 = vmax.f32 %v182_v30, %v193_v36  ;;  %v335_v44 = vrot.slane %v208_v37, 1  ;;  %v218_v51 = vunpack.c.h.bf16 %v158_v27  ;;  %v337_v54 = vrot.slane %v209_v38, 1 }
  0x36   : > { %v390_v46 = vpack.c.bf16 %v382_v39, %v382_v39  ;;  %v298_v47 = vmax.f32 %v290_v40, %v217_v28  ;;  %v361_v48 = vmax.f32 %v353_v34, %v180_v5  ;;  %v267_v52 = vsel %vm243_vm0, %v265_v41, %v266_v43 }
  0x37   : > { %v336_v53 = vsel %vm243_vm0, %v334_v35, %v335_v44  ;;  %v283_v56 = vmax.f32 %v226_v42, %v267_v52  ;;  %v210_v58 = vunpack.c.l.bf16 %v159_v45  ;;  %v184_v59 = vunpack.c.l.bf16 %v133_v49 }
  0x38   : > { %399 = vst.msk [vmem:[%s570_s15 + $0x10] sm:$0xf] %vm394_vm1, %v390_v46  ;;  %v369_v55 = vmax.f32 %v361_v48, %v192_v10  ;;  %v354_v57 = vmax.f32 %v298_v47, %v336_v53  ;;  %v185_v60 = vunpack.c.l.bf16 %v134_v50  ;;  %v194_v10 = vunpack.c.h.bf16 %v133_v49 }
  0x39   : > { %v291_v62 = vmax.f32 %v283_v56, %v209_v38  ;;  %v338_v0 = vrot.slane %v210_v58, 1  ;;  %v374_v6 = vrot.slane %v184_v59, 1 }
  0x3a   : > { %v383_v61 = vmax.f32 %v369_v55, %v264_v29  ;;  %v362_v63 = vmax.f32 %v354_v57, %v182_v30  ;;  %v375_v7 = vrot.slane %v185_v60, 1 }
  0x3b   : > { %v299_v2 = vmax.f32 %v291_v62, %v218_v51  ;;  %v339_v5 = vsel %vm243_vm0, %v337_v54, %v338_v0 }
  0x3c   : > { %v391_v1 = vpack.c.bf16 %v383_v61, %v383_v61  ;;  %v370_v4 = vmax.f32 %v362_v63, %v193_v36  ;;  %v376_v15 = vsel %vm243_vm0, %v374_v6, %v375_v7 }
  0x3d   : > { %v355_v11 = vmax.f32 %v299_v2, %v339_v5 }
  0x3e   : > { %400 = vst.msk [vmem:[%s570_s15 + $0x14] sm:$0xf] %vm394_vm1, %v391_v1  ;;  %v384_v9 = vmax.f32 %v370_v4, %v267_v52 }
  0x3f   : > { %v363_v14 = vmax.f32 %v355_v11, %v184_v59 }
  0x40   : > { %v392_v13 = vpack.c.bf16 %v384_v9, %v384_v9 }
  0x41   : > { %v371_v16 = vmax.f32 %v363_v14, %v194_v10 }
  0x42   : > { %401 = vst.msk [vmem:[%s570_s15 + $0x18] sm:$0xf] %vm394_vm1, %v392_v13 }
  0x43   : > { %v385_v17 = vmax.f32 %v371_v16, %v376_v15 }
  0x45   : > { %v393_v18 = vpack.c.bf16 %v385_v17, %v385_v17 }
  0x47   : > { %402 = vst.msk [vmem:[%s570_s15 + $0x1c] sm:$0xf] %vm394_vm1, %v393_v18 }
  0x48 PF: > { %s11_s6 = sadd.s32 1, %s484_s6  }
  0x49   : > { %p8_p4 = scmp.ge.s32.totalorder %s11_s6, 4  }
  0x4b   :  { %10 = sbr.rel (!%p8_p4) target bundleno = 1 (0x1), region = 54 }

// kernel: encoder_forward.6
= control target key start
LH: loop header
LB: loop body
LE: loop exit
PB: predicated region body
PF: predicated region fallthrough
CT: control target
= control target key end

     0   :  { %s1573_s12 = smov 0   ;;  %s1575_s13 = smov 0   ;;  %s1892_s0 = inlined_call_operand.vmem [shape: bf16[512,196], index: 0, kind: input, shape index: {}]   ;;  %s1893_s1 = inlined_call_operand.vmem [shape: bf16[196,64], index: 1, kind: input, shape index: {}]   ;;  %s1894_s2 = inlined_call_operand.vmem [shape: f32[1,64], index: 2, kind: input, shape index: {}]   ;;  %s1895_s3 = inlined_call_operand.vmem [shape: bf16[512,64], index: 3, kind: output, shape index: {}]  }
   0x1   :  { %s1577_s14 = smov 0  }
   0x2 LB: > { %s32_s15 = sadd.s32 1, %s1545_s13  ;;  %p1279_p0 = scmp.ge.s32.totalorder %s1549_s14, 1  ;;  %s1549_s14 = sphi %s1577_s14, %s13_s14   ;;  %s1545_s13 = sphi %s1575_s13, %s1897_s13   ;;  %s1541_s12 = sphi %s1573_s12, %s1896_s12  }
   0x3   : > { %p34_p1 = scmp.ge.s32.totalorder %s32_s15, 2  ;;  %p191_p2 = scmp.lt.s32.totalorder %s1549_s14, 3 }
   0x5   : > { %s1899_s15 = smov (%p34_p1, %s32_s15), 0  ;;  %p192_p3 = pnand %p1279_p0, %p191_p2 }
   0x6   : > { %v1466_v0 = vld [vmem:[%s1893_s1] sm:$0xff] (!%p192_p3)   ;;  %v1551_v1 = vmov (!%p192_p3), 0   ;;  %v1467_v2 = vld [vmem:[%s1893_s1 + $0x8] sm:$0xff] (!%p192_p3)   ;;  %s1280_s20 = sshll.u32 (!%p192_p3), %s1541_s12, 5  ;;  %v1468_v3 = vld [vmem:[%s1893_s1 + $0x10] sm:$0xff] (!%p192_p3)   ;;  %vm272_vm0 = vcmask (!%p192_p3), 523264  }
   0x7   : > { %195 = sbr.rel (%p192_p3) target bundleno = 349 (0x15d), region = 32  ;;  %666 = vmatprep.subr.bf16.mxu0 (!%p192_p3), %v1551_v1  ;;  %1414 = vmatprep.subr.bf16.mxu1 (!%p192_p3), %v1551_v1  ;;  %p236_p4 = scmp.lt.s32.totalorder (!%p192_p3), %s1280_s20, 63  ;;  %v1469_v4 = vld [vmem:[%s1893_s1 + $0x18] sm:$0xff] (!%p192_p3)   ;;  %v1552_v5 = vmov (!%p192_p3), 0.0   ;;  %vm613_vm1 = vcmask (!%p192_p3), 556032   ;;  %v1470_v7 = vld [vmem:[%s1893_s1 + $0x20] sm:$0xff] (!%p192_p3)  }
   0x8   : > { %667 = vmatpush1.bf16.msra.mxu0 (!%p192_p3), %v1466_v0  ;;  %1427 = vmatpush1.bf16.msra.mxu1 (!%p192_p3), %v1466_v0  ;;  %273 = vst.msk [vmem:[#allocation2] sm:$0xff] (!%p192_p3), %vm272_vm0, %v1552_v5  ;;  %274 = vst.msk [vmem:[#allocation2 + $0x8] sm:$0xff] (!%p192_p3), %vm272_vm0, %v1552_v5  ;;  %v1471_v9 = vld [vmem:[%s1893_s1 + $0x28] sm:$0xff] (!%p192_p3)   ;;  %v1472_v10 = vld [vmem:[%s1893_s1 + $0x30] sm:$0xff] (!%p192_p3)   ;;  %vm662_vm2 = vcmask (!%p192_p3), 1041408   ;;  %vm1126_vm3 = vcmask (!%p192_p3), 519168  }
   0x9   : > { %668 = vmatprep.subr.bf16.mxu0 (!%p192_p3), %v1551_v1  ;;  %1415 = vmatprep.subr.bf16.mxu1 (!%p192_p3), %v1551_v1  ;;  %275 = vst.msk [vmem:[#allocation2 + $0x10] sm:$0xff] (!%p192_p3), %vm272_vm0, %v1552_v5  ;;  %276 = vst.msk [vmem:[#allocation2 + $0x18] sm:$0xff] (!%p192_p3), %vm272_vm0, %v1552_v5  ;;  %v1473_v11 = vld [vmem:[%s1893_s1 + $0x38] sm:$0xff] (!%p192_p3)   ;;  %v1474_v12 = vld [vmem:[%s1893_s1 + $0x40] sm:$0xff] (!%p192_p3)  }
   0xa   : > { %277 = vst.msk [vmem:[#allocation2 + $0x20] sm:$0xff] (!%p192_p3), %vm272_vm0, %v1552_v5  ;;  %278 = vst.msk [vmem:[#allocation2 + $0x28] sm:$0xff] (!%p192_p3), %vm272_vm0, %v1552_v5  ;;  %v1475_v13 = vld [vmem:[%s1893_s1 + $0x48] sm:$0xff] (!%p192_p3)   ;;  %v1476_v14 = vld [vmem:[%s1893_s1 + $0x50] sm:$0xff] (!%p192_p3)  }
   0xb   : > { %279 = vst.msk [vmem:[#allocation2 + $0x30] sm:$0xff] (!%p192_p3), %vm272_vm0, %v1552_v5  ;;  %280 = vst.msk [vmem:[#allocation2 + $0x38] sm:$0xff] (!%p192_p3), %vm272_vm0, %v1552_v5  ;;  %v1477_v15 = vld [vmem:[%s1893_s1 + $0x58] sm:$0xff] (!%p192_p3)   ;;  %v1478_v16 = vld [vmem:[%s1893_s1 + $0x60] ss:$0 sps:$4 sm:$0x33] (!%p192_p3)  }
   0xc   : > { %669 = vmatpush1.bf16.msra.mxu0 (!%p192_p3), %v1467_v2  ;;  %1428 = vmatpush1.bf16.msra.mxu1 (!%p192_p3), %v1467_v2  ;;  %281 = vst.msk [vmem:[#allocation2 + $0x40] sm:$0xff] (!%p192_p3), %vm272_vm0, %v1552_v5  ;;  %282 = vst.msk [vmem:[#allocation2 + $0x48] sm:$0xff] (!%p192_p3), %vm272_vm0, %v1552_v5  ;;  %v664_v17 = vsel (!%p192_p3), %vm662_vm2, %v1478_v16, 0  ;;  %v1751_v2 = vld [vmem:[%s1894_s2] ss:$0 sm:$0xff] (!%p192_p3) }
   0xd   : > { %670 = vmatprep.subr.bf16.mxu0 (!%p192_p3), %v1551_v1  ;;  %1416 = vmatprep.subr.bf16.mxu1 (!%p192_p3), %v1551_v1  ;;  %283 = vst.msk [vmem:[#allocation2 + $0x50] sm:$0xff] (!%p192_p3), %vm272_vm0, %v1552_v5  ;;  %284 = vst.msk [vmem:[#allocation2 + $0x58] sm:$0xff] (!%p192_p3), %vm272_vm0, %v1552_v5 }
   0xe   : > { %s1901_s20 = smov (!%p236_p4, %s1280_s20), 63  ;;  %285 = vst.msk [vmem:[#allocation2 + $0x60] sm:$0xff] %vm272_vm0, %v1552_v5  ;;  %286 = vst.msk [vmem:[#allocation2 + $0x68] sm:$0xff] %vm272_vm0, %v1552_v5 }
   0xf   : > { %s1381_s23 = sshll.u32 %s1901_s20, 3  ;;  %287 = vst.msk [vmem:[#allocation2 + $0x70] sm:$0xff] %vm272_vm0, %v1552_v5  ;;  %288 = vst.msk [vmem:[#allocation2 + $0x78] sm:$0xff] %vm272_vm0, %v1552_v5  ;;  %v305_v48 = vld [vmem:[#allocation2] sm:$0xff]  ;;  %v306_v52 = vld [vmem:[#allocation2 + $0x8] sm:$0xff]  ;;  %s1284_s26 = sshll.u32 %s1901_s20, 2 }
  0x10   : > { %671 = vmatpush1.bf16.msra.mxu0 %v1468_v3  ;;  %1429 = vmatpush1.bf16.msra.mxu1 %v1468_v3  ;;  %s1615_s28 = scalar_lea.vmem %s1892_s0, %s1381_s23  ;;  %289 = vst.msk [vmem:[#allocation2 + $0x80] sm:$0xff] %vm272_vm0, %v1552_v5  ;;  %290 = vst.msk [vmem:[#allocation2 + $0x88] sm:$0xff] %vm272_vm0, %v1552_v5  ;;  %v307_v0 = vld [vmem:[#allocation2 + $0x10] sm:$0xff] }
  0x11   : > { %291 = vst.msk [vmem:[#allocation2 + $0x90] sm:$0xff] %vm272_vm0, %v1552_v5  ;;  %292 = vst.msk [vmem:[#allocation2 + $0x98] sm:$0xff] %vm272_vm0, %v1552_v5  ;;  %672 = vmatprep.subr.bf16.mxu0 %v1551_v1  ;;  %1417 = vmatprep.subr.bf16.mxu1 %v1551_v1  ;;  %v1481_v6 = vld [vmem:[%s1615_s28 + $0x4] ss:$8 sps:$4 sm:$0xff]   ;;  %v1479_v18 = vld [vmem:[%s1615_s28] ss:$8 sps:$4 sm:$0xff]  }
  0x12   : > { %293 = vst.msk [vmem:[#allocation2 + $0xa0] sm:$0xff] %vm272_vm0, %v1552_v5  ;;  %294 = vst.msk [vmem:[#allocation2 + $0xa8] sm:$0xff] %vm272_vm0, %v1552_v5  ;;  %v1484_v8 = vld [vmem:[%s1615_s28 + $0x84] ss:$8 sps:$4 sm:$0xff]   ;;  %1330 = vmatprep.mubr.msk.bf16.mxu0 %vm613_vm1, %v1481_v6  ;;  %v1482_v19 = vld [vmem:[%s1615_s28 + $0x80] ss:$8 sps:$4 sm:$0xff]  }
  0x13   : > { %295 = vst.msk [vmem:[#allocation2 + $0xb0] sm:$0xff] %vm272_vm0, %v1552_v5  ;;  %296 = vst.msk [vmem:[#allocation2 + $0xb8] sm:$0xff] %vm272_vm0, %v1552_v5  ;;  %1338 = vmatprep.mubr.msk.bf16.mxu1 %vm613_vm1, %v1484_v8  ;;  %v1485_v20 = vld [vmem:[%s1615_s28 + $0x14] ss:$8 sps:$4 sm:$0xff]   ;;  %v1489_v22 = vld [vmem:[%s1615_s28 + $0x10] ss:$8 sps:$4 sm:$0xff]  }
  0x14   : > { %297 = vst.msk [vmem:[#allocation2 + $0xc0] sm:$0xff] %vm272_vm0, %v1552_v5  ;;  %298 = vst.msk [vmem:[#allocation2 + $0xc8] sm:$0xff] %vm272_vm0, %v1552_v5  ;;  %673 = vmatpush1.bf16.msra.mxu0 %v1469_v4  ;;  %1430 = vmatpush1.bf16.msra.mxu1 %v1469_v4  ;;  %v1487_v21 = vld [vmem:[%s1615_s28 + $0x94] ss:$8 sps:$4 sm:$0xff]   ;;  %v1490_v23 = vld [vmem:[%s1615_s28 + $0x90] ss:$8 sps:$4 sm:$0xff]  }
  0x15   : > { %299 = vst.msk [vmem:[#allocation2 + $0xd0] sm:$0xff] %vm272_vm0, %v1552_v5  ;;  %300 = vst.msk [vmem:[#allocation2 + $0xd8] sm:$0xff] %vm272_vm0, %v1552_v5  ;;  %674 = vmatprep.subr.bf16.mxu0 %v1551_v1  ;;  %1418 = vmatprep.subr.bf16.mxu1 %v1551_v1  ;;  %v1491_v24 = vld [vmem:[%s1615_s28 + $0x24] ss:$8 sps:$4 sm:$0xff]   ;;  %v1495_v26 = vld [vmem:[%s1615_s28 + $0x20] ss:$8 sps:$4 sm:$0xff]  }
  0x16   : > { %301 = vst.msk [vmem:[#allocation2 + $0xe0] sm:$0xff] %vm272_vm0, %v1552_v5  ;;  %302 = vst.msk [vmem:[#allocation2 + $0xe8] sm:$0xff] %vm272_vm0, %v1552_v5  ;;  %v1493_v25 = vld [vmem:[%s1615_s28 + $0xa4] ss:$8 sps:$4 sm:$0xff]   ;;  %v1496_v27 = vld [vmem:[%s1615_s28 + $0xa0] ss:$8 sps:$4 sm:$0xff]  }
  0x17   : > { %303 = vst.msk [vmem:[#allocation2 + $0xf0] sm:$0xff] %vm272_vm0, %v1552_v5  ;;  %304 = vst.msk [vmem:[#allocation2 + $0xf8] sm:$0xff] %vm272_vm0, %v1552_v5  ;;  %v1497_v28 = vld [vmem:[%s1615_s28 + $0x34] ss:$8 sps:$4 sm:$0xff]   ;;  %v1501_v30 = vld [vmem:[%s1615_s28 + $0x30] ss:$8 sps:$4 sm:$0xff]  }
  0x18   : > { %675 = vmatpush1.bf16.msra.mxu0 %v1470_v7  ;;  %1431 = vmatpush1.bf16.msra.mxu1 %v1470_v7  ;;  %v1499_v29 = vld [vmem:[%s1615_s28 + $0xb4] ss:$8 sps:$4 sm:$0xff]   ;;  %v1502_v31 = vld [vmem:[%s1615_s28 + $0xb0] ss:$8 sps:$4 sm:$0xff]   ;;  %v1503_v32 = vld [vmem:[%s1615_s28 + $0x44] ss:$8 sps:$4 sm:$0xff]  }
  0x19   : > { %676 = vmatprep.subr.bf16.mxu0 %v1551_v1  ;;  %1419 = vmatprep.subr.bf16.mxu1 %v1551_v1  ;;  %v1505_v33 = vld [vmem:[%s1615_s28 + $0xc4] ss:$8 sps:$4 sm:$0xff]   ;;  %v1507_v34 = vld [vmem:[%s1615_s28 + $0x40] ss:$8 sps:$4 sm:$0xff]   ;;  %v1509_v36 = vld [vmem:[%s1615_s28 + $0x54] ss:$8 sps:$4 sm:$0xff]  }
  0x1a   : > { %v1508_v35 = vld [vmem:[%s1615_s28 + $0xc0] ss:$8 sps:$4 sm:$0xff]   ;;  %v1511_v37 = vld [vmem:[%s1615_s28 + $0xd4] ss:$8 sps:$4 sm:$0xff]   ;;  %v1513_v38 = vld [vmem:[%s1615_s28 + $0x50] ss:$8 sps:$4 sm:$0xff]  }
  0x1b   : > { %v1514_v39 = vld [vmem:[%s1615_s28 + $0xd0] ss:$8 sps:$4 sm:$0xff]   ;;  %v1515_v40 = vld [vmem:[%s1615_s28 + $0x64] ss:$8 sps:$4 sm:$0xff]   ;;  %v1519_v42 = vld [vmem:[%s1615_s28 + $0x60] ss:$8 sps:$4 sm:$0xff]  }
  0x1c   : > { %677 = vmatpush1.bf16.msra.mxu0 %v1471_v9  ;;  %1432 = vmatpush1.bf16.msra.mxu1 %v1471_v9  ;;  %v1517_v41 = vld [vmem:[%s1615_s28 + $0xe4] ss:$8 sps:$4 sm:$0xff]   ;;  %v1520_v43 = vld [vmem:[%s1615_s28 + $0xe0] ss:$8 sps:$4 sm:$0xff]   ;;  %v1521_v44 = vld [vmem:[%s1615_s28 + $0x74] ss:$8 sps:$4 sm:$0xff]  }
  0x1d   : > { %678 = vmatprep.subr.bf16.mxu0 %v1551_v1  ;;  %1420 = vmatprep.subr.bf16.mxu1 %v1551_v1  ;;  %v1523_v45 = vld [vmem:[%s1615_s28 + $0xf4] ss:$8 sps:$4 sm:$0xff]   ;;  %v1525_v46 = vld [vmem:[%s1615_s28 + $0x70] ss:$8 sps:$4 sm:$0xff]   ;;  %v321_v49 = vld [vmem:[#allocation2 + $0x80] sm:$0xff] }
  0x1e   : > { %v1526_v47 = vld [vmem:[%s1615_s28 + $0xf0] ss:$8 sps:$4 sm:$0xff]   ;;  %v322_v53 = vld [vmem:[#allocation2 + $0x88] sm:$0xff]  ;;  %s1765_s28 = scalar_lea.vmem %s1895_s3, %s1284_s26 }
  0x1f   : > { %v308_v5 = vld [vmem:[#allocation2 + $0x18] sm:$0xff] }
  0x20   : > { %679 = vmatpush1.bf16.msra.mxu0 %v1472_v10  ;;  %1433 = vmatpush1.bf16.msra.mxu1 %v1472_v10  ;;  %v324_v6 = vld [vmem:[#allocation2 + $0x98] sm:$0xff] }
  0x21   : > { %680 = vmatprep.subr.bf16.mxu0 %v1551_v1  ;;  %1421 = vmatprep.subr.bf16.mxu1 %v1551_v1 }
  0x24   : > { %681 = vmatpush1.bf16.msra.mxu0 %v1473_v11  ;;  %1434 = vmatpush1.bf16.msra.mxu1 %v1473_v11 }
  0x25   : > { %682 = vmatprep.subr.bf16.mxu0 %v1551_v1  ;;  %1422 = vmatprep.subr.bf16.mxu1 %v1551_v1 }
  0x28   : > { %683 = vmatpush1.bf16.msra.mxu0 %v1474_v12  ;;  %1435 = vmatpush1.bf16.msra.mxu1 %v1474_v12 }
  0x29   : > { %684 = vmatprep.subr.bf16.mxu0 %v1551_v1  ;;  %1423 = vmatprep.subr.bf16.mxu1 %v1551_v1 }
  0x2c   : > { %685 = vmatpush1.bf16.msra.mxu0 %v1475_v13  ;;  %1436 = vmatpush1.bf16.msra.mxu1 %v1475_v13 }
  0x2d   : > { %686 = vmatprep.subr.bf16.mxu0 %v1551_v1  ;;  %1424 = vmatprep.subr.bf16.mxu1 %v1551_v1 }
  0x30   : > { %687 = vmatpush1.bf16.msra.mxu0 %v1476_v14  ;;  %1437 = vmatpush1.bf16.msra.mxu1 %v1476_v14 }
  0x31   : > { %688 = vmatprep.subr.bf16.mxu0 %v1551_v1  ;;  %1425 = vmatprep.subr.bf16.mxu1 %v1551_v1 }
  0x34   : > { %689 = vmatpush1.bf16.msra.mxu0 %v1477_v15  ;;  %1438 = vmatpush1.bf16.msra.mxu1 %v1477_v15 }
  0x35   : > { %690 = vmatprep.subr.bf16.mxu0 %v1551_v1  ;;  %1426 = vmatprep.subr.bf16.mxu1 %v1551_v1  ;;  %v323_v1 = vld [vmem:[#allocation2 + $0x90] sm:$0xff] }
  0x38   : > { %691 = vmatpush1.bf16.msra.mxu0 %v664_v17  ;;  %1439 = vmatpush1.bf16.msra.mxu1 %v664_v17 }
  0x3b   : > { %699 = vmatmul.mubr.bf16.vlgmr.msra.gmra.mrb[0].mxu0 %v1479_v18  ;;  %763 = vmatmul.mubr.bf16.vlgmr.msra.gmra.mrb[0].mxu1 %v1482_v19 }
  0x3c   : > { %1331 = vmatprep.mubr.msk.bf16.mxu0 %vm613_vm1, %v1485_v20  ;;  %1339 = vmatprep.mubr.msk.bf16.mxu1 %vm613_vm1, %v1487_v21 }
  0x43   : > { %707 = vmatmul.mubr.bf16.gmra.mrb[4].mxu0 %v1489_v22  ;;  %771 = vmatmul.mubr.bf16.gmra.mrb[4].mxu1 %v1490_v23 }
  0x44   : > { %1332 = vmatprep.mubr.msk.bf16.mxu0 %vm613_vm1, %v1491_v24  ;;  %1340 = vmatprep.mubr.msk.bf16.mxu1 %vm613_vm1, %v1493_v25 }
  0x4b   : > { %715 = vmatmul.mubr.bf16.gmra.mrb[8].mxu0 %v1495_v26  ;;  %779 = vmatmul.mubr.bf16.gmra.mrb[8].mxu1 %v1496_v27  ;;  %v309_v27 = vld [vmem:[#allocation2 + $0x20] sm:$0xff] }
  0x4c   : > { %1333 = vmatprep.mubr.msk.bf16.mxu0 %vm613_vm1, %v1497_v28  ;;  %1341 = vmatprep.mubr.msk.bf16.mxu1 %vm613_vm1, %v1499_v29  ;;  %v325_v28 = vld [vmem:[#allocation2 + $0xa0] sm:$0xff] }
  0x53   : > { %723 = vmatmul.mubr.bf16.gmra.mrb[12].mxu0 %v1501_v30  ;;  %787 = vmatmul.mubr.bf16.gmra.mrb[12].mxu1 %v1502_v31 }
  0x54   : > { %1334 = vmatprep.mubr.msk.bf16.mxu0 %vm613_vm1, %v1503_v32  ;;  %1342 = vmatprep.mubr.msk.bf16.mxu1 %vm613_vm1, %v1505_v33 }
  0x5b   : > { %731 = vmatmul.mubr.bf16.gmra.mrb[16].mxu0 %v1507_v34  ;;  %795 = vmatmul.mubr.bf16.gmra.mrb[16].mxu1 %v1508_v35  ;;  %v310_v35 = vld [vmem:[#allocation2 + $0x28] sm:$0xff] }
  0x5c   : > { %1335 = vmatprep.mubr.msk.bf16.mxu0 %vm613_vm1, %v1509_v36  ;;  %1343 = vmatprep.mubr.msk.bf16.mxu1 %vm613_vm1, %v1511_v37  ;;  %v326_v36 = vld [vmem:[#allocation2 + $0xa8] sm:$0xff] }
  0x63   : > { %739 = vmatmul.mubr.bf16.gmra.mrb[20].mxu0 %v1513_v38  ;;  %803 = vmatmul.mubr.bf16.gmra.mrb[20].mxu1 %v1514_v39 }
  0x64   : > { %1336 = vmatprep.mubr.msk.bf16.mxu0 %vm613_vm1, %v1515_v40  ;;  %1344 = vmatprep.mubr.msk.bf16.mxu1 %vm613_vm1, %v1517_v41 }
  0x6b   : > { %747 = vmatmul.mubr.bf16.gmra.mrb[24].mxu0 %v1519_v42  ;;  %811 = vmatmul.mubr.bf16.gmra.mrb[24].mxu1 %v1520_v43 }
  0x6c   : > { %1337 = vmatprep.mubr.msk.bf16.mxu0 %vm613_vm1, %v1521_v44  ;;  %1345 = vmatprep.mubr.msk.bf16.mxu1 %vm613_vm1, %v1523_v45 }
  0x73   : > { %755 = vmatmul.mubr.bf16.gmra.mrb[28].mxu0 %v1525_v46  ;;  %819 = vmatmul.mubr.bf16.gmra.mrb[28].mxu1 %v1526_v47 }
 0x10e   : > { %v700_v50 = vpop.f32.mrb[0].mxu0  ;;  %v764_v51 = vpop.f32.mrb[0].mxu1 }
 0x10f   : > { %v827_v54 = vadd.f32 %v700_v50, %v305_v48  ;;  %v843_v55 = vadd.f32 %v764_v51, %v321_v49  ;;  %v702_v56 = vpop.f32.mrb[1].mxu0  ;;  %v766_v57 = vpop.f32.mrb[1].mxu1 }
 0x110   : > { %v703_v58 = vpop.f32.mrb[2].mxu0  ;;  %v767_v59 = vpop.f32.mrb[2].mxu1 }
 0x111   : > { %860 = vst.msk [vmem:[#allocation2] sm:$0xff] %vm272_vm0, %v827_v54  ;;  %876 = vst.msk [vmem:[#allocation2 + $0x80] sm:$0xff] %vm272_vm0, %v843_v55  ;;  %v828_v60 = vadd.f32 %v703_v58, %v306_v52  ;;  %v844_v61 = vadd.f32 %v767_v59, %v322_v53  ;;  %v705_v62 = vpop.f32.mrb[3].mxu0  ;;  %v769_v63 = vpop.f32.mrb[3].mxu1  ;;  %v311_v59 = vld [vmem:[#allocation2 + $0x30] sm:$0xff] }
 0x113   : > { %861 = vst.msk [vmem:[#allocation2 + $0x8] sm:$0xff] %vm272_vm0, %v828_v60  ;;  %877 = vst.msk [vmem:[#allocation2 + $0x88] sm:$0xff] %vm272_vm0, %v844_v61  ;;  %v327_v60 = vld [vmem:[#allocation2 + $0xb0] sm:$0xff] }
 0x116   : > { %v708_v3 = vpop.f32.mrb[4].mxu0  ;;  %v772_v4 = vpop.f32.mrb[4].mxu1 }
 0x117   : > { %v829_v7 = vadd.f32 %v708_v3, %v307_v0  ;;  %v845_v8 = vadd.f32 %v772_v4, %v323_v1  ;;  %v710_v9 = vpop.f32.mrb[5].mxu0  ;;  %v774_v10 = vpop.f32.mrb[5].mxu1  ;;  %v312_v4 = vld [vmem:[#allocation2 + $0x38] sm:$0xff] }
 0x118   : > { %v895_v11 = vld [vmem:[#allocation2] sm:$0xff]  ;;  %v711_v13 = vpop.f32.mrb[6].mxu0  ;;  %v775_v14 = vpop.f32.mrb[6].mxu1 }
 0x119   : > { %v911_v12 = vld [vmem:[#allocation2 + $0x80] sm:$0xff]  ;;  %v934_v15 = vadd.f32 %v1751_v2, %v895_v11  ;;  %862 = vst.msk [vmem:[#allocation2 + $0x10] sm:$0xff] %vm272_vm0, %v829_v7  ;;  %878 = vst.msk [vmem:[#allocation2 + $0x90] sm:$0xff] %vm272_vm0, %v845_v8  ;;  %v830_v17 = vadd.f32 %v711_v13, %v308_v5  ;;  %v846_v18 = vadd.f32 %v775_v14, %v324_v6  ;;  %v713_v19 = vpop.f32.mrb[7].mxu0  ;;  %v777_v20 = vpop.f32.mrb[7].mxu1  ;;  %v328_v5 = vld [vmem:[#allocation2 + $0xb8] sm:$0xff] }
 0x11a   : > { %v950_v16 = vadd.f32 %v1751_v2, %v911_v12  ;;  %v896_v21 = vld [vmem:[#allocation2 + $0x8] sm:$0xff] }
 0x11b   : > { %v912_v22 = vld [vmem:[#allocation2 + $0x88] sm:$0xff]  ;;  %v966_v23 = vmax.f32 %v934_v15, 0.0  ;;  %v935_v25 = vadd.f32 %v1751_v2, %v896_v21  ;;  %863 = vst.msk [vmem:[#allocation2 + $0x18] sm:$0xff] %vm272_vm0, %v830_v17  ;;  %879 = vst.msk [vmem:[#allocation2 + $0x98] sm:$0xff] %vm272_vm0, %v846_v18 }
 0x11c   : > { %v982_v24 = vmax.f32 %v950_v16, 0.0  ;;  %v951_v26 = vadd.f32 %v1751_v2, %v912_v22 }
 0x11d   : > { %v1382_v29 = vpack.c.bf16 %v966_v23, %v966_v23  ;;  %v967_v31 = vmax.f32 %v935_v25, 0.0 }
 0x11e   : > { %v1398_v30 = vpack.c.bf16 %v982_v24, %v982_v24  ;;  %v983_v32 = vmax.f32 %v951_v26, 0.0  ;;  %v716_v33 = vpop.f32.mrb[8].mxu0  ;;  %v780_v34 = vpop.f32.mrb[8].mxu1 }
 0x11f   : > { %1127 = vst.msk [vmem:[%s1765_s28] sm:$0xf] %vm1126_vm3, %v1382_v29  ;;  %v1383_v37 = vpack.c.bf16 %v967_v31, %v967_v31  ;;  %v831_v39 = vadd.f32 %v716_v33, %v309_v27  ;;  %v847_v40 = vadd.f32 %v780_v34, %v325_v28  ;;  %v718_v41 = vpop.f32.mrb[9].mxu0  ;;  %v782_v42 = vpop.f32.mrb[9].mxu1  ;;  %v313_v28 = vld [vmem:[#allocation2 + $0x40] sm:$0xff] }
 0x120   : > { %1143 = vst.msk [vmem:[%s1765_s28 + $0x40] sm:$0xf] %vm1126_vm3, %v1398_v30  ;;  %v1399_v38 = vpack.c.bf16 %v983_v32, %v983_v32  ;;  %v897_v43 = vld [vmem:[#allocation2 + $0x10] sm:$0xff]  ;;  %v719_v45 = vpop.f32.mrb[10].mxu0  ;;  %v783_v46 = vpop.f32.mrb[10].mxu1  ;;  %v329_v29 = vld [vmem:[#allocation2 + $0xc0] sm:$0xff] }
 0x121   : > { %v913_v44 = vld [vmem:[#allocation2 + $0x90] sm:$0xff]  ;;  %1128 = vst.msk [vmem:[%s1765_s28 + $0x4] sm:$0xf] %vm1126_vm3, %v1383_v37  ;;  %v936_v47 = vadd.f32 %v1751_v2, %v897_v43  ;;  %v832_v49 = vadd.f32 %v719_v45, %v310_v35  ;;  %v848_v50 = vadd.f32 %v783_v46, %v326_v36  ;;  %v721_v51 = vpop.f32.mrb[11].mxu0  ;;  %v785_v52 = vpop.f32.mrb[11].mxu1  ;;  %v314_v36 = vld [vmem:[#allocation2 + $0x48] sm:$0xff] }
 0x122   : > { %1144 = vst.msk [vmem:[%s1765_s28 + $0x44] sm:$0xf] %vm1126_vm3, %v1399_v38  ;;  %v952_v48 = vadd.f32 %v1751_v2, %v913_v44  ;;  %v898_v53 = vld [vmem:[#allocation2 + $0x18] sm:$0xff]  ;;  %v330_v37 = vld [vmem:[#allocation2 + $0xc8] sm:$0xff] }
 0x123   : > { %864 = vst.msk [vmem:[#allocation2 + $0x20] sm:$0xff] %vm272_vm0, %v831_v39  ;;  %880 = vst.msk [vmem:[#allocation2 + $0xa0] sm:$0xff] %vm272_vm0, %v847_v40  ;;  %v914_v54 = vld [vmem:[#allocation2 + $0x98] sm:$0xff]  ;;  %v968_v55 = vmax.f32 %v936_v47, 0.0  ;;  %v937_v57 = vadd.f32 %v1751_v2, %v898_v53 }
 0x124   : > { %v984_v56 = vmax.f32 %v952_v48, 0.0  ;;  %v953_v58 = vadd.f32 %v1751_v2, %v914_v54  ;;  %865 = vst.msk [vmem:[#allocation2 + $0x28] sm:$0xff] %vm272_vm0, %v832_v49  ;;  %881 = vst.msk [vmem:[#allocation2 + $0xa8] sm:$0xff] %vm272_vm0, %v848_v50 }
 0x125   : > { %v1384_v61 = vpack.c.bf16 %v968_v55, %v968_v55  ;;  %v969_v63 = vmax.f32 %v937_v57, 0.0 }
 0x126   : > { %v1400_v62 = vpack.c.bf16 %v984_v56, %v984_v56  ;;  %v985_v0 = vmax.f32 %v953_v58, 0.0  ;;  %v724_v1 = vpop.f32.mrb[12].mxu0  ;;  %v788_v3 = vpop.f32.mrb[12].mxu1 }
 0x127   : > { %1129 = vst.msk [vmem:[%s1765_s28 + $0x8] sm:$0xf] %vm1126_vm3, %v1384_v61  ;;  %v1385_v6 = vpack.c.bf16 %v969_v63, %v969_v63  ;;  %v833_v8 = vadd.f32 %v724_v1, %v311_v59  ;;  %v849_v9 = vadd.f32 %v788_v3, %v327_v60  ;;  %v726_v10 = vpop.f32.mrb[13].mxu0  ;;  %v790_v11 = vpop.f32.mrb[13].mxu1  ;;  %v315_v60 = vld [vmem:[#allocation2 + $0x50] sm:$0xff] }
 0x128   : > { %1145 = vst.msk [vmem:[%s1765_s28 + $0x48] sm:$0xf] %vm1126_vm3, %v1400_v62  ;;  %v1401_v7 = vpack.c.bf16 %v985_v0, %v985_v0  ;;  %v727_v14 = vpop.f32.mrb[14].mxu0  ;;  %v791_v15 = vpop.f32.mrb[14].mxu1  ;;  %v331_v61 = vld [vmem:[#allocation2 + $0xd0] sm:$0xff] }
 0x129   : > { %1130 = vst.msk [vmem:[%s1765_s28 + $0xc] sm:$0xf] %vm1126_vm3, %v1385_v6  ;;  %v834_v18 = vadd.f32 %v727_v14, %v312_v4  ;;  %v850_v19 = vadd.f32 %v791_v15, %v328_v5  ;;  %v729_v20 = vpop.f32.mrb[15].mxu0  ;;  %v793_v21 = vpop.f32.mrb[15].mxu1  ;;  %v316_v5 = vld [vmem:[#allocation2 + $0x58] sm:$0xff] }
 0x12a   : > { %v899_v12 = vld [vmem:[#allocation2 + $0x20] sm:$0xff]  ;;  %1146 = vst.msk [vmem:[%s1765_s28 + $0x4c] sm:$0xf] %vm1126_vm3, %v1401_v7  ;;  %v332_v6 = vld [vmem:[#allocation2 + $0xd8] sm:$0xff] }
 0x12b   : > { %v915_v13 = vld [vmem:[#allocation2 + $0xa0] sm:$0xff]  ;;  %v938_v16 = vadd.f32 %v1751_v2, %v899_v12  ;;  %866 = vst.msk [vmem:[#allocation2 + $0x30] sm:$0xff] %vm272_vm0, %v833_v8  ;;  %882 = vst.msk [vmem:[#allocation2 + $0xb0] sm:$0xff] %vm272_vm0, %v849_v9  ;;  %v900_v22 = vld [vmem:[#allocation2 + $0x28] sm:$0xff] }
 0x12c   : > { %v954_v17 = vadd.f32 %v1751_v2, %v915_v13  ;;  %v916_v23 = vld [vmem:[#allocation2 + $0xa8] sm:$0xff]  ;;  %v939_v26 = vadd.f32 %v1751_v2, %v900_v22  ;;  %867 = vst.msk [vmem:[#allocation2 + $0x38] sm:$0xff] %vm272_vm0, %v834_v18  ;;  %883 = vst.msk [vmem:[#allocation2 + $0xb8] sm:$0xff] %vm272_vm0, %v850_v19 }
 0x12d   : > { %v970_v24 = vmax.f32 %v938_v16, 0.0  ;;  %v955_v27 = vadd.f32 %v1751_v2, %v916_v23 }
 0x12e   : > { %v986_v25 = vmax.f32 %v954_v17, 0.0  ;;  %v971_v32 = vmax.f32 %v939_v26, 0.0  ;;  %v732_v34 = vpop.f32.mrb[16].mxu0  ;;  %v796_v35 = vpop.f32.mrb[16].mxu1 }
 0x12f   : > { %v1386_v30 = vpack.c.bf16 %v970_v24, %v970_v24  ;;  %v987_v33 = vmax.f32 %v955_v27, 0.0  ;;  %v835_v40 = vadd.f32 %v732_v34, %v313_v28  ;;  %v851_v41 = vadd.f32 %v796_v35, %v329_v29  ;;  %v734_v42 = vpop.f32.mrb[17].mxu0  ;;  %v798_v43 = vpop.f32.mrb[17].mxu1  ;;  %v317_v29 = vld [vmem:[#allocation2 + $0x60] sm:$0xff] }
 0x130   : > { %v1402_v31 = vpack.c.bf16 %v986_v25, %v986_v25  ;;  %v1387_v38 = vpack.c.bf16 %v971_v32, %v971_v32  ;;  %v735_v46 = vpop.f32.mrb[18].mxu0  ;;  %v799_v47 = vpop.f32.mrb[18].mxu1 }
 0x131   : > { %1131 = vst.msk [vmem:[%s1765_s28 + $0x10] sm:$0xf] %vm1126_vm3, %v1386_v30  ;;  %v1403_v39 = vpack.c.bf16 %v987_v33, %v987_v33  ;;  %v836_v50 = vadd.f32 %v735_v46, %v314_v36  ;;  %v852_v51 = vadd.f32 %v799_v47, %v330_v37  ;;  %v737_v52 = vpop.f32.mrb[19].mxu0  ;;  %v801_v53 = vpop.f32.mrb[19].mxu1  ;;  %v333_v30 = vld [vmem:[#allocation2 + $0xe0] sm:$0xff]  ;;  %v318_v37 = vld [vmem:[#allocation2 + $0x68] sm:$0xff] }
 0x132   : > { %1147 = vst.msk [vmem:[%s1765_s28 + $0x50] sm:$0xf] %vm1126_vm3, %v1402_v31  ;;  %v901_v44 = vld [vmem:[#allocation2 + $0x30] sm:$0xff]  ;;  %1132 = vst.msk [vmem:[%s1765_s28 + $0x14] sm:$0xf] %vm1126_vm3, %v1387_v38  ;;  %v334_v38 = vld [vmem:[#allocation2 + $0xe8] sm:$0xff] }
 0x133   : > { %v917_v45 = vld [vmem:[#allocation2 + $0xb0] sm:$0xff]  ;;  %1148 = vst.msk [vmem:[%s1765_s28 + $0x54] sm:$0xf] %vm1126_vm3, %v1403_v39  ;;  %v940_v48 = vadd.f32 %v1751_v2, %v901_v44  ;;  %v902_v54 = vld [vmem:[#allocation2 + $0x38] sm:$0xff] }
 0x134   : > { %v956_v49 = vadd.f32 %v1751_v2, %v917_v45  ;;  %868 = vst.msk [vmem:[#allocation2 + $0x40] sm:$0xff] %vm272_vm0, %v835_v40  ;;  %884 = vst.msk [vmem:[#allocation2 + $0xc0] sm:$0xff] %vm272_vm0, %v851_v41  ;;  %v918_v55 = vld [vmem:[#allocation2 + $0xb8] sm:$0xff]  ;;  %v941_v58 = vadd.f32 %v1751_v2, %v902_v54 }
 0x135   : > { %v972_v56 = vmax.f32 %v940_v48, 0.0  ;;  %v957_v59 = vadd.f32 %v1751_v2, %v918_v55  ;;  %869 = vst.msk [vmem:[#allocation2 + $0x48] sm:$0xff] %vm272_vm0, %v836_v50  ;;  %885 = vst.msk [vmem:[#allocation2 + $0xc8] sm:$0xff] %vm272_vm0, %v852_v51 }
 0x136   : > { %v988_v57 = vmax.f32 %v956_v49, 0.0  ;;  %v973_v0 = vmax.f32 %v941_v58, 0.0  ;;  %v740_v3 = vpop.f32.mrb[20].mxu0  ;;  %v804_v4 = vpop.f32.mrb[20].mxu1 }
 0x137   : > { %v1388_v62 = vpack.c.bf16 %v972_v56, %v972_v56  ;;  %v989_v1 = vmax.f32 %v957_v59, 0.0  ;;  %v837_v9 = vadd.f32 %v740_v3, %v315_v60  ;;  %v853_v10 = vadd.f32 %v804_v4, %v331_v61  ;;  %v742_v11 = vpop.f32.mrb[21].mxu0  ;;  %v806_v12 = vpop.f32.mrb[21].mxu1  ;;  %v319_v61 = vld [vmem:[#allocation2 + $0x70] sm:$0xff] }
 0x138   : > { %v1404_v63 = vpack.c.bf16 %v988_v57, %v988_v57  ;;  %v1389_v7 = vpack.c.bf16 %v973_v0, %v973_v0  ;;  %v743_v15 = vpop.f32.mrb[22].mxu0  ;;  %v807_v16 = vpop.f32.mrb[22].mxu1 }
 0x139   : > { %1133 = vst.msk [vmem:[%s1765_s28 + $0x18] sm:$0xf] %vm1126_vm3, %v1388_v62  ;;  %v1405_v8 = vpack.c.bf16 %v989_v1, %v989_v1  ;;  %v838_v19 = vadd.f32 %v743_v15, %v316_v5  ;;  %v854_v20 = vadd.f32 %v807_v16, %v332_v6  ;;  %v745_v21 = vpop.f32.mrb[23].mxu0  ;;  %v809_v22 = vpop.f32.mrb[23].mxu1  ;;  %v335_v62 = vld [vmem:[#allocation2 + $0xf0] sm:$0xff]  ;;  %v320_v6 = vld [vmem:[#allocation2 + $0x78] sm:$0xff] }
 0x13a   : > { %1149 = vst.msk [vmem:[%s1765_s28 + $0x58] sm:$0xf] %vm1126_vm3, %v1404_v63  ;;  %1134 = vst.msk [vmem:[%s1765_s28 + $0x1c] sm:$0xf] %vm1126_vm3, %v1389_v7  ;;  %v336_v7 = vld [vmem:[#allocation2 + $0xf8] sm:$0xff] }
 0x13b   : > { %v903_v13 = vld [vmem:[#allocation2 + $0x40] sm:$0xff]  ;;  %1150 = vst.msk [vmem:[%s1765_s28 + $0x5c] sm:$0xf] %vm1126_vm3, %v1405_v8 }
 0x13c   : > { %v919_v14 = vld [vmem:[#allocation2 + $0xc0] sm:$0xff]  ;;  %v942_v17 = vadd.f32 %v1751_v2, %v903_v13  ;;  %870 = vst.msk [vmem:[#allocation2 + $0x50] sm:$0xff] %vm272_vm0, %v837_v9  ;;  %886 = vst.msk [vmem:[#allocation2 + $0xd0] sm:$0xff] %vm272_vm0, %v853_v10  ;;  %v904_v23 = vld [vmem:[#allocation2 + $0x48] sm:$0xff] }
 0x13d   : > { %v958_v18 = vadd.f32 %v1751_v2, %v919_v14  ;;  %v920_v24 = vld [vmem:[#allocation2 + $0xc8] sm:$0xff]  ;;  %v943_v27 = vadd.f32 %v1751_v2, %v904_v23  ;;  %871 = vst.msk [vmem:[#allocation2 + $0x58] sm:$0xff] %vm272_vm0, %v838_v19  ;;  %887 = vst.msk [vmem:[#allocation2 + $0xd8] sm:$0xff] %vm272_vm0, %v854_v20 }
 0x13e   : > { %v974_v25 = vmax.f32 %v942_v17, 0.0  ;;  %v959_v28 = vadd.f32 %v1751_v2, %v920_v24  ;;  %v748_v35 = vpop.f32.mrb[24].mxu0  ;;  %v812_v36 = vpop.f32.mrb[24].mxu1 }
 0x13f   : > { %v990_v26 = vmax.f32 %v958_v18, 0.0  ;;  %v975_v33 = vmax.f32 %v943_v27, 0.0  ;;  %v839_v41 = vadd.f32 %v748_v35, %v317_v29  ;;  %v855_v42 = vadd.f32 %v812_v36, %v333_v30  ;;  %v750_v43 = vpop.f32.mrb[25].mxu0  ;;  %v814_v44 = vpop.f32.mrb[25].mxu1 }
 0x140   : > { %v1390_v31 = vpack.c.bf16 %v974_v25, %v974_v25  ;;  %v991_v34 = vmax.f32 %v959_v28, 0.0  ;;  %v751_v47 = vpop.f32.mrb[26].mxu0  ;;  %v815_v48 = vpop.f32.mrb[26].mxu1 }
 0x141   : > { %v1406_v32 = vpack.c.bf16 %v990_v26, %v990_v26  ;;  %v1391_v39 = vpack.c.bf16 %v975_v33, %v975_v33  ;;  %872 = vst.msk [vmem:[#allocation2 + $0x60] sm:$0xff] %vm272_vm0, %v839_v41  ;;  %888 = vst.msk [vmem:[#allocation2 + $0xe0] sm:$0xff] %vm272_vm0, %v855_v42  ;;  %v840_v51 = vadd.f32 %v751_v47, %v318_v37  ;;  %v753_v53 = vpop.f32.mrb[27].mxu0  ;;  %v817_v54 = vpop.f32.mrb[27].mxu1 }
 0x142   : > { %1135 = vst.msk [vmem:[%s1765_s28 + $0x20] sm:$0xf] %vm1126_vm3, %v1390_v31  ;;  %v1407_v40 = vpack.c.bf16 %v991_v34, %v991_v34  ;;  %v856_v52 = vadd.f32 %v815_v48, %v334_v38 }
 0x143   : > { %1151 = vst.msk [vmem:[%s1765_s28 + $0x60] sm:$0xf] %vm1126_vm3, %v1406_v32  ;;  %v905_v45 = vld [vmem:[#allocation2 + $0x50] sm:$0xff]  ;;  %1136 = vst.msk [vmem:[%s1765_s28 + $0x24] sm:$0xf] %vm1126_vm3, %v1391_v39 }
 0x144   : > { %v921_v46 = vld [vmem:[#allocation2 + $0xd0] sm:$0xff]  ;;  %1152 = vst.msk [vmem:[%s1765_s28 + $0x64] sm:$0xf] %vm1126_vm3, %v1407_v40  ;;  %v944_v49 = vadd.f32 %v1751_v2, %v905_v45  ;;  %v906_v55 = vld [vmem:[#allocation2 + $0x58] sm:$0xff] }
 0x145   : > { %v960_v50 = vadd.f32 %v1751_v2, %v921_v46  ;;  %v922_v56 = vld [vmem:[#allocation2 + $0xd8] sm:$0xff]  ;;  %v945_v59 = vadd.f32 %v1751_v2, %v906_v55  ;;  %873 = vst.msk [vmem:[#allocation2 + $0x68] sm:$0xff] %vm272_vm0, %v840_v51  ;;  %889 = vst.msk [vmem:[#allocation2 + $0xe8] sm:$0xff] %vm272_vm0, %v856_v52 }
 0x146   : > { %v976_v57 = vmax.f32 %v944_v49, 0.0  ;;  %v961_v60 = vadd.f32 %v1751_v2, %v922_v56  ;;  %v756_v4 = vpop.f32.mrb[28].mxu0  ;;  %v820_v5 = vpop.f32.mrb[28].mxu1 }
 0x147   : > { %v992_v58 = vmax.f32 %v960_v50, 0.0  ;;  %v977_v1 = vmax.f32 %v945_v59, 0.0  ;;  %v841_v10 = vadd.f32 %v756_v4, %v319_v61  ;;  %v857_v11 = vadd.f32 %v820_v5, %v335_v62  ;;  %v758_v12 = vpop.f32.mrb[29].mxu0  ;;  %v822_v13 = vpop.f32.mrb[29].mxu1 }
 0x148   : > { %v1392_v63 = vpack.c.bf16 %v976_v57, %v976_v57  ;;  %v993_v3 = vmax.f32 %v961_v60, 0.0  ;;  %v907_v14 = vld [vmem:[#allocation2 + $0x60] sm:$0xff]  ;;  %v759_v16 = vpop.f32.mrb[30].mxu0  ;;  %v823_v17 = vpop.f32.mrb[30].mxu1 }
 0x149   : > { %v1408_v0 = vpack.c.bf16 %v992_v58, %v992_v58  ;;  %v1393_v8 = vpack.c.bf16 %v977_v1, %v977_v1  ;;  %v923_v15 = vld [vmem:[#allocation2 + $0xe0] sm:$0xff]  ;;  %v946_v18 = vadd.f32 %v1751_v2, %v907_v14  ;;  %874 = vst.msk [vmem:[#allocation2 + $0x70] sm:$0xff] %vm272_vm0, %v841_v10  ;;  %890 = vst.msk [vmem:[#allocation2 + $0xf0] sm:$0xff] %vm272_vm0, %v857_v11  ;;  %v761_v22 = vpop.f32.mrb[31].mxu0  ;;  %v825_v23 = vpop.f32.mrb[31].mxu1 }
 0x14a   : > { %1137 = vst.msk [vmem:[%s1765_s28 + $0x28] sm:$0xf] %vm1126_vm3, %v1392_v63  ;;  %v1409_v9 = vpack.c.bf16 %v993_v3, %v993_v3  ;;  %v962_v19 = vadd.f32 %v1751_v2, %v923_v15  ;;  %v842_v20 = vadd.f32 %v759_v16, %v320_v6  ;;  %v858_v21 = vadd.f32 %v823_v17, %v336_v7 }
 0x14b   : > { %1153 = vst.msk [vmem:[%s1765_s28 + $0x68] sm:$0xf] %vm1126_vm3, %v1408_v0  ;;  %1138 = vst.msk [vmem:[%s1765_s28 + $0x2c] sm:$0xf] %vm1126_vm3, %v1393_v8  ;;  %v978_v26 = vmax.f32 %v946_v18, 0.0 }
 0x14c   : > { %1154 = vst.msk [vmem:[%s1765_s28 + $0x6c] sm:$0xf] %vm1126_vm3, %v1409_v9  ;;  %v908_v24 = vld [vmem:[#allocation2 + $0x68] sm:$0xff]  ;;  %v994_v27 = vmax.f32 %v962_v19, 0.0 }
 0x14d   : > { %v924_v25 = vld [vmem:[#allocation2 + $0xe8] sm:$0xff]  ;;  %v947_v28 = vadd.f32 %v1751_v2, %v908_v24  ;;  %875 = vst.msk [vmem:[#allocation2 + $0x78] sm:$0xff] %vm272_vm0, %v842_v20  ;;  %891 = vst.msk [vmem:[#allocation2 + $0xf8] sm:$0xff] %vm272_vm0, %v858_v21  ;;  %v1394_v30 = vpack.c.bf16 %v978_v26, %v978_v26 }
 0x14e   : > { %v963_v29 = vadd.f32 %v1751_v2, %v924_v25  ;;  %v1410_v31 = vpack.c.bf16 %v994_v27, %v994_v27 }
 0x14f   : > { %v979_v32 = vmax.f32 %v947_v28, 0.0  ;;  %1139 = vst.msk [vmem:[%s1765_s28 + $0x30] sm:$0xf] %vm1126_vm3, %v1394_v30 }
 0x150   : > { %v995_v33 = vmax.f32 %v963_v29, 0.0  ;;  %1155 = vst.msk [vmem:[%s1765_s28 + $0x70] sm:$0xf] %vm1126_vm3, %v1410_v31  ;;  %v909_v36 = vld [vmem:[#allocation2 + $0x70] sm:$0xff] }
 0x151   : > { %v1395_v34 = vpack.c.bf16 %v979_v32, %v979_v32  ;;  %v925_v37 = vld [vmem:[#allocation2 + $0xf0] sm:$0xff]  ;;  %v948_v38 = vadd.f32 %v1751_v2, %v909_v36 }
 0x152   : > { %v1411_v35 = vpack.c.bf16 %v995_v33, %v995_v33  ;;  %v964_v39 = vadd.f32 %v1751_v2, %v925_v37 }
 0x153   : > { %1140 = vst.msk [vmem:[%s1765_s28 + $0x34] sm:$0xf] %vm1126_vm3, %v1395_v34  ;;  %v980_v42 = vmax.f32 %v948_v38, 0.0 }
 0x154   : > { %1156 = vst.msk [vmem:[%s1765_s28 + $0x74] sm:$0xf] %vm1126_vm3, %v1411_v35  ;;  %v910_v40 = vld [vmem:[#allocation2 + $0x78] sm:$0xff]  ;;  %v996_v43 = vmax.f32 %v964_v39, 0.0 }
 0x155   : > { %v926_v41 = vld [vmem:[#allocation2 + $0xf8] sm:$0xff]  ;;  %v949_v44 = vadd.f32 %v1751_v2, %v910_v40  ;;  %v1396_v46 = vpack.c.bf16 %v980_v42, %v980_v42 }
 0x156   : > { %v965_v45 = vadd.f32 %v1751_v2, %v926_v41  ;;  %v1412_v47 = vpack.c.bf16 %v996_v43, %v996_v43 }
 0x157   : > { %v981_v48 = vmax.f32 %v949_v44, 0.0  ;;  %1141 = vst.msk [vmem:[%s1765_s28 + $0x38] sm:$0xf] %vm1126_vm3, %v1396_v46 }
 0x158   : > { %v997_v49 = vmax.f32 %v965_v45, 0.0  ;;  %1157 = vst.msk [vmem:[%s1765_s28 + $0x78] sm:$0xf] %vm1126_vm3, %v1412_v47 }
 0x159   : > { %v1397_v50 = vpack.c.bf16 %v981_v48, %v981_v48 }
 0x15a   : > { %v1413_v51 = vpack.c.bf16 %v997_v49, %v997_v49 }
 0x15b   : > { %1142 = vst.msk [vmem:[%s1765_s28 + $0x3c] sm:$0xf] %vm1126_vm3, %v1397_v50 }
 0x15c   : > { %1158 = vst.msk [vmem:[%s1765_s28 + $0x7c] sm:$0xf] %vm1126_vm3, %v1413_v51 }
 0x15d PF: > { %s13_s14 = sadd.s32 1, %s1549_s14   ;;  %s1896_s12 = smov %s1545_s13 }
 0x15e   : > { %p10_p5 = scmp.ge.s32.totalorder %s13_s14, 4   ;;  %s1897_s13 = smov %s1899_s15 }
 0x160   :  { %12 = sbr.rel (!%p10_p5) target bundleno = 2 (0x2), region = 76 }

// kernel: encoder_forward.8
= control target key start
LH: loop header
LB: loop body
LE: loop exit
PB: predicated region body
PF: predicated region fallthrough
CT: control target
= control target key end

     0   :  { %vm377_vm0 = vcmask 523264   ;;  %s944_s1 = inlined_call_operand.vmem [shape: bf16[576,128], index: 1, kind: input, shape index: {}]   ;;  %s945_s0 = inlined_call_operand.vmem [shape: bf16[32,576], index: 0, kind: input, shape index: {}]   ;;  %s946_s2 = inlined_call_operand.vmem [shape: f32[1,128], index: 2, kind: input, shape index: {}]   ;;  %s947_s3 = inlined_call_operand.vmem [shape: bf16[32,128], index: 3, kind: output, shape index: {}]  }
   0x1   :  { %v727_v0 = vld [vmem:[%s944_s1 + $0x40] sm:$0xff]   ;;  %v731_v4 = vld [vmem:[%s944_s1 + $0x48] sm:$0xff]   ;;  %v735_v8 = vld [vmem:[%s944_s1 + $0x50] sm:$0xff]  }
   0x2   :  { %v728_v1 = vld [vmem:[%s944_s1 + $0xc0] sm:$0xff]   ;;  %653 = vmatprep.subr.bf16.mxu0 %v727_v0  ;;  %v732_v5 = vld [vmem:[%s944_s1 + $0xc8] sm:$0xff]   ;;  %v736_v9 = vld [vmem:[%s944_s1 + $0xd0] sm:$0xff]  }
   0x3   :  { %v729_v2 = vld [vmem:[%s944_s1] sm:$0xff]   ;;  %681 = vmatprep.subr.bf16.mxu1 %v728_v1  ;;  %v733_v6 = vld [vmem:[%s944_s1 + $0x8] sm:$0xff]   ;;  %v737_v10 = vld [vmem:[%s944_s1 + $0x10] sm:$0xff]  }
   0x4   :  { %v730_v3 = vld [vmem:[%s944_s1 + $0x80] sm:$0xff]   ;;  %654 = vmatpush3.bf16.msra.mxu0 %v729_v2  ;;  %v734_v7 = vld [vmem:[%s944_s1 + $0x88] sm:$0xff]   ;;  %v738_v11 = vld [vmem:[%s944_s1 + $0x90] sm:$0xff]  }
   0x5   :  { %682 = vmatpush3.bf16.msra.mxu1 %v730_v3  ;;  %655 = vmatprep.subr.bf16.mxu0 %v731_v4  ;;  %v739_v12 = vld [vmem:[%s944_s1 + $0x58] sm:$0xff]   ;;  %v743_v16 = vld [vmem:[%s944_s1 + $0x60] sm:$0xff]   ;;  %v747_v20 = vld [vmem:[%s944_s1 + $0x68] sm:$0xff]  }
   0x6   :  { %683 = vmatprep.subr.bf16.mxu1 %v732_v5  ;;  %v740_v13 = vld [vmem:[%s944_s1 + $0xd8] sm:$0xff]   ;;  %v744_v17 = vld [vmem:[%s944_s1 + $0xe0] sm:$0xff]   ;;  %v748_v21 = vld [vmem:[%s944_s1 + $0xe8] sm:$0xff]  }
   0x7   :  { %v741_v14 = vld [vmem:[%s944_s1 + $0x18] sm:$0xff]   ;;  %v745_v18 = vld [vmem:[%s944_s1 + $0x20] sm:$0xff]   ;;  %v749_v22 = vld [vmem:[%s944_s1 + $0x28] sm:$0xff]  }
   0x8   :  { %656 = vmatpush3.bf16.msra.mxu0 %v733_v6  ;;  %v742_v15 = vld [vmem:[%s944_s1 + $0x98] sm:$0xff]   ;;  %v746_v19 = vld [vmem:[%s944_s1 + $0xa0] sm:$0xff]   ;;  %v750_v23 = vld [vmem:[%s944_s1 + $0xa8] sm:$0xff]  }
   0x9   :  { %684 = vmatpush3.bf16.msra.mxu1 %v734_v7  ;;  %657 = vmatprep.subr.bf16.mxu0 %v735_v8  ;;  %v751_v24 = vld [vmem:[%s944_s1 + $0x70] sm:$0xff]   ;;  %v755_v28 = vld [vmem:[%s944_s1 + $0x78] sm:$0xff]   ;;  %v764_v35 = vld [vmem:[%s945_s0 + $0xc] ss:$20 sps:$4 sm:$0xff]  }
   0xa   :  { %685 = vmatprep.subr.bf16.mxu1 %v736_v9  ;;  %v752_v25 = vld [vmem:[%s944_s1 + $0xf0] sm:$0xff]   ;;  %v756_v29 = vld [vmem:[%s944_s1 + $0xf8] sm:$0xff]   ;;  %v765_v36 = vld [vmem:[%s944_s1 + $0x100] sm:$0xff]   ;;  %465 = vmatprep.mubr.bf16.mxu1 %v764_v35 }
   0xb   :  { %v753_v26 = vld [vmem:[%s944_s1 + $0x30] sm:$0xff]   ;;  %v757_v30 = vld [vmem:[%s944_s1 + $0x38] sm:$0xff]   ;;  %v766_v37 = vld [vmem:[%s944_s1 + $0x108] sm:$0xff]  }
   0xc   :  { %658 = vmatpush3.bf16.msra.mxu0 %v737_v10  ;;  %v754_v27 = vld [vmem:[%s944_s1 + $0xb0] sm:$0xff]   ;;  %v758_v31 = vld [vmem:[%s944_s1 + $0xb8] sm:$0xff]   ;;  %v767_v38 = vld [vmem:[%s945_s0 + $0x2c] ss:$20 sps:$4 sm:$0xff]  }
   0xd   :  { %686 = vmatpush3.bf16.msra.mxu1 %v738_v11  ;;  %659 = vmatprep.subr.bf16.mxu0 %v739_v12  ;;  %v759_v32 = vld [vmem:[%s945_s0] ss:$20 sps:$4 sm:$0xff]   ;;  %v761_v33 = vld [vmem:[%s945_s0 + $0x4] ss:$20 sps:$4 sm:$0xff]   ;;  %v762_v34 = vld [vmem:[%s945_s0 + $0x8] ss:$20 sps:$4 sm:$0xff]  }
   0xe   :  { %687 = vmatprep.subr.bf16.mxu1 %v740_v13  ;;  %416 = vmatprep.mubr.bf16.mxu0 %v761_v33  ;;  %v769_v39 = vld [vmem:[%s945_s0 + $0x34] ss:$20 sps:$4 sm:$0xff]   ;;  %v772_v42 = vld [vmem:[%s945_s0 + $0x30] ss:$20 sps:$4 sm:$0xff]   ;;  %v774_v44 = vld [vmem:[%s944_s1 + $0x118] sm:$0xff]  }
   0xf   :  { %v771_v40 = vld [vmem:[%s945_s0 + $0x28] ss:$20 sps:$4 sm:$0xff]   ;;  %v773_v41 = vld [vmem:[%s944_s1 + $0x110] sm:$0xff]   ;;  %v776_v45 = vld [vmem:[%s945_s0 + $0x38] ss:$20 sps:$4 sm:$0xff]  }
  0x10   :  { %660 = vmatpush3.bf16.msra.mxu0 %v741_v14  ;;  %v775_v43 = vld [vmem:[%s945_s0 + $0x10] ss:$20 sps:$4 sm:$0xff]   ;;  %v633_v11 = vld [vmem:[%s946_s2] ss:$0 sm:$0xff] }
  0x11   :  { %688 = vmatpush3.bf16.msra.mxu1 %v742_v15  ;;  %661 = vmatprep.subr.bf16.mxu0 %v743_v16 }
  0x12   :  { %689 = vmatprep.subr.bf16.mxu1 %v744_v17 }
  0x14   :  { %662 = vmatpush3.bf16.msra.mxu0 %v745_v18 }
  0x15   :  { %690 = vmatpush3.bf16.msra.mxu1 %v746_v19  ;;  %663 = vmatprep.subr.bf16.mxu0 %v747_v20 }
  0x16   :  { %691 = vmatprep.subr.bf16.mxu1 %v748_v21 }
  0x18   :  { %664 = vmatpush3.bf16.msra.mxu0 %v749_v22 }
  0x19   :  { %692 = vmatpush3.bf16.msra.mxu1 %v750_v23  ;;  %665 = vmatprep.subr.bf16.mxu0 %v751_v24 }
  0x1a   :  { %693 = vmatprep.subr.bf16.mxu1 %v752_v25 }
  0x1c   :  { %666 = vmatpush3.bf16.msra.mxu0 %v753_v26 }
  0x1d   :  { %694 = vmatpush3.bf16.msra.mxu1 %v754_v27  ;;  %667 = vmatprep.subr.bf16.mxu0 %v755_v28 }
  0x1e   :  { %695 = vmatprep.subr.bf16.mxu1 %v756_v29 }
  0x20   :  { %668 = vmatpush3.bf16.msra.mxu0 %v757_v30 }
  0x21   :  { %696 = vmatpush3.bf16.msra.mxu1 %v758_v31  ;;  %715 = vmatprep.subr.bf16.mxu0 %v765_v36 }
  0x23   :  { %417 = vmatmul.mubr.bf16.vlgmr.msra.gmra.mrb[0].mxu0 %v759_v32 }
  0x24   :  { %466 = vmatmul.mubr.bf16.vlgmr.msra.gmra.mrb[0].mxu1 %v762_v34  ;;  %716 = vmatpush3.bf16.msra.mxu0 %v765_v36 }
  0x25   :  { %717 = vmatprep.subr.bf16.mxu0 %v766_v37  ;;  %424 = vmatprep.mubr.bf16.mxu0 %v767_v38 }
  0x26   :  { %473 = vmatprep.mubr.bf16.mxu1 %v769_v39 }
  0x28   :  { %718 = vmatpush3.bf16.msra.mxu0 %v766_v37 }
  0x29   :  { %719 = vmatprep.subr.bf16.mxu0 %v773_v41 }
  0x2b   :  { %425 = vmatmul.mubr.bf16.gmra.mrb[4].mxu0 %v771_v40 }
  0x2c   :  { %474 = vmatmul.mubr.bf16.gmra.mrb[4].mxu1 %v772_v42  ;;  %723 = vmatprep.mubr.msk.bf16.mxu0 %vm377_vm0, %v775_v43 }
  0x2d   :  { %720 = vmatpush3.bf16.msra.mxu0 %v773_v41 }
  0x2e   :  { %721 = vmatprep.subr.bf16.mxu0 %v774_v44 }
  0x31   :  { %722 = vmatpush3.bf16.msra.mxu0 %v774_v44 }
  0x34   :  { %724 = vmatmul.mubr.msk.bf16.vlgmr.msra.gmra.mrb[8].mxu0 %vm377_vm0, %v776_v45 }
  0xf6   :  { %v669_v46 = vpop.f32.mrb[0].mxu0 }
  0xf7   :  { %v697_v47 = vpop.f32.mrb[0].mxu1  ;;  %v670_v48 = vpop.f32.mrb[1].mxu0 }
  0xf8   :  { %v671_v49 = vadd.f32 %v670_v48, %v669_v46  ;;  %v698_v50 = vpop.f32.mrb[1].mxu1  ;;  %v672_v51 = vpop.f32.mrb[2].mxu0 }
  0xf9   :  { %v699_v52 = vadd.f32 %v698_v50, %v697_v47  ;;  %v700_v53 = vpop.f32.mrb[2].mxu1  ;;  %v673_v54 = vpop.f32.mrb[3].mxu0 }
  0xfa   :  { %v674_v55 = vadd.f32 %v673_v54, %v672_v51  ;;  %v701_v56 = vpop.f32.mrb[3].mxu1 }
  0xfb   :  { %v702_v57 = vadd.f32 %v701_v56, %v700_v53  ;;  %v468_v58 = vadd.f32 %v699_v52, %v671_v49 }
  0xfd   :  { %v471_v59 = vadd.f32 %v702_v57, %v674_v55 }
  0xfe   :  { %v675_v60 = vpop.f32.mrb[4].mxu0 }
  0xff   :  { %v703_v61 = vpop.f32.mrb[4].mxu1  ;;  %v676_v62 = vpop.f32.mrb[5].mxu0 }
 0x100   :  { %v677_v63 = vadd.f32 %v676_v62, %v675_v60  ;;  %v704_v0 = vpop.f32.mrb[5].mxu1  ;;  %v678_v1 = vpop.f32.mrb[6].mxu0 }
 0x101   :  { %v705_v2 = vadd.f32 %v704_v0, %v703_v61  ;;  %v706_v3 = vpop.f32.mrb[6].mxu1  ;;  %v679_v4 = vpop.f32.mrb[7].mxu0 }
 0x102   :  { %v680_v5 = vadd.f32 %v679_v4, %v678_v1  ;;  %v707_v6 = vpop.f32.mrb[7].mxu1 }
 0x103   :  { %v708_v7 = vadd.f32 %v707_v6, %v706_v3  ;;  %v476_v8 = vadd.f32 %v705_v2, %v677_v63 }
 0x105   :  { %v479_v9 = vadd.f32 %v708_v7, %v680_v5 }
 0x107   :  { %v725_v10 = vpop.f32.mrb[8].mxu0 }
 0x108   :  { %v525_v12 = vadd.f32 %v725_v10, %v476_v8  ;;  %v516_v13 = vpop.f32.mrb[9].mxu0 }
 0x109   :  { %v517_v14 = vadd.f32 %v516_v13, %v468_v58  ;;  %v726_v15 = vpop.f32.mrb[10].mxu0 }
 0x10a   :  { %v555_v16 = vadd.f32 %v633_v11, %v525_v12  ;;  %v528_v17 = vadd.f32 %v726_v15, %v479_v9  ;;  %v519_v18 = vpop.f32.mrb[11].mxu0 }
 0x10b   :  { %v553_v19 = vadd.f32 %v633_v11, %v517_v14  ;;  %v520_v20 = vadd.f32 %v519_v18, %v471_v59 }
 0x10c   :  { %v556_v21 = vadd.f32 %v633_v11, %v528_v17  ;;  %v559_v23 = vmax.f32 %v555_v16, 0.0 }
 0x10d   :  { %v554_v22 = vadd.f32 %v633_v11, %v520_v20  ;;  %v557_v25 = vmax.f32 %v553_v19, 0.0 }
 0x10e   :  { %v560_v24 = vmax.f32 %v556_v21, 0.0 }
 0x10f   :  { %v558_v26 = vmax.f32 %v554_v22, 0.0 }
 0x110   :  { %v650_v27 = vpack.c.bf16 %v560_v24, %v559_v23 }
 0x111   :  { %v645_v28 = vpack.c.bf16 %v558_v26, %v557_v25 }
 0x112   :  { %652 = vst [vmem:[%s947_s3 + $0x8] sm:$0xff] %v650_v27  }
 0x113   :  { %646 = vst [vmem:[%s947_s3] sm:$0xff] %v645_v28  }

// kernel: encoder_forward.9
= control target key start
LH: loop header
LB: loop body
LE: loop exit
PB: predicated region body
PF: predicated region fallthrough
CT: control target
= control target key end

     0   :  { %s2034_s1 = inlined_call_operand.vmem [shape: bf16[1152,256], index: 1, kind: input, shape index: {}]   ;;  %s2035_s0 = inlined_call_operand.vmem [shape: bf16[8,1152], index: 0, kind: input, shape index: {}]   ;;  %s2036_s2 = inlined_call_operand.vmem [shape: f32[1,256], index: 2, kind: input, shape index: {}]   ;;  %s2037_s3 = inlined_call_operand.vmem [shape: bf16[8,256], index: 3, kind: output, shape index: {}]  }
   0x1   :  { %v1323_v0 = vld [vmem:[%s2034_s1 + $0x4] ss:$8 sps:$4 sm:$0xff]   ;;  %v1327_v2 = vld [vmem:[%s2034_s1] ss:$8 sps:$4 sm:$0xff]   ;;  %v1329_v4 = vld [vmem:[%s2034_s1 + $0x14] ss:$8 sps:$4 sm:$0xff]  }
   0x2   :  { %v1325_v1 = vld [vmem:[%s2034_s1 + $0x104] ss:$8 sps:$4 sm:$0xff]   ;;  %924 = vmatprep.subr.bf16.mxu0 %v1323_v0  ;;  %v1328_v3 = vld [vmem:[%s2034_s1 + $0x100] ss:$8 sps:$4 sm:$0xff]   ;;  %v1331_v5 = vld [vmem:[%s2034_s1 + $0x114] ss:$8 sps:$4 sm:$0xff]  }
   0x3   :  { %965 = vmatprep.subr.bf16.mxu1 %v1325_v1  ;;  %925 = vmatpush1.bf16.msra.mxu0 %v1327_v2  ;;  %v1333_v6 = vld [vmem:[%s2034_s1 + $0x10] ss:$8 sps:$4 sm:$0xff]   ;;  %v1335_v8 = vld [vmem:[%s2034_s1 + $0x24] ss:$8 sps:$4 sm:$0xff]   ;;  %v1339_v10 = vld [vmem:[%s2034_s1 + $0x20] ss:$8 sps:$4 sm:$0xff]  }
   0x4   :  { %966 = vmatpush1.bf16.msra.mxu1 %v1328_v3  ;;  %926 = vmatprep.subr.bf16.mxu0 %v1329_v4  ;;  %v1334_v7 = vld [vmem:[%s2034_s1 + $0x110] ss:$8 sps:$4 sm:$0xff]   ;;  %v1337_v9 = vld [vmem:[%s2034_s1 + $0x124] ss:$8 sps:$4 sm:$0xff]   ;;  %v1340_v11 = vld [vmem:[%s2034_s1 + $0x120] ss:$8 sps:$4 sm:$0xff]  }
   0x5   :  { %967 = vmatprep.subr.bf16.mxu1 %v1331_v5  ;;  %v1341_v12 = vld [vmem:[%s2034_s1 + $0x34] ss:$8 sps:$4 sm:$0xff]   ;;  %v1345_v14 = vld [vmem:[%s2034_s1 + $0x30] ss:$8 sps:$4 sm:$0xff]   ;;  %v1347_v16 = vld [vmem:[%s2034_s1 + $0x44] ss:$8 sps:$4 sm:$0xff]  }
   0x6   :  { %v1343_v13 = vld [vmem:[%s2034_s1 + $0x134] ss:$8 sps:$4 sm:$0xff]   ;;  %v1346_v15 = vld [vmem:[%s2034_s1 + $0x130] ss:$8 sps:$4 sm:$0xff]   ;;  %v1349_v17 = vld [vmem:[%s2034_s1 + $0x144] ss:$8 sps:$4 sm:$0xff]  }
   0x7   :  { %927 = vmatpush1.bf16.msra.mxu0 %v1333_v6  ;;  %v1351_v18 = vld [vmem:[%s2034_s1 + $0x40] ss:$8 sps:$4 sm:$0xff]   ;;  %v1353_v20 = vld [vmem:[%s2034_s1 + $0x54] ss:$8 sps:$4 sm:$0xff]   ;;  %v1357_v22 = vld [vmem:[%s2034_s1 + $0x50] ss:$8 sps:$4 sm:$0xff]  }
   0x8   :  { %968 = vmatpush1.bf16.msra.mxu1 %v1334_v7  ;;  %928 = vmatprep.subr.bf16.mxu0 %v1335_v8  ;;  %v1352_v19 = vld [vmem:[%s2034_s1 + $0x140] ss:$8 sps:$4 sm:$0xff]   ;;  %v1355_v21 = vld [vmem:[%s2034_s1 + $0x154] ss:$8 sps:$4 sm:$0xff]   ;;  %v1358_v23 = vld [vmem:[%s2034_s1 + $0x150] ss:$8 sps:$4 sm:$0xff]  }
   0x9   :  { %969 = vmatprep.subr.bf16.mxu1 %v1337_v9  ;;  %v1359_v24 = vld [vmem:[%s2034_s1 + $0x64] ss:$8 sps:$4 sm:$0xff]   ;;  %v1363_v26 = vld [vmem:[%s2034_s1 + $0x60] ss:$8 sps:$4 sm:$0xff]   ;;  %v1365_v28 = vld [vmem:[%s2034_s1 + $0x74] ss:$8 sps:$4 sm:$0xff]  }
   0xa   :  { %v1361_v25 = vld [vmem:[%s2034_s1 + $0x164] ss:$8 sps:$4 sm:$0xff]   ;;  %v1364_v27 = vld [vmem:[%s2034_s1 + $0x160] ss:$8 sps:$4 sm:$0xff]   ;;  %v1367_v29 = vld [vmem:[%s2034_s1 + $0x174] ss:$8 sps:$4 sm:$0xff]  }
   0xb   :  { %929 = vmatpush1.bf16.msra.mxu0 %v1339_v10  ;;  %v1369_v30 = vld [vmem:[%s2034_s1 + $0x70] ss:$8 sps:$4 sm:$0xff]   ;;  %v1371_v32 = vld [vmem:[%s2034_s1 + $0x84] ss:$8 sps:$4 sm:$0xff]   ;;  %v1375_v34 = vld [vmem:[%s2034_s1 + $0x80] ss:$8 sps:$4 sm:$0xff]  }
   0xc   :  { %970 = vmatpush1.bf16.msra.mxu1 %v1340_v11  ;;  %930 = vmatprep.subr.bf16.mxu0 %v1341_v12  ;;  %v1370_v31 = vld [vmem:[%s2034_s1 + $0x170] ss:$8 sps:$4 sm:$0xff]   ;;  %v1373_v33 = vld [vmem:[%s2034_s1 + $0x184] ss:$8 sps:$4 sm:$0xff]   ;;  %v1376_v35 = vld [vmem:[%s2034_s1 + $0x180] ss:$8 sps:$4 sm:$0xff]  }
   0xd   :  { %971 = vmatprep.subr.bf16.mxu1 %v1343_v13  ;;  %v1377_v36 = vld [vmem:[%s2034_s1 + $0x94] ss:$8 sps:$4 sm:$0xff]   ;;  %v1381_v38 = vld [vmem:[%s2034_s1 + $0x90] ss:$8 sps:$4 sm:$0xff]   ;;  %v1383_v40 = vld [vmem:[%s2034_s1 + $0xa4] ss:$8 sps:$4 sm:$0xff]  }
   0xe   :  { %v1379_v37 = vld [vmem:[%s2034_s1 + $0x194] ss:$8 sps:$4 sm:$0xff]   ;;  %v1382_v39 = vld [vmem:[%s2034_s1 + $0x190] ss:$8 sps:$4 sm:$0xff]   ;;  %v1385_v41 = vld [vmem:[%s2034_s1 + $0x1a4] ss:$8 sps:$4 sm:$0xff]  }
   0xf   :  { %931 = vmatpush1.bf16.msra.mxu0 %v1345_v14  ;;  %v1387_v42 = vld [vmem:[%s2034_s1 + $0xa0] ss:$8 sps:$4 sm:$0xff]   ;;  %v1389_v44 = vld [vmem:[%s2034_s1 + $0xb4] ss:$8 sps:$4 sm:$0xff]   ;;  %v1393_v49 = vld [vmem:[%s2034_s1 + $0xb0] ss:$8 sps:$4 sm:$0xff]  }
  0x10   :  { %972 = vmatpush1.bf16.msra.mxu1 %v1346_v15  ;;  %932 = vmatprep.subr.bf16.mxu0 %v1347_v16  ;;  %v1388_v43 = vld [vmem:[%s2034_s1 + $0x1a0] ss:$8 sps:$4 sm:$0xff]   ;;  %v1391_v45 = vld [vmem:[%s2034_s1 + $0x1b4] ss:$8 sps:$4 sm:$0xff]   ;;  %v1394_v50 = vld [vmem:[%s2034_s1 + $0x1b0] ss:$8 sps:$4 sm:$0xff]  }
  0x11   :  { %973 = vmatprep.subr.bf16.mxu1 %v1349_v17  ;;  %v23_v46 = vld [vmem:[%s2035_s0] sm:$0xff]  ;;  %v24_v48 = vld [vmem:[%s2035_s0 + $0x8] sm:$0xff]  ;;  %v1401_v56 = vld [vmem:[%s2034_s1 + $0xd4] ss:$8 sps:$4 sm:$0xff]  }
  0x12   :  { %v1168_v47 = vcombine.high %v23_v46, %v23_v46  ;;  %v1170_v51 = vcombine.high %v24_v48, %v24_v48  ;;  %v1395_v52 = vld [vmem:[%s2034_s1 + $0xc4] ss:$8 sps:$4 sm:$0xff]   ;;  %v1399_v54 = vld [vmem:[%s2034_s1 + $0xc0] ss:$8 sps:$4 sm:$0xff]   ;;  %v1403_v57 = vld [vmem:[%s2034_s1 + $0x1d4] ss:$8 sps:$4 sm:$0xff]   ;;  %v1167_v6 = vcombine.low %v23_v46, %v23_v46  ;;  %v1169_v7 = vcombine.low %v24_v48, %v24_v48 }
  0x13   :  { %933 = vmatpush1.bf16.msra.mxu0 %v1351_v18  ;;  %v1397_v53 = vld [vmem:[%s2034_s1 + $0x1c4] ss:$8 sps:$4 sm:$0xff]   ;;  %v1400_v55 = vld [vmem:[%s2034_s1 + $0x1c0] ss:$8 sps:$4 sm:$0xff]   ;;  %v1405_v58 = vld [vmem:[%s2034_s1 + $0xd0] ss:$8 sps:$4 sm:$0xff]  }
  0x14   :  { %974 = vmatpush1.bf16.msra.mxu1 %v1352_v19  ;;  %934 = vmatprep.subr.bf16.mxu0 %v1353_v20  ;;  %v1406_v59 = vld [vmem:[%s2034_s1 + $0x1d0] ss:$8 sps:$4 sm:$0xff]   ;;  %v1407_v60 = vld [vmem:[%s2034_s1 + $0xe4] ss:$8 sps:$4 sm:$0xff]   ;;  %v1411_v62 = vld [vmem:[%s2034_s1 + $0xe0] ss:$8 sps:$4 sm:$0xff]  }
  0x15   :  { %975 = vmatprep.subr.bf16.mxu1 %v1355_v21  ;;  %956 = vmatprep.mubr.bf16.mxu0 %v1168_v47  ;;  %v1409_v61 = vld [vmem:[%s2034_s1 + $0x1e4] ss:$8 sps:$4 sm:$0xff]   ;;  %v1412_v63 = vld [vmem:[%s2034_s1 + $0x1e0] ss:$8 sps:$4 sm:$0xff]   ;;  %v1413_v0 = vld [vmem:[%s2034_s1 + $0xf4] ss:$8 sps:$4 sm:$0xff]  }
  0x16   :  { %997 = vmatprep.mubr.bf16.mxu1 %v1170_v51  ;;  %v1415_v1 = vld [vmem:[%s2034_s1 + $0x1f4] ss:$8 sps:$4 sm:$0xff]   ;;  %v1417_v2 = vld [vmem:[%s2034_s1 + $0xf0] ss:$8 sps:$4 sm:$0xff]   ;;  %v1425_v4 = vld [vmem:[%s2034_s1 + $0x204] ss:$8 sps:$4 sm:$0xff]  }
  0x17   :  { %935 = vmatpush1.bf16.msra.mxu0 %v1357_v22  ;;  %v1418_v3 = vld [vmem:[%s2034_s1 + $0x1f0] ss:$8 sps:$4 sm:$0xff]   ;;  %v1428_v5 = vld [vmem:[%s2034_s1 + $0x304] ss:$8 sps:$4 sm:$0xff]   ;;  %v1423_v8 = vld [vmem:[%s2034_s1 + $0x200] ss:$8 sps:$4 sm:$0xff]  }
  0x18   :  { %976 = vmatpush1.bf16.msra.mxu1 %v1358_v23  ;;  %936 = vmatprep.subr.bf16.mxu0 %v1359_v24  ;;  %v1426_v9 = vld [vmem:[%s2034_s1 + $0x300] ss:$8 sps:$4 sm:$0xff]   ;;  %v1431_v10 = vld [vmem:[%s2034_s1 + $0x214] ss:$8 sps:$4 sm:$0xff]   ;;  %v1429_v12 = vld [vmem:[%s2034_s1 + $0x210] ss:$8 sps:$4 sm:$0xff]  }
  0x19   :  { %977 = vmatprep.subr.bf16.mxu1 %v1361_v25  ;;  %v1434_v11 = vld [vmem:[%s2034_s1 + $0x314] ss:$8 sps:$4 sm:$0xff]   ;;  %v1432_v13 = vld [vmem:[%s2034_s1 + $0x310] ss:$8 sps:$4 sm:$0xff]   ;;  %v1437_v14 = vld [vmem:[%s2034_s1 + $0x224] ss:$8 sps:$4 sm:$0xff]  }
  0x1a   :  { %v1440_v15 = vld [vmem:[%s2034_s1 + $0x324] ss:$8 sps:$4 sm:$0xff]   ;;  %v1435_v16 = vld [vmem:[%s2034_s1 + $0x220] ss:$8 sps:$4 sm:$0xff]   ;;  %v1443_v18 = vld [vmem:[%s2034_s1 + $0x234] ss:$8 sps:$4 sm:$0xff]  }
  0x1b   :  { %937 = vmatpush1.bf16.msra.mxu0 %v1363_v26  ;;  %v1438_v17 = vld [vmem:[%s2034_s1 + $0x320] ss:$8 sps:$4 sm:$0xff]   ;;  %v1446_v19 = vld [vmem:[%s2034_s1 + $0x334] ss:$8 sps:$4 sm:$0xff]   ;;  %v1441_v20 = vld [vmem:[%s2034_s1 + $0x230] ss:$8 sps:$4 sm:$0xff]  }
  0x1c   :  { %978 = vmatpush1.bf16.msra.mxu1 %v1364_v27  ;;  %938 = vmatprep.subr.bf16.mxu0 %v1365_v28  ;;  %v1444_v21 = vld [vmem:[%s2034_s1 + $0x330] ss:$8 sps:$4 sm:$0xff]   ;;  %v1449_v22 = vld [vmem:[%s2034_s1 + $0x244] ss:$8 sps:$4 sm:$0xff]   ;;  %v1447_v24 = vld [vmem:[%s2034_s1 + $0x240] ss:$8 sps:$4 sm:$0xff]  }
  0x1d   :  { %979 = vmatprep.subr.bf16.mxu1 %v1367_v29  ;;  %v1452_v23 = vld [vmem:[%s2034_s1 + $0x344] ss:$8 sps:$4 sm:$0xff]   ;;  %v1450_v25 = vld [vmem:[%s2034_s1 + $0x340] ss:$8 sps:$4 sm:$0xff]   ;;  %v1455_v26 = vld [vmem:[%s2034_s1 + $0x254] ss:$8 sps:$4 sm:$0xff]  }
  0x1e   :  { %v1458_v27 = vld [vmem:[%s2034_s1 + $0x354] ss:$8 sps:$4 sm:$0xff]   ;;  %v1453_v28 = vld [vmem:[%s2034_s1 + $0x250] ss:$8 sps:$4 sm:$0xff]   ;;  %v1488_v51 = vld [vmem:[%s2034_s1 + $0x3a4] ss:$8 sps:$4 sm:$0xff]  }
  0x1f   :  { %939 = vmatpush1.bf16.msra.mxu0 %v1369_v30  ;;  %v1456_v29 = vld [vmem:[%s2034_s1 + $0x350] ss:$8 sps:$4 sm:$0xff]   ;;  %v1461_v30 = vld [vmem:[%s2034_s1 + $0x264] ss:$8 sps:$4 sm:$0xff]   ;;  %v1479_v46 = vld [vmem:[%s2034_s1 + $0x294] ss:$8 sps:$4 sm:$0xff]  }
  0x20   :  { %980 = vmatpush1.bf16.msra.mxu1 %v1370_v31  ;;  %940 = vmatprep.subr.bf16.mxu0 %v1371_v32  ;;  %v1464_v31 = vld [vmem:[%s2034_s1 + $0x364] ss:$8 sps:$4 sm:$0xff]   ;;  %v1848_v32 = vld [vmem:[%s2035_s0 + $0x10] sm:$0xff] }
  0x21   :  { %981 = vmatprep.subr.bf16.mxu1 %v1373_v33  ;;  %v1459_v33 = vld [vmem:[%s2034_s1 + $0x260] ss:$8 sps:$4 sm:$0xff]   ;;  %v1482_v47 = vld [vmem:[%s2034_s1 + $0x394] ss:$8 sps:$4 sm:$0xff]   ;;  %v1477_v48 = vld [vmem:[%s2034_s1 + $0x290] ss:$8 sps:$4 sm:$0xff]  }
  0x23   :  { %941 = vmatpush1.bf16.msra.mxu0 %v1375_v34  ;;  %v1462_v34 = vld [vmem:[%s2034_s1 + $0x360] ss:$8 sps:$4 sm:$0xff]  }
  0x24   :  { %982 = vmatpush1.bf16.msra.mxu1 %v1376_v35  ;;  %942 = vmatprep.subr.bf16.mxu0 %v1377_v36  ;;  %v1172_v35 = vcombine.high %v1848_v32, %v1848_v32  ;;  %v1861_v36 = vld [vmem:[%s2035_s0 + $0x18] sm:$0xff] }
  0x25   :  { %983 = vmatprep.subr.bf16.mxu1 %v1379_v37  ;;  %v1467_v37 = vld [vmem:[%s2034_s1 + $0x274] ss:$8 sps:$4 sm:$0xff]  }
  0x27   :  { %943 = vmatpush1.bf16.msra.mxu0 %v1381_v38  ;;  %v1174_v38 = vcombine.high %v1861_v36, %v1861_v36 }
  0x28   :  { %984 = vmatpush1.bf16.msra.mxu1 %v1382_v39  ;;  %944 = vmatprep.subr.bf16.mxu0 %v1383_v40  ;;  %v1470_v39 = vld [vmem:[%s2034_s1 + $0x374] ss:$8 sps:$4 sm:$0xff]   ;;  %v1465_v40 = vld [vmem:[%s2034_s1 + $0x270] ss:$8 sps:$4 sm:$0xff]  }
  0x29   :  { %985 = vmatprep.subr.bf16.mxu1 %v1385_v41  ;;  %v1468_v41 = vld [vmem:[%s2034_s1 + $0x370] ss:$8 sps:$4 sm:$0xff]  }
  0x2b   :  { %945 = vmatpush1.bf16.msra.mxu0 %v1387_v42  ;;  %v1473_v42 = vld [vmem:[%s2034_s1 + $0x284] ss:$8 sps:$4 sm:$0xff]  }
  0x2c   :  { %986 = vmatpush1.bf16.msra.mxu1 %v1388_v43  ;;  %946 = vmatprep.subr.bf16.mxu0 %v1389_v44  ;;  %v1476_v43 = vld [vmem:[%s2034_s1 + $0x384] ss:$8 sps:$4 sm:$0xff]   ;;  %v1471_v44 = vld [vmem:[%s2034_s1 + $0x280] ss:$8 sps:$4 sm:$0xff]  }
  0x2d   :  { %987 = vmatprep.subr.bf16.mxu1 %v1391_v45  ;;  %v1474_v45 = vld [vmem:[%s2034_s1 + $0x380] ss:$8 sps:$4 sm:$0xff]  }
  0x2f   :  { %947 = vmatpush1.bf16.msra.mxu0 %v1393_v49  ;;  %v1480_v49 = vld [vmem:[%s2034_s1 + $0x390] ss:$8 sps:$4 sm:$0xff]  }
  0x30   :  { %988 = vmatpush1.bf16.msra.mxu1 %v1394_v50  ;;  %948 = vmatprep.subr.bf16.mxu0 %v1395_v52  ;;  %v1485_v50 = vld [vmem:[%s2034_s1 + $0x2a4] ss:$8 sps:$4 sm:$0xff]   ;;  %v1483_v52 = vld [vmem:[%s2034_s1 + $0x2a0] ss:$8 sps:$4 sm:$0xff]  }
  0x31   :  { %989 = vmatprep.subr.bf16.mxu1 %v1397_v53  ;;  %v1486_v53 = vld [vmem:[%s2034_s1 + $0x3a0] ss:$8 sps:$4 sm:$0xff]  }
  0x33   :  { %949 = vmatpush1.bf16.msra.mxu0 %v1399_v54  ;;  %v1491_v54 = vld [vmem:[%s2034_s1 + $0x2b4] ss:$8 sps:$4 sm:$0xff]  }
  0x34   :  { %990 = vmatpush1.bf16.msra.mxu1 %v1400_v55  ;;  %950 = vmatprep.subr.bf16.mxu0 %v1401_v56  ;;  %v1494_v55 = vld [vmem:[%s2034_s1 + $0x3b4] ss:$8 sps:$4 sm:$0xff]   ;;  %v1489_v56 = vld [vmem:[%s2034_s1 + $0x2b0] ss:$8 sps:$4 sm:$0xff]  }
  0x35   :  { %991 = vmatprep.subr.bf16.mxu1 %v1403_v57  ;;  %v1492_v57 = vld [vmem:[%s2034_s1 + $0x3b0] ss:$8 sps:$4 sm:$0xff]  }
  0x37   :  { %951 = vmatpush1.bf16.msra.mxu0 %v1405_v58  ;;  %v1497_v58 = vld [vmem:[%s2034_s1 + $0x2c4] ss:$8 sps:$4 sm:$0xff]  }
  0x38   :  { %992 = vmatpush1.bf16.msra.mxu1 %v1406_v59  ;;  %952 = vmatprep.subr.bf16.mxu0 %v1407_v60  ;;  %v1500_v59 = vld [vmem:[%s2034_s1 + $0x3c4] ss:$8 sps:$4 sm:$0xff]   ;;  %v1495_v60 = vld [vmem:[%s2034_s1 + $0x2c0] ss:$8 sps:$4 sm:$0xff]  }
  0x39   :  { %993 = vmatprep.subr.bf16.mxu1 %v1409_v61  ;;  %v1498_v61 = vld [vmem:[%s2034_s1 + $0x3c0] ss:$8 sps:$4 sm:$0xff]  }
  0x3b   :  { %953 = vmatpush1.bf16.msra.mxu0 %v1411_v62  ;;  %v1503_v62 = vld [vmem:[%s2034_s1 + $0x2d4] ss:$8 sps:$4 sm:$0xff]  }
  0x3c   :  { %994 = vmatpush1.bf16.msra.mxu1 %v1412_v63  ;;  %954 = vmatprep.subr.bf16.mxu0 %v1413_v0  ;;  %v1506_v63 = vld [vmem:[%s2034_s1 + $0x3d4] ss:$8 sps:$4 sm:$0xff]   ;;  %v1501_v0 = vld [vmem:[%s2034_s1 + $0x2d0] ss:$8 sps:$4 sm:$0xff]  }
  0x3d   :  { %995 = vmatprep.subr.bf16.mxu1 %v1415_v1  ;;  %v1504_v1 = vld [vmem:[%s2034_s1 + $0x3d0] ss:$8 sps:$4 sm:$0xff]  }
  0x3f   :  { %955 = vmatpush1.bf16.msra.mxu0 %v1417_v2  ;;  %v1509_v2 = vld [vmem:[%s2034_s1 + $0x2e4] ss:$8 sps:$4 sm:$0xff]  }
  0x40   :  { %996 = vmatpush1.bf16.msra.mxu1 %v1418_v3  ;;  %1006 = vmatprep.subr.bf16.mxu0 %v1425_v4  ;;  %v1512_v3 = vld [vmem:[%s2034_s1 + $0x3e4] ss:$8 sps:$4 sm:$0xff]   ;;  %v1507_v4 = vld [vmem:[%s2034_s1 + $0x2e0] ss:$8 sps:$4 sm:$0xff]  }
  0x41   :  { %1047 = vmatprep.subr.bf16.mxu1 %v1428_v5  ;;  %v1510_v5 = vld [vmem:[%s2034_s1 + $0x3e0] ss:$8 sps:$4 sm:$0xff]  }
  0x42   :  { %957 = vmatmul.mubr.bf16.vlgmr.msra.gmra.mrb[0].mxu0 %v1167_v6  ;;  %v1515_v6 = vld [vmem:[%s2034_s1 + $0x2f4] ss:$8 sps:$4 sm:$0xff]  }
  0x43   :  { %998 = vmatmul.mubr.bf16.vlgmr.msra.gmra.mrb[0].mxu1 %v1169_v7  ;;  %1007 = vmatpush1.bf16.msra.mxu0 %v1423_v8  ;;  %v1518_v7 = vld [vmem:[%s2034_s1 + $0x3f4] ss:$8 sps:$4 sm:$0xff]   ;;  %v1513_v8 = vld [vmem:[%s2034_s1 + $0x2f0] ss:$8 sps:$4 sm:$0xff]  }
  0x44   :  { %1048 = vmatpush1.bf16.msra.mxu1 %v1426_v9  ;;  %1008 = vmatprep.subr.bf16.mxu0 %v1431_v10  ;;  %v1516_v9 = vld [vmem:[%s2034_s1 + $0x3f0] ss:$8 sps:$4 sm:$0xff]   ;;  %v1523_v10 = vld [vmem:[%s2034_s1 + $0x404] ss:$8 sps:$4 sm:$0xff]  }
  0x45   :  { %1049 = vmatprep.subr.bf16.mxu1 %v1434_v11  ;;  %1038 = vmatprep.mubr.bf16.mxu0 %v1172_v35  ;;  %v1171_v11 = vcombine.low %v1848_v32, %v1848_v32 }
  0x46   :  { %1079 = vmatprep.mubr.bf16.mxu1 %v1174_v38 }
  0x47   :  { %1009 = vmatpush1.bf16.msra.mxu0 %v1429_v12  ;;  %v1173_v12 = vcombine.low %v1861_v36, %v1861_v36 }
  0x48   :  { %1050 = vmatpush1.bf16.msra.mxu1 %v1432_v13  ;;  %1010 = vmatprep.subr.bf16.mxu0 %v1437_v14  ;;  %v1521_v13 = vld [vmem:[%s2034_s1 + $0x400] ss:$8 sps:$4 sm:$0xff]   ;;  %v1528_v14 = vld [vmem:[%s2034_s1 + $0x414] ss:$8 sps:$4 sm:$0xff]  }
  0x49   :  { %1051 = vmatprep.subr.bf16.mxu1 %v1440_v15  ;;  %v1526_v15 = vld [vmem:[%s2034_s1 + $0x410] ss:$8 sps:$4 sm:$0xff]  }
  0x4b   :  { %1011 = vmatpush1.bf16.msra.mxu0 %v1435_v16  ;;  %v1548_v16 = vmov 0  }
  0x4c   :  { %1052 = vmatpush1.bf16.msra.mxu1 %v1438_v17  ;;  %1012 = vmatprep.subr.bf16.mxu0 %v1443_v18  ;;  %v1531_v17 = vld [vmem:[%s2034_s1 + $0x424] ss:$8 sps:$4 sm:$0xff]   ;;  %v1529_v18 = vld [vmem:[%s2034_s1 + $0x420] ss:$8 sps:$4 sm:$0xff]  }
  0x4d   :  { %1053 = vmatprep.subr.bf16.mxu1 %v1446_v19  ;;  %v1534_v19 = vld [vmem:[%s2034_s1 + $0x434] ss:$8 sps:$4 sm:$0xff]  }
  0x4f   :  { %1013 = vmatpush1.bf16.msra.mxu0 %v1441_v20  ;;  %v1532_v20 = vld [vmem:[%s2034_s1 + $0x430] ss:$8 sps:$4 sm:$0xff]  }
  0x50   :  { %1054 = vmatpush1.bf16.msra.mxu1 %v1444_v21  ;;  %1014 = vmatprep.subr.bf16.mxu0 %v1449_v22  ;;  %v1537_v21 = vld [vmem:[%s2034_s1 + $0x444] ss:$8 sps:$4 sm:$0xff]   ;;  %v1535_v22 = vld [vmem:[%s2034_s1 + $0x440] ss:$8 sps:$4 sm:$0xff]  }
  0x51   :  { %1055 = vmatprep.subr.bf16.mxu1 %v1452_v23  ;;  %v1540_v23 = vld [vmem:[%s2034_s1 + $0x454] ss:$8 sps:$4 sm:$0xff]  }
  0x53   :  { %1015 = vmatpush1.bf16.msra.mxu0 %v1447_v24  ;;  %v1538_v24 = vld [vmem:[%s2034_s1 + $0x450] ss:$8 sps:$4 sm:$0xff]  }
  0x54   :  { %1056 = vmatpush1.bf16.msra.mxu1 %v1450_v25  ;;  %1016 = vmatprep.subr.bf16.mxu0 %v1455_v26  ;;  %v1543_v25 = vld [vmem:[%s2034_s1 + $0x464] ss:$8 sps:$4 sm:$0xff]   ;;  %v1541_v26 = vld [vmem:[%s2034_s1 + $0x460] ss:$8 sps:$4 sm:$0xff]  }
  0x55   :  { %1057 = vmatprep.subr.bf16.mxu1 %v1458_v27  ;;  %v1546_v27 = vld [vmem:[%s2034_s1 + $0x474] ss:$8 sps:$4 sm:$0xff]  }
  0x57   :  { %1017 = vmatpush1.bf16.msra.mxu0 %v1453_v28  ;;  %v1544_v28 = vld [vmem:[%s2034_s1 + $0x470] ss:$8 sps:$4 sm:$0xff]  }
  0x58   :  { %1058 = vmatpush1.bf16.msra.mxu1 %v1456_v29  ;;  %1018 = vmatprep.subr.bf16.mxu0 %v1461_v30  ;;  %v1547_v29 = vld [vmem:[%s2035_s0 + $0x20] ss:$0 sps:$4 sm:$0xff]  }
  0x59   :  { %1059 = vmatprep.subr.bf16.mxu1 %v1464_v31 }
  0x5b   :  { %1019 = vmatpush1.bf16.msra.mxu0 %v1459_v33 }
  0x5c   :  { %1060 = vmatpush1.bf16.msra.mxu1 %v1462_v34  ;;  %1020 = vmatprep.subr.bf16.mxu0 %v1467_v37 }
  0x5d   :  { %1061 = vmatprep.subr.bf16.mxu1 %v1470_v39 }
  0x5f   :  { %1021 = vmatpush1.bf16.msra.mxu0 %v1465_v40 }
  0x60   :  { %1062 = vmatpush1.bf16.msra.mxu1 %v1468_v41  ;;  %1022 = vmatprep.subr.bf16.mxu0 %v1473_v42 }
  0x61   :  { %1063 = vmatprep.subr.bf16.mxu1 %v1476_v43 }
  0x63   :  { %1023 = vmatpush1.bf16.msra.mxu0 %v1471_v44 }
  0x64   :  { %1064 = vmatpush1.bf16.msra.mxu1 %v1474_v45  ;;  %1024 = vmatprep.subr.bf16.mxu0 %v1479_v46 }
  0x65   :  { %1065 = vmatprep.subr.bf16.mxu1 %v1482_v47 }
  0x67   :  { %1025 = vmatpush1.bf16.msra.mxu0 %v1477_v48 }
  0x68   :  { %1066 = vmatpush1.bf16.msra.mxu1 %v1480_v49  ;;  %1026 = vmatprep.subr.bf16.mxu0 %v1485_v50 }
  0x69   :  { %1067 = vmatprep.subr.bf16.mxu1 %v1488_v51 }
  0x6b   :  { %1027 = vmatpush1.bf16.msra.mxu0 %v1483_v52  ;;  %v1140_v52 = vlaneseq }
  0x6c   :  { %1068 = vmatpush1.bf16.msra.mxu1 %v1486_v53  ;;  %1028 = vmatprep.subr.bf16.mxu0 %v1491_v54 }
  0x6d   :  { %1069 = vmatprep.subr.bf16.mxu1 %v1494_v55  ;;  %v1141_v53 = vshrl.u32 %v1140_v52, 7  ;;  %v1138_v55 = vld [vmem:[%s2036_s2] sm:$0x3] }
  0x6f   :  { %1029 = vmatpush1.bf16.msra.mxu0 %v1489_v56  ;;  %v1142_v54 = vsub.s32 0, %v1141_v53  ;;  %v1146_v56 = vsub.s32 1, %v1141_v53 }
  0x70   :  { %1070 = vmatpush1.bf16.msra.mxu1 %v1492_v57  ;;  %1030 = vmatprep.subr.bf16.mxu0 %v1497_v58 }
  0x71   :  { %1071 = vmatprep.subr.bf16.mxu1 %v1500_v59  ;;  %v1143_v57 = vrot.slane %v1138_v55, %v1142_v54  ;;  %v1147_v59 = vrot.slane %v1138_v55, %v1146_v56 }
  0x73   :  { %1031 = vmatpush1.bf16.msra.mxu0 %v1495_v60 }
  0x74   :  { %1072 = vmatpush1.bf16.msra.mxu1 %v1498_v61  ;;  %1032 = vmatprep.subr.bf16.mxu0 %v1503_v62 }
  0x75   :  { %1073 = vmatprep.subr.bf16.mxu1 %v1506_v63 }
  0x77   :  { %1033 = vmatpush1.bf16.msra.mxu0 %v1501_v0 }
  0x78   :  { %1074 = vmatpush1.bf16.msra.mxu1 %v1504_v1  ;;  %1034 = vmatprep.subr.bf16.mxu0 %v1509_v2 }
  0x79   :  { %1075 = vmatprep.subr.bf16.mxu1 %v1512_v3 }
  0x7b   :  { %1035 = vmatpush1.bf16.msra.mxu0 %v1507_v4 }
  0x7c   :  { %1076 = vmatpush1.bf16.msra.mxu1 %v1510_v5  ;;  %1036 = vmatprep.subr.bf16.mxu0 %v1515_v6 }
  0x7d   :  { %1077 = vmatprep.subr.bf16.mxu1 %v1518_v7 }
  0x7f   :  { %1037 = vmatpush1.bf16.msra.mxu0 %v1513_v8 }
  0x80   :  { %1078 = vmatpush1.bf16.msra.mxu1 %v1516_v9  ;;  %1088 = vmatprep.subr.bf16.mxu0 %v1523_v10 }
  0x82   :  { %1039 = vmatmul.mubr.bf16.vlgmr.msra.gmra.mrb[4].mxu0 %v1171_v11 }
  0x83   :  { %1080 = vmatmul.mubr.bf16.vlgmr.msra.gmra.mrb[4].mxu1 %v1173_v12  ;;  %1089 = vmatpush1.bf16.msra.mxu0 %v1521_v13 }
  0x84   :  { %1120 = vmatprep.mubr.bf16.mxu0 %v1548_v16  ;;  %1090 = vmatprep.subr.bf16.mxu0 %v1528_v14 }
  0x87   :  { %1091 = vmatpush1.bf16.msra.mxu0 %v1526_v15 }
  0x88   :  { %1092 = vmatprep.subr.bf16.mxu0 %v1531_v17 }
  0x8b   :  { %1093 = vmatpush1.bf16.msra.mxu0 %v1529_v18 }
  0x8c   :  { %1094 = vmatprep.subr.bf16.mxu0 %v1534_v19 }
  0x8f   :  { %1095 = vmatpush1.bf16.msra.mxu0 %v1532_v20 }
  0x90   :  { %1096 = vmatprep.subr.bf16.mxu0 %v1537_v21 }
  0x93   :  { %1097 = vmatpush1.bf16.msra.mxu0 %v1535_v22 }
  0x94   :  { %1098 = vmatprep.subr.bf16.mxu0 %v1540_v23 }
  0x97   :  { %1099 = vmatpush1.bf16.msra.mxu0 %v1538_v24 }
  0x98   :  { %1100 = vmatprep.subr.bf16.mxu0 %v1543_v25 }
  0x9b   :  { %1101 = vmatpush1.bf16.msra.mxu0 %v1541_v26 }
  0x9c   :  { %1102 = vmatprep.subr.bf16.mxu0 %v1546_v27 }
  0x9f   :  { %1103 = vmatpush1.bf16.msra.mxu0 %v1544_v28 }
  0xa2   :  { %1121 = vmatmul.mubr.bf16.vlgmr.msra.gmra.mrb[8].mxu0 %v1547_v29 }
 0x115   :  { %v958_v30 = vpop.f32.mrb[0].mxu0 }
 0x116   :  { %v999_v31 = vpop.f32.mrb[0].mxu1  ;;  %v960_v33 = vpop.f32.mrb[1].mxu0 }
 0x117   :  { %v1000_v32 = vadd.f32 %v999_v31, %v958_v30  ;;  %v1001_v34 = vpop.f32.mrb[1].mxu1  ;;  %v962_v36 = vpop.f32.mrb[2].mxu0 }
 0x118   :  { %v1002_v35 = vadd.f32 %v1001_v34, %v960_v33  ;;  %v1003_v37 = vpop.f32.mrb[2].mxu1  ;;  %v963_v38 = vpop.f32.mrb[3].mxu0 }
 0x119   :  { %v1004_v39 = vpop.f32.mrb[3].mxu1 }
 0x155   :  { %v1040_v40 = vpop.f32.mrb[4].mxu0 }
 0x156   :  { %v1081_v41 = vpop.f32.mrb[4].mxu1  ;;  %v1041_v42 = vadd.f32 %v1040_v40, %v1000_v32  ;;  %v1042_v43 = vpop.f32.mrb[5].mxu0 }
 0x157   :  { %v1083_v44 = vpop.f32.mrb[5].mxu1  ;;  %v1043_v45 = vadd.f32 %v1042_v43, %v1002_v35  ;;  %v1044_v46 = vpop.f32.mrb[6].mxu0 }
 0x158   :  { %v1085_v47 = vpop.f32.mrb[6].mxu1  ;;  %v1082_v48 = vadd.f32 %v1081_v41, %v1041_v42  ;;  %v1045_v49 = vpop.f32.mrb[7].mxu0 }
 0x159   :  { %v1086_v50 = vpop.f32.mrb[7].mxu1  ;;  %v1084_v51 = vadd.f32 %v1083_v44, %v1043_v45 }
 0x175   :  { %v1122_v58 = vpop.f32.mrb[8].mxu0 }
 0x176   :  { %v1123_v60 = vadd.f32 %v1122_v58, %v1082_v48  ;;  %v1124_v61 = vpop.f32.mrb[9].mxu0 }
 0x177   :  { %v1125_v62 = vadd.f32 %v1124_v61, %v1084_v51  ;;  %v1126_v63 = vpop.f32.mrb[10].mxu0 }
 0x178   :  { %v1150_v0 = vadd.f32 %v1143_v57, %v1123_v60  ;;  %v1127_v1 = vpop.f32.mrb[11].mxu0 }
 0x179   :  { %v1151_v2 = vadd.f32 %v1147_v59, %v1125_v62 }
 0x17a   :  { %v1152_v3 = vmax.f32 %v1150_v0, 0.0 }
 0x17b   :  { %v1153_v4 = vmax.f32 %v1151_v2, 0.0 }
 0x17d   :  { %v1321_v5 = vpack.c.bf16 %v1153_v4, %v1152_v3 }
 0x17f   :  { %1162 = vst [vmem:[%s2037_s3] sm:$0xff] %v1321_v5 }

// kernel: encoder_forward.10
= control target key start
LH: loop header
LB: loop body
LE: loop exit
PB: predicated region body
PF: predicated region fallthrough
CT: control target
= control target key end

     0   :  { %s2737_s12 = smov 0   ;;  %s2739_s13 = smov 0   ;;  %s3316_s0 = inlined_call_operand.vmem [shape: bf16[2,2304], index: 0, kind: input, shape index: {}]   ;;  %s3317_s1 = inlined_call_operand.vmem [shape: bf16[2304,512], index: 1, kind: input, shape index: {}]   ;;  %s3318_s2 = inlined_call_operand.vmem [shape: f32[1,512], index: 2, kind: input, shape index: {}]   ;;  %s3319_s3 = inlined_call_operand.vmem [shape: bf16[2,512], index: 3, kind: output, shape index: {}]  }
   0x1   :  { %s2741_s14 = smov 0   ;;  %s2743_s15 = smov 0  }
   0x2   :  { %s2745_s16 = smov 0   ;;  %s2747_s17 = smov 0  }
   0x3   :  { %s2749_s18 = smov 0  }
   0x4 LB: > { %s25_s19 = sadd.s32 1, %s2703_s16  ;;  %s28_s20 = sadd.s32 1, %s2707_s17  ;;  %s2711_s18 = sphi %s2749_s18, %s13_s18   ;;  %s2707_s17 = sphi %s2747_s17, %s3325_s17   ;;  %s2703_s16 = sphi %s2745_s16, %s3324_s16   ;;  %s2699_s15 = sphi %s2743_s15, %s3323_s15   ;;  %s2695_s14 = sphi %s2741_s14, %s3322_s14   ;;  %s2691_s13 = sphi %s2739_s13, %s3321_s13   ;;  %s2687_s12 = sphi %s2737_s12, %s3320_s12  }
   0x5   : > { %p26_p0 = scmp.ge.s32.totalorder %s25_s19, 2  ;;  %p76_p1 = scmp.ne.s32.totalorder %s2691_s13, %s2687_s12 }
   0x6   : > { %p77_p2 = scmp.eq.s32.totalorder %s2711_s18, 0  ;;  %s69_s24 = sadd.s32 1, %s2691_s13 }
   0x7   : > { %s3327_s19 = smov (%p26_p0, %s25_s19), 0  ;;  %s3329_s20 = smov (!%p26_p0, %s28_s20), %s2707_s17 }
   0x8   : > { %p78_p3 = por %p77_p2, %p76_p1  ;;  %p30_p4 = scmp.ge.s32.totalorder %s3329_s20, 2 }
   0x9   : > { %s64_s21 = ssub.s32 %s2703_s16, %s3327_s19  ;;  %p2205_p6 = scmp.ge.s32.totalorder %s2711_s18, 4 }
   0xa   : > { %s3331_s20 = smov (%p30_p4, %s3329_s20), 0 }
   0xb   : > { %s65_s22 = ssub.s32 %s2707_s17, %s3331_s20  ;;  %156 = sbr.rel (%p2205_p6) target bundleno = 98 (0x62), region = 16 }
   0xc   : > { %s66_s23 = sor.u32 %s65_s22, %s64_s21 }
   0xd   : > { %p67_p5 = scmp.eq.s32.totalorder %s66_s23, 0 }
   0xf   : > { %s2788_s25 = scalar_select %p67_p5, %s2691_s13, %s69_s24  }
  0x12   : > { %171 = sbr.rel (!%p78_p3) target bundleno = 98 (0x62), region = 24  ;;  %s173_s26 = sand.u32 (%p78_p3), 1, %s2691_s13  }
  0x13   : > { %s2378_s27 = smul.u32 (%p78_p3), 1152, %s173_s26  ;;  %s2206_s28 = sshll.u32 (%p78_p3), %s2707_s17, 1 }
  0x14   : > { %s2363_s29 = smul.u32 (%p78_p3), 576, %s2703_s16 }
  0x15   : > { %s2802_s8 = scalar_lea.vmem (%p78_p3), [#allocation3], %s2378_s27 }
  0x16   : > { %s179_s30 = sadd.s32 (%p78_p3), %s2363_s29, %s2206_s28 }
  0x17   : > { %s2208_s4 = sshll.u32 (%p78_p3), %s179_s30, 2 }
  0x18   : > { %s2797_s7 = scalar_lea.vmem (%p78_p3), %s3317_s1, %s2208_s4 }
  0x19   : > { %v495_v0 = vld [vmem:[%s2797_s7] sm:$0xff]  ;;  %v497_v1 = vld [vmem:[%s2797_s7 + $0x10] sm:$0xff] }
  0x1a   : > { %v499_v2 = vld [vmem:[%s2797_s7 + $0x20] sm:$0xff]  ;;  %496 = vst [vmem:[%s2802_s8] sm:$0xff] %v495_v0  ;;  %498 = vst [vmem:[%s2802_s8 + $0x8] sm:$0xff] %v497_v1  ;;  %v501_v3 = vld [vmem:[%s2797_s7 + $0x30] sm:$0xff] }
  0x1b   : > { %500 = vst [vmem:[%s2802_s8 + $0x10] sm:$0xff] %v499_v2  ;;  %v503_v4 = vld [vmem:[%s2797_s7 + $0x40] sm:$0xff]  ;;  %v505_v5 = vld [vmem:[%s2797_s7 + $0x50] sm:$0xff]  ;;  %502 = vst [vmem:[%s2802_s8 + $0x18] sm:$0xff] %v501_v3 }
  0x1c   : > { %504 = vst [vmem:[%s2802_s8 + $0x20] sm:$0xff] %v503_v4  ;;  %506 = vst [vmem:[%s2802_s8 + $0x28] sm:$0xff] %v505_v5  ;;  %v507_v6 = vld [vmem:[%s2797_s7 + $0x60] sm:$0xff]  ;;  %v509_v7 = vld [vmem:[%s2797_s7 + $0x70] sm:$0xff] }
  0x1d   : > { %v511_v8 = vld [vmem:[%s2797_s7 + $0x80] sm:$0xff]  ;;  %508 = vst [vmem:[%s2802_s8 + $0x30] sm:$0xff] %v507_v6  ;;  %510 = vst [vmem:[%s2802_s8 + $0x38] sm:$0xff] %v509_v7  ;;  %v513_v9 = vld [vmem:[%s2797_s7 + $0x90] sm:$0xff] }
  0x1e   : > { %512 = vst [vmem:[%s2802_s8 + $0x40] sm:$0xff] %v511_v8  ;;  %v515_v10 = vld [vmem:[%s2797_s7 + $0xa0] sm:$0xff]  ;;  %v517_v11 = vld [vmem:[%s2797_s7 + $0xb0] sm:$0xff]  ;;  %514 = vst [vmem:[%s2802_s8 + $0x48] sm:$0xff] %v513_v9 }
  0x1f   : > { %516 = vst [vmem:[%s2802_s8 + $0x50] sm:$0xff] %v515_v10  ;;  %518 = vst [vmem:[%s2802_s8 + $0x58] sm:$0xff] %v517_v11  ;;  %v519_v12 = vld [vmem:[%s2797_s7 + $0xc0] sm:$0xff]  ;;  %v521_v13 = vld [vmem:[%s2797_s7 + $0xd0] sm:$0xff] }
  0x20   : > { %v523_v14 = vld [vmem:[%s2797_s7 + $0xe0] sm:$0xff]  ;;  %520 = vst [vmem:[%s2802_s8 + $0x60] sm:$0xff] %v519_v12  ;;  %522 = vst [vmem:[%s2802_s8 + $0x68] sm:$0xff] %v521_v13  ;;  %v525_v15 = vld [vmem:[%s2797_s7 + $0xf0] sm:$0xff] }
  0x21   : > { %524 = vst [vmem:[%s2802_s8 + $0x70] sm:$0xff] %v523_v14  ;;  %v527_v16 = vld [vmem:[%s2797_s7 + $0x100] sm:$0xff]  ;;  %v529_v17 = vld [vmem:[%s2797_s7 + $0x110] sm:$0xff]  ;;  %526 = vst [vmem:[%s2802_s8 + $0x78] sm:$0xff] %v525_v15 }
  0x22   : > { %528 = vst [vmem:[%s2802_s8 + $0x80] sm:$0xff] %v527_v16  ;;  %530 = vst [vmem:[%s2802_s8 + $0x88] sm:$0xff] %v529_v17  ;;  %v531_v18 = vld [vmem:[%s2797_s7 + $0x120] sm:$0xff]  ;;  %v533_v19 = vld [vmem:[%s2797_s7 + $0x130] sm:$0xff] }
  0x23   : > { %v535_v20 = vld [vmem:[%s2797_s7 + $0x140] sm:$0xff]  ;;  %532 = vst [vmem:[%s2802_s8 + $0x90] sm:$0xff] %v531_v18  ;;  %534 = vst [vmem:[%s2802_s8 + $0x98] sm:$0xff] %v533_v19  ;;  %v537_v21 = vld [vmem:[%s2797_s7 + $0x150] sm:$0xff] }
  0x24   : > { %536 = vst [vmem:[%s2802_s8 + $0xa0] sm:$0xff] %v535_v20  ;;  %v539_v22 = vld [vmem:[%s2797_s7 + $0x160] sm:$0xff]  ;;  %v541_v23 = vld [vmem:[%s2797_s7 + $0x170] sm:$0xff]  ;;  %538 = vst [vmem:[%s2802_s8 + $0xa8] sm:$0xff] %v537_v21 }
  0x25   : > { %540 = vst [vmem:[%s2802_s8 + $0xb0] sm:$0xff] %v539_v22  ;;  %542 = vst [vmem:[%s2802_s8 + $0xb8] sm:$0xff] %v541_v23  ;;  %v543_v24 = vld [vmem:[%s2797_s7 + $0x180] sm:$0xff]  ;;  %v545_v25 = vld [vmem:[%s2797_s7 + $0x190] sm:$0xff] }
  0x26   : > { %v547_v26 = vld [vmem:[%s2797_s7 + $0x1a0] sm:$0xff]  ;;  %544 = vst [vmem:[%s2802_s8 + $0xc0] sm:$0xff] %v543_v24  ;;  %546 = vst [vmem:[%s2802_s8 + $0xc8] sm:$0xff] %v545_v25  ;;  %v549_v27 = vld [vmem:[%s2797_s7 + $0x1b0] sm:$0xff] }
  0x27   : > { %548 = vst [vmem:[%s2802_s8 + $0xd0] sm:$0xff] %v547_v26  ;;  %v551_v28 = vld [vmem:[%s2797_s7 + $0x1c0] sm:$0xff]  ;;  %v553_v29 = vld [vmem:[%s2797_s7 + $0x1d0] sm:$0xff]  ;;  %550 = vst [vmem:[%s2802_s8 + $0xd8] sm:$0xff] %v549_v27 }
  0x28   : > { %552 = vst [vmem:[%s2802_s8 + $0xe0] sm:$0xff] %v551_v28  ;;  %554 = vst [vmem:[%s2802_s8 + $0xe8] sm:$0xff] %v553_v29  ;;  %v555_v30 = vld [vmem:[%s2797_s7 + $0x1e0] sm:$0xff]  ;;  %v557_v31 = vld [vmem:[%s2797_s7 + $0x1f0] sm:$0xff] }
  0x29   : > { %v559_v32 = vld [vmem:[%s2797_s7 + $0x200] sm:$0xff]  ;;  %556 = vst [vmem:[%s2802_s8 + $0xf0] sm:$0xff] %v555_v30  ;;  %558 = vst [vmem:[%s2802_s8 + $0xf8] sm:$0xff] %v557_v31  ;;  %v561_v33 = vld [vmem:[%s2797_s7 + $0x210] sm:$0xff] }
  0x2a   : > { %560 = vst [vmem:[%s2802_s8 + $0x100] sm:$0xff] %v559_v32  ;;  %v563_v34 = vld [vmem:[%s2797_s7 + $0x220] sm:$0xff]  ;;  %v565_v35 = vld [vmem:[%s2797_s7 + $0x230] sm:$0xff]  ;;  %562 = vst [vmem:[%s2802_s8 + $0x108] sm:$0xff] %v561_v33 }
  0x2b   : > { %564 = vst [vmem:[%s2802_s8 + $0x110] sm:$0xff] %v563_v34  ;;  %566 = vst [vmem:[%s2802_s8 + $0x118] sm:$0xff] %v565_v35  ;;  %v567_v36 = vld [vmem:[%s2797_s7 + $0x240] sm:$0xff]  ;;  %v569_v37 = vld [vmem:[%s2797_s7 + $0x250] sm:$0xff] }
  0x2c   : > { %v571_v38 = vld [vmem:[%s2797_s7 + $0x260] sm:$0xff]  ;;  %568 = vst [vmem:[%s2802_s8 + $0x120] sm:$0xff] %v567_v36  ;;  %570 = vst [vmem:[%s2802_s8 + $0x128] sm:$0xff] %v569_v37  ;;  %v573_v39 = vld [vmem:[%s2797_s7 + $0x270] sm:$0xff] }
  0x2d   : > { %572 = vst [vmem:[%s2802_s8 + $0x130] sm:$0xff] %v571_v38  ;;  %v575_v40 = vld [vmem:[%s2797_s7 + $0x280] sm:$0xff]  ;;  %v577_v41 = vld [vmem:[%s2797_s7 + $0x290] sm:$0xff]  ;;  %574 = vst [vmem:[%s2802_s8 + $0x138] sm:$0xff] %v573_v39 }
  0x2e   : > { %576 = vst [vmem:[%s2802_s8 + $0x140] sm:$0xff] %v575_v40  ;;  %578 = vst [vmem:[%s2802_s8 + $0x148] sm:$0xff] %v577_v41  ;;  %v579_v42 = vld [vmem:[%s2797_s7 + $0x2a0] sm:$0xff]  ;;  %v581_v43 = vld [vmem:[%s2797_s7 + $0x2b0] sm:$0xff] }
  0x2f   : > { %v583_v44 = vld [vmem:[%s2797_s7 + $0x2c0] sm:$0xff]  ;;  %580 = vst [vmem:[%s2802_s8 + $0x150] sm:$0xff] %v579_v42  ;;  %582 = vst [vmem:[%s2802_s8 + $0x158] sm:$0xff] %v581_v43  ;;  %v585_v45 = vld [vmem:[%s2797_s7 + $0x2d0] sm:$0xff] }
  0x30   : > { %584 = vst [vmem:[%s2802_s8 + $0x160] sm:$0xff] %v583_v44  ;;  %v587_v46 = vld [vmem:[%s2797_s7 + $0x2e0] sm:$0xff]  ;;  %v589_v47 = vld [vmem:[%s2797_s7 + $0x2f0] sm:$0xff]  ;;  %586 = vst [vmem:[%s2802_s8 + $0x168] sm:$0xff] %v585_v45 }
  0x31   : > { %588 = vst [vmem:[%s2802_s8 + $0x170] sm:$0xff] %v587_v46  ;;  %590 = vst [vmem:[%s2802_s8 + $0x178] sm:$0xff] %v589_v47  ;;  %v591_v48 = vld [vmem:[%s2797_s7 + $0x300] sm:$0xff]  ;;  %v593_v49 = vld [vmem:[%s2797_s7 + $0x310] sm:$0xff] }
  0x32   : > { %v595_v50 = vld [vmem:[%s2797_s7 + $0x320] sm:$0xff]  ;;  %592 = vst [vmem:[%s2802_s8 + $0x180] sm:$0xff] %v591_v48  ;;  %594 = vst [vmem:[%s2802_s8 + $0x188] sm:$0xff] %v593_v49  ;;  %v597_v51 = vld [vmem:[%s2797_s7 + $0x330] sm:$0xff] }
  0x33   : > { %596 = vst [vmem:[%s2802_s8 + $0x190] sm:$0xff] %v595_v50  ;;  %v599_v52 = vld [vmem:[%s2797_s7 + $0x340] sm:$0xff]  ;;  %v601_v53 = vld [vmem:[%s2797_s7 + $0x350] sm:$0xff]  ;;  %598 = vst [vmem:[%s2802_s8 + $0x198] sm:$0xff] %v597_v51 }
  0x34   : > { %600 = vst [vmem:[%s2802_s8 + $0x1a0] sm:$0xff] %v599_v52  ;;  %602 = vst [vmem:[%s2802_s8 + $0x1a8] sm:$0xff] %v601_v53  ;;  %v603_v54 = vld [vmem:[%s2797_s7 + $0x360] sm:$0xff]  ;;  %v605_v55 = vld [vmem:[%s2797_s7 + $0x370] sm:$0xff] }
  0x35   : > { %v607_v56 = vld [vmem:[%s2797_s7 + $0x380] sm:$0xff]  ;;  %604 = vst [vmem:[%s2802_s8 + $0x1b0] sm:$0xff] %v603_v54  ;;  %606 = vst [vmem:[%s2802_s8 + $0x1b8] sm:$0xff] %v605_v55  ;;  %v609_v57 = vld [vmem:[%s2797_s7 + $0x390] sm:$0xff] }
  0x36   : > { %608 = vst [vmem:[%s2802_s8 + $0x1c0] sm:$0xff] %v607_v56  ;;  %v611_v58 = vld [vmem:[%s2797_s7 + $0x3a0] sm:$0xff]  ;;  %v613_v59 = vld [vmem:[%s2797_s7 + $0x3b0] sm:$0xff]  ;;  %610 = vst [vmem:[%s2802_s8 + $0x1c8] sm:$0xff] %v609_v57 }
  0x37   : > { %612 = vst [vmem:[%s2802_s8 + $0x1d0] sm:$0xff] %v611_v58  ;;  %614 = vst [vmem:[%s2802_s8 + $0x1d8] sm:$0xff] %v613_v59  ;;  %v615_v60 = vld [vmem:[%s2797_s7 + $0x3c0] sm:$0xff]  ;;  %v617_v61 = vld [vmem:[%s2797_s7 + $0x3d0] sm:$0xff] }
  0x38   : > { %v619_v62 = vld [vmem:[%s2797_s7 + $0x3e0] sm:$0xff]  ;;  %616 = vst [vmem:[%s2802_s8 + $0x1e0] sm:$0xff] %v615_v60  ;;  %618 = vst [vmem:[%s2802_s8 + $0x1e8] sm:$0xff] %v617_v61  ;;  %v621_v63 = vld [vmem:[%s2797_s7 + $0x3f0] sm:$0xff] }
  0x39   : > { %620 = vst [vmem:[%s2802_s8 + $0x1f0] sm:$0xff] %v619_v62  ;;  %v623_v0 = vld [vmem:[%s2797_s7 + $0x400] sm:$0xff]  ;;  %v625_v1 = vld [vmem:[%s2797_s7 + $0x410] sm:$0xff]  ;;  %622 = vst [vmem:[%s2802_s8 + $0x1f8] sm:$0xff] %v621_v63 }
  0x3a   : > { %624 = vst [vmem:[%s2802_s8 + $0x200] sm:$0xff] %v623_v0  ;;  %626 = vst [vmem:[%s2802_s8 + $0x208] sm:$0xff] %v625_v1  ;;  %v627_v2 = vld [vmem:[%s2797_s7 + $0x420] sm:$0xff]  ;;  %v629_v3 = vld [vmem:[%s2797_s7 + $0x430] sm:$0xff] }
  0x3b   : > { %v631_v4 = vld [vmem:[%s2797_s7 + $0x440] sm:$0xff]  ;;  %628 = vst [vmem:[%s2802_s8 + $0x210] sm:$0xff] %v627_v2  ;;  %630 = vst [vmem:[%s2802_s8 + $0x218] sm:$0xff] %v629_v3  ;;  %v633_v5 = vld [vmem:[%s2797_s7 + $0x450] sm:$0xff] }
  0x3c   : > { %632 = vst [vmem:[%s2802_s8 + $0x220] sm:$0xff] %v631_v4  ;;  %v635_v6 = vld [vmem:[%s2797_s7 + $0x460] sm:$0xff]  ;;  %v637_v7 = vld [vmem:[%s2797_s7 + $0x470] sm:$0xff]  ;;  %634 = vst [vmem:[%s2802_s8 + $0x228] sm:$0xff] %v633_v5 }
  0x3d   : > { %636 = vst [vmem:[%s2802_s8 + $0x230] sm:$0xff] %v635_v6  ;;  %638 = vst [vmem:[%s2802_s8 + $0x238] sm:$0xff] %v637_v7  ;;  %v639_v8 = vld [vmem:[%s2797_s7 + $0x480] sm:$0xff]  ;;  %v641_v9 = vld [vmem:[%s2797_s7 + $0x490] sm:$0xff] }
  0x3e   : > { %v643_v10 = vld [vmem:[%s2797_s7 + $0x4a0] sm:$0xff]  ;;  %640 = vst [vmem:[%s2802_s8 + $0x240] sm:$0xff] %v639_v8  ;;  %642 = vst [vmem:[%s2802_s8 + $0x248] sm:$0xff] %v641_v9  ;;  %v645_v11 = vld [vmem:[%s2797_s7 + $0x4b0] sm:$0xff] }
  0x3f   : > { %644 = vst [vmem:[%s2802_s8 + $0x250] sm:$0xff] %v643_v10  ;;  %v647_v12 = vld [vmem:[%s2797_s7 + $0x4c0] sm:$0xff]  ;;  %v649_v13 = vld [vmem:[%s2797_s7 + $0x4d0] sm:$0xff]  ;;  %646 = vst [vmem:[%s2802_s8 + $0x258] sm:$0xff] %v645_v11 }
  0x40   : > { %648 = vst [vmem:[%s2802_s8 + $0x260] sm:$0xff] %v647_v12  ;;  %650 = vst [vmem:[%s2802_s8 + $0x268] sm:$0xff] %v649_v13  ;;  %v651_v14 = vld [vmem:[%s2797_s7 + $0x4e0] sm:$0xff]  ;;  %v653_v15 = vld [vmem:[%s2797_s7 + $0x4f0] sm:$0xff] }
  0x41   : > { %v655_v16 = vld [vmem:[%s2797_s7 + $0x500] sm:$0xff]  ;;  %652 = vst [vmem:[%s2802_s8 + $0x270] sm:$0xff] %v651_v14  ;;  %654 = vst [vmem:[%s2802_s8 + $0x278] sm:$0xff] %v653_v15  ;;  %v657_v17 = vld [vmem:[%s2797_s7 + $0x510] sm:$0xff] }
  0x42   : > { %656 = vst [vmem:[%s2802_s8 + $0x280] sm:$0xff] %v655_v16  ;;  %v659_v18 = vld [vmem:[%s2797_s7 + $0x520] sm:$0xff]  ;;  %v661_v19 = vld [vmem:[%s2797_s7 + $0x530] sm:$0xff]  ;;  %658 = vst [vmem:[%s2802_s8 + $0x288] sm:$0xff] %v657_v17 }
  0x43   : > { %660 = vst [vmem:[%s2802_s8 + $0x290] sm:$0xff] %v659_v18  ;;  %662 = vst [vmem:[%s2802_s8 + $0x298] sm:$0xff] %v661_v19  ;;  %v663_v20 = vld [vmem:[%s2797_s7 + $0x540] sm:$0xff]  ;;  %v665_v21 = vld [vmem:[%s2797_s7 + $0x550] sm:$0xff] }
  0x44   : > { %v667_v22 = vld [vmem:[%s2797_s7 + $0x560] sm:$0xff]  ;;  %664 = vst [vmem:[%s2802_s8 + $0x2a0] sm:$0xff] %v663_v20  ;;  %666 = vst [vmem:[%s2802_s8 + $0x2a8] sm:$0xff] %v665_v21  ;;  %v669_v23 = vld [vmem:[%s2797_s7 + $0x570] sm:$0xff] }
  0x45   : > { %668 = vst [vmem:[%s2802_s8 + $0x2b0] sm:$0xff] %v667_v22  ;;  %v671_v24 = vld [vmem:[%s2797_s7 + $0x580] sm:$0xff]  ;;  %v673_v25 = vld [vmem:[%s2797_s7 + $0x590] sm:$0xff]  ;;  %670 = vst [vmem:[%s2802_s8 + $0x2b8] sm:$0xff] %v669_v23 }
  0x46   : > { %672 = vst [vmem:[%s2802_s8 + $0x2c0] sm:$0xff] %v671_v24  ;;  %674 = vst [vmem:[%s2802_s8 + $0x2c8] sm:$0xff] %v673_v25  ;;  %v675_v26 = vld [vmem:[%s2797_s7 + $0x5a0] sm:$0xff]  ;;  %v677_v27 = vld [vmem:[%s2797_s7 + $0x5b0] sm:$0xff] }
  0x47   : > { %v679_v28 = vld [vmem:[%s2797_s7 + $0x5c0] sm:$0xff]  ;;  %676 = vst [vmem:[%s2802_s8 + $0x2d0] sm:$0xff] %v675_v26  ;;  %678 = vst [vmem:[%s2802_s8 + $0x2d8] sm:$0xff] %v677_v27  ;;  %v681_v29 = vld [vmem:[%s2797_s7 + $0x5d0] sm:$0xff] }
  0x48   : > { %680 = vst [vmem:[%s2802_s8 + $0x2e0] sm:$0xff] %v679_v28  ;;  %v683_v30 = vld [vmem:[%s2797_s7 + $0x5e0] sm:$0xff]  ;;  %v685_v31 = vld [vmem:[%s2797_s7 + $0x5f0] sm:$0xff]  ;;  %682 = vst [vmem:[%s2802_s8 + $0x2e8] sm:$0xff] %v681_v29 }
  0x49   : > { %684 = vst [vmem:[%s2802_s8 + $0x2f0] sm:$0xff] %v683_v30  ;;  %686 = vst [vmem:[%s2802_s8 + $0x2f8] sm:$0xff] %v685_v31  ;;  %v687_v32 = vld [vmem:[%s2797_s7 + $0x600] sm:$0xff]  ;;  %v689_v33 = vld [vmem:[%s2797_s7 + $0x610] sm:$0xff] }
  0x4a   : > { %v691_v34 = vld [vmem:[%s2797_s7 + $0x620] sm:$0xff]  ;;  %688 = vst [vmem:[%s2802_s8 + $0x300] sm:$0xff] %v687_v32  ;;  %690 = vst [vmem:[%s2802_s8 + $0x308] sm:$0xff] %v689_v33  ;;  %v693_v35 = vld [vmem:[%s2797_s7 + $0x630] sm:$0xff] }
  0x4b   : > { %692 = vst [vmem:[%s2802_s8 + $0x310] sm:$0xff] %v691_v34  ;;  %v695_v36 = vld [vmem:[%s2797_s7 + $0x640] sm:$0xff]  ;;  %v697_v37 = vld [vmem:[%s2797_s7 + $0x650] sm:$0xff]  ;;  %694 = vst [vmem:[%s2802_s8 + $0x318] sm:$0xff] %v693_v35 }
  0x4c   : > { %696 = vst [vmem:[%s2802_s8 + $0x320] sm:$0xff] %v695_v36  ;;  %698 = vst [vmem:[%s2802_s8 + $0x328] sm:$0xff] %v697_v37  ;;  %v699_v38 = vld [vmem:[%s2797_s7 + $0x660] sm:$0xff]  ;;  %v701_v39 = vld [vmem:[%s2797_s7 + $0x670] sm:$0xff] }
  0x4d   : > { %v703_v40 = vld [vmem:[%s2797_s7 + $0x680] sm:$0xff]  ;;  %700 = vst [vmem:[%s2802_s8 + $0x330] sm:$0xff] %v699_v38  ;;  %702 = vst [vmem:[%s2802_s8 + $0x338] sm:$0xff] %v701_v39  ;;  %v705_v41 = vld [vmem:[%s2797_s7 + $0x690] sm:$0xff] }
  0x4e   : > { %704 = vst [vmem:[%s2802_s8 + $0x340] sm:$0xff] %v703_v40  ;;  %v707_v42 = vld [vmem:[%s2797_s7 + $0x6a0] sm:$0xff]  ;;  %v709_v43 = vld [vmem:[%s2797_s7 + $0x6b0] sm:$0xff]  ;;  %706 = vst [vmem:[%s2802_s8 + $0x348] sm:$0xff] %v705_v41 }
  0x4f   : > { %708 = vst [vmem:[%s2802_s8 + $0x350] sm:$0xff] %v707_v42  ;;  %710 = vst [vmem:[%s2802_s8 + $0x358] sm:$0xff] %v709_v43  ;;  %v711_v44 = vld [vmem:[%s2797_s7 + $0x6c0] sm:$0xff]  ;;  %v713_v45 = vld [vmem:[%s2797_s7 + $0x6d0] sm:$0xff] }
  0x50   : > { %v715_v46 = vld [vmem:[%s2797_s7 + $0x6e0] sm:$0xff]  ;;  %712 = vst [vmem:[%s2802_s8 + $0x360] sm:$0xff] %v711_v44  ;;  %714 = vst [vmem:[%s2802_s8 + $0x368] sm:$0xff] %v713_v45  ;;  %v717_v47 = vld [vmem:[%s2797_s7 + $0x6f0] sm:$0xff] }
  0x51   : > { %716 = vst [vmem:[%s2802_s8 + $0x370] sm:$0xff] %v715_v46  ;;  %v719_v48 = vld [vmem:[%s2797_s7 + $0x700] sm:$0xff]  ;;  %v721_v49 = vld [vmem:[%s2797_s7 + $0x710] sm:$0xff]  ;;  %718 = vst [vmem:[%s2802_s8 + $0x378] sm:$0xff] %v717_v47 }
  0x52   : > { %720 = vst [vmem:[%s2802_s8 + $0x380] sm:$0xff] %v719_v48  ;;  %722 = vst [vmem:[%s2802_s8 + $0x388] sm:$0xff] %v721_v49  ;;  %v723_v50 = vld [vmem:[%s2797_s7 + $0x720] sm:$0xff]  ;;  %v725_v51 = vld [vmem:[%s2797_s7 + $0x730] sm:$0xff] }
  0x53   : > { %v727_v52 = vld [vmem:[%s2797_s7 + $0x740] sm:$0xff]  ;;  %724 = vst [vmem:[%s2802_s8 + $0x390] sm:$0xff] %v723_v50  ;;  %726 = vst [vmem:[%s2802_s8 + $0x398] sm:$0xff] %v725_v51  ;;  %v729_v53 = vld [vmem:[%s2797_s7 + $0x750] sm:$0xff] }
  0x54   : > { %728 = vst [vmem:[%s2802_s8 + $0x3a0] sm:$0xff] %v727_v52  ;;  %v731_v54 = vld [vmem:[%s2797_s7 + $0x760] sm:$0xff]  ;;  %v733_v55 = vld [vmem:[%s2797_s7 + $0x770] sm:$0xff]  ;;  %730 = vst [vmem:[%s2802_s8 + $0x3a8] sm:$0xff] %v729_v53 }
  0x55   : > { %732 = vst [vmem:[%s2802_s8 + $0x3b0] sm:$0xff] %v731_v54  ;;  %734 = vst [vmem:[%s2802_s8 + $0x3b8] sm:$0xff] %v733_v55  ;;  %v735_v56 = vld [vmem:[%s2797_s7 + $0x780] sm:$0xff]  ;;  %v737_v57 = vld [vmem:[%s2797_s7 + $0x790] sm:$0xff] }
  0x56   : > { %v739_v58 = vld [vmem:[%s2797_s7 + $0x7a0] sm:$0xff]  ;;  %736 = vst [vmem:[%s2802_s8 + $0x3c0] sm:$0xff] %v735_v56  ;;  %738 = vst [vmem:[%s2802_s8 + $0x3c8] sm:$0xff] %v737_v57  ;;  %v741_v59 = vld [vmem:[%s2797_s7 + $0x7b0] sm:$0xff] }
  0x57   : > { %740 = vst [vmem:[%s2802_s8 + $0x3d0] sm:$0xff] %v739_v58  ;;  %v743_v60 = vld [vmem:[%s2797_s7 + $0x7c0] sm:$0xff]  ;;  %v745_v61 = vld [vmem:[%s2797_s7 + $0x7d0] sm:$0xff]  ;;  %742 = vst [vmem:[%s2802_s8 + $0x3d8] sm:$0xff] %v741_v59 }
  0x58   : > { %744 = vst [vmem:[%s2802_s8 + $0x3e0] sm:$0xff] %v743_v60  ;;  %746 = vst [vmem:[%s2802_s8 + $0x3e8] sm:$0xff] %v745_v61  ;;  %v747_v62 = vld [vmem:[%s2797_s7 + $0x7e0] sm:$0xff]  ;;  %v749_v63 = vld [vmem:[%s2797_s7 + $0x7f0] sm:$0xff] }
  0x59   : > { %v751_v0 = vld [vmem:[%s2797_s7 + $0x800] sm:$0xff]  ;;  %748 = vst [vmem:[%s2802_s8 + $0x3f0] sm:$0xff] %v747_v62  ;;  %750 = vst [vmem:[%s2802_s8 + $0x3f8] sm:$0xff] %v749_v63  ;;  %v753_v1 = vld [vmem:[%s2797_s7 + $0x810] sm:$0xff] }
  0x5a   : > { %752 = vst [vmem:[%s2802_s8 + $0x400] sm:$0xff] %v751_v0  ;;  %v755_v2 = vld [vmem:[%s2797_s7 + $0x820] sm:$0xff]  ;;  %v757_v3 = vld [vmem:[%s2797_s7 + $0x830] sm:$0xff]  ;;  %754 = vst [vmem:[%s2802_s8 + $0x408] sm:$0xff] %v753_v1 }
  0x5b   : > { %756 = vst [vmem:[%s2802_s8 + $0x410] sm:$0xff] %v755_v2  ;;  %758 = vst [vmem:[%s2802_s8 + $0x418] sm:$0xff] %v757_v3  ;;  %v759_v4 = vld [vmem:[%s2797_s7 + $0x840] sm:$0xff]  ;;  %v761_v5 = vld [vmem:[%s2797_s7 + $0x850] sm:$0xff] }
  0x5c   : > { %v763_v6 = vld [vmem:[%s2797_s7 + $0x860] sm:$0xff]  ;;  %760 = vst [vmem:[%s2802_s8 + $0x420] sm:$0xff] %v759_v4  ;;  %762 = vst [vmem:[%s2802_s8 + $0x428] sm:$0xff] %v761_v5  ;;  %v765_v7 = vld [vmem:[%s2797_s7 + $0x870] sm:$0xff] }
  0x5d   : > { %764 = vst [vmem:[%s2802_s8 + $0x430] sm:$0xff] %v763_v6  ;;  %v767_v8 = vld [vmem:[%s2797_s7 + $0x880] sm:$0xff]  ;;  %v769_v9 = vld [vmem:[%s2797_s7 + $0x890] sm:$0xff]  ;;  %766 = vst [vmem:[%s2802_s8 + $0x438] sm:$0xff] %v765_v7 }
  0x5e   : > { %768 = vst [vmem:[%s2802_s8 + $0x440] sm:$0xff] %v767_v8  ;;  %770 = vst [vmem:[%s2802_s8 + $0x448] sm:$0xff] %v769_v9  ;;  %v771_v10 = vld [vmem:[%s2797_s7 + $0x8a0] sm:$0xff]  ;;  %v773_v11 = vld [vmem:[%s2797_s7 + $0x8b0] sm:$0xff] }
  0x5f   : > { %v775_v12 = vld [vmem:[%s2797_s7 + $0x8c0] sm:$0xff]  ;;  %772 = vst [vmem:[%s2802_s8 + $0x450] sm:$0xff] %v771_v10  ;;  %774 = vst [vmem:[%s2802_s8 + $0x458] sm:$0xff] %v773_v11  ;;  %v777_v13 = vld [vmem:[%s2797_s7 + $0x8d0] sm:$0xff] }
  0x60   : > { %776 = vst [vmem:[%s2802_s8 + $0x460] sm:$0xff] %v775_v12  ;;  %v779_v14 = vld [vmem:[%s2797_s7 + $0x8e0] sm:$0xff]  ;;  %v781_v15 = vld [vmem:[%s2797_s7 + $0x8f0] sm:$0xff]  ;;  %778 = vst [vmem:[%s2802_s8 + $0x468] sm:$0xff] %v777_v13 }
  0x61   : > { %780 = vst [vmem:[%s2802_s8 + $0x470] sm:$0xff] %v779_v14  ;;  %782 = vst [vmem:[%s2802_s8 + $0x478] sm:$0xff] %v781_v15 }
  0x62 PF: > { %p2209_p7 = scmp.ge.s32.totalorder %s2711_s18, 1  ;;  %p795_p8 = scmp.lt.s32.totalorder %s2711_s18, 5 }
  0x64   : > { %p796_p9 = pnand %p2209_p7, %p795_p8 }
  0x65   : > { %s802_s9 = sand.u32 (!%p796_p9), 1, %s2687_s12   ;;  %s840_s10 = smul.u32 (!%p796_p9), 9, %s2695_s14 }
  0x66   : > { %799 = sbr.rel (%p796_p9) target bundleno = 522 (0x20a), region = 66  ;;  %s2210_s21 = sshll.u32 (!%p796_p9), %s2699_s15, 1 }
  0x67   : > { %s2379_s11 = smul.u32 (!%p796_p9), 1152, %s802_s9  ;;  %p843_p10 = scmp.lt.s32.totalorder (!%p796_p9), %s840_s10, 17 }
  0x68   : > { %p852_p11 = scmp.lt.s32.totalorder (!%p796_p9), %s2210_s21, 3  ;;  %p2212_p12 = scmp.ne.s32.totalorder (!%p796_p9), %s2695_s14, 0 }
  0x69   : > { %s3109_s30 = scalar_lea.vmem (!%p796_p9), [#allocation3], %s2379_s11 }
  0x6d   : > { %s3333_s10 = smov (!%p843_p10, %s840_s10), 17  ;;  %s3335_s21 = smov (!%p852_p11, %s2210_s21), 3 }
  0x6e   : > { %s3099_s24 = scalar_lea.vmem %s3316_s0, %s3333_s10  ;;  %s854_s28 = scalar_lea.vmem %s3318_s2, %s3335_s21  ;;  %v2713_v16 = vmov (!%p2212_p12), 0.0  }
  0x6f   : > { %s863_s15 = scalar_lea.vmem %s3319_s3, %s3335_s21  ;;  %869 = sbr.rel (%p2212_p12) target bundleno = 118 (0x76), region = 74  ;;  %870 = vst [vmem:[#allocation2] sm:$0xf] (!%p2212_p12), %v2713_v16 }
  0x76 PF: > { %v2440_v17 = vld [vmem:[%s3109_s30 + $0x4] ss:$8 sps:$4 sm:$0xff]   ;;  %v2444_v19 = vld [vmem:[%s3109_s30] ss:$8 sps:$4 sm:$0xff]   ;;  %v2446_v21 = vld [vmem:[%s3109_s30 + $0x14] ss:$8 sps:$4 sm:$0xff]   ;;  %v1024_v55 = vlaneseq }
  0x77   : > { %v2442_v18 = vld [vmem:[%s3109_s30 + $0x204] ss:$8 sps:$4 sm:$0xff]   ;;  %1812 = vmatprep.subr.bf16.mxu1 %v2440_v17  ;;  %v2445_v20 = vld [vmem:[%s3109_s30 + $0x200] ss:$8 sps:$4 sm:$0xff]   ;;  %v2448_v22 = vld [vmem:[%s3109_s30 + $0x214] ss:$8 sps:$4 sm:$0xff]  }
  0x78   : > { %1894 = vmatprep.subr.bf16.mxu0 %v2442_v18  ;;  %1813 = vmatpush1.bf16.msra.mxu1 %v2444_v19  ;;  %v2450_v23 = vld [vmem:[%s3109_s30 + $0x10] ss:$8 sps:$4 sm:$0xff]   ;;  %v2452_v25 = vld [vmem:[%s3109_s30 + $0x24] ss:$8 sps:$4 sm:$0xff]   ;;  %v2456_v27 = vld [vmem:[%s3109_s30 + $0x20] ss:$8 sps:$4 sm:$0xff]  }
  0x79   : > { %1895 = vmatpush1.bf16.msra.mxu0 %v2445_v20  ;;  %1814 = vmatprep.subr.bf16.mxu1 %v2446_v21  ;;  %v2451_v24 = vld [vmem:[%s3109_s30 + $0x210] ss:$8 sps:$4 sm:$0xff]   ;;  %v2454_v26 = vld [vmem:[%s3109_s30 + $0x224] ss:$8 sps:$4 sm:$0xff]   ;;  %v2457_v28 = vld [vmem:[%s3109_s30 + $0x220] ss:$8 sps:$4 sm:$0xff]  }
  0x7a   : > { %1896 = vmatprep.subr.bf16.mxu0 %v2448_v22  ;;  %v2458_v29 = vld [vmem:[%s3109_s30 + $0x34] ss:$8 sps:$4 sm:$0xff]   ;;  %v2462_v31 = vld [vmem:[%s3109_s30 + $0x30] ss:$8 sps:$4 sm:$0xff]   ;;  %v2464_v33 = vld [vmem:[%s3109_s30 + $0x44] ss:$8 sps:$4 sm:$0xff]  }
  0x7b   : > { %v2460_v30 = vld [vmem:[%s3109_s30 + $0x234] ss:$8 sps:$4 sm:$0xff]   ;;  %v2463_v32 = vld [vmem:[%s3109_s30 + $0x230] ss:$8 sps:$4 sm:$0xff]   ;;  %v2466_v34 = vld [vmem:[%s3109_s30 + $0x244] ss:$8 sps:$4 sm:$0xff]  }
  0x7c   : > { %1815 = vmatpush1.bf16.msra.mxu1 %v2450_v23  ;;  %v2468_v35 = vld [vmem:[%s3109_s30 + $0x40] ss:$8 sps:$4 sm:$0xff]   ;;  %v2470_v37 = vld [vmem:[%s3109_s30 + $0x54] ss:$8 sps:$4 sm:$0xff]   ;;  %v2474_v39 = vld [vmem:[%s3109_s30 + $0x50] ss:$8 sps:$4 sm:$0xff]  }
  0x7d   : > { %1897 = vmatpush1.bf16.msra.mxu0 %v2451_v24  ;;  %1816 = vmatprep.subr.bf16.mxu1 %v2452_v25  ;;  %v2469_v36 = vld [vmem:[%s3109_s30 + $0x240] ss:$8 sps:$4 sm:$0xff]   ;;  %v2472_v38 = vld [vmem:[%s3109_s30 + $0x254] ss:$8 sps:$4 sm:$0xff]   ;;  %v2475_v40 = vld [vmem:[%s3109_s30 + $0x250] ss:$8 sps:$4 sm:$0xff]  }
  0x7e   : > { %1898 = vmatprep.subr.bf16.mxu0 %v2454_v26  ;;  %v2476_v41 = vld [vmem:[%s3109_s30 + $0x64] ss:$8 sps:$4 sm:$0xff]   ;;  %v2480_v43 = vld [vmem:[%s3109_s30 + $0x60] ss:$8 sps:$4 sm:$0xff]   ;;  %v2482_v45 = vld [vmem:[%s3109_s30 + $0x74] ss:$8 sps:$4 sm:$0xff]  }
  0x7f   : > { %v2478_v42 = vld [vmem:[%s3109_s30 + $0x264] ss:$8 sps:$4 sm:$0xff]   ;;  %v2481_v44 = vld [vmem:[%s3109_s30 + $0x260] ss:$8 sps:$4 sm:$0xff]   ;;  %v2484_v46 = vld [vmem:[%s3109_s30 + $0x274] ss:$8 sps:$4 sm:$0xff]  }
  0x80   : > { %1817 = vmatpush1.bf16.msra.mxu1 %v2456_v27  ;;  %v2486_v47 = vld [vmem:[%s3109_s30 + $0x70] ss:$8 sps:$4 sm:$0xff]   ;;  %v2488_v49 = vld [vmem:[%s3109_s30 + $0x84] ss:$8 sps:$4 sm:$0xff]   ;;  %v2492_v51 = vld [vmem:[%s3109_s30 + $0x80] ss:$8 sps:$4 sm:$0xff]  }
  0x81   : > { %1899 = vmatpush1.bf16.msra.mxu0 %v2457_v28  ;;  %1818 = vmatprep.subr.bf16.mxu1 %v2458_v29  ;;  %v2487_v48 = vld [vmem:[%s3109_s30 + $0x270] ss:$8 sps:$4 sm:$0xff]   ;;  %v2490_v50 = vld [vmem:[%s3109_s30 + $0x284] ss:$8 sps:$4 sm:$0xff]   ;;  %v2493_v52 = vld [vmem:[%s3109_s30 + $0x280] ss:$8 sps:$4 sm:$0xff]  }
  0x82   : > { %1900 = vmatprep.subr.bf16.mxu0 %v2460_v30  ;;  %v2714_v53 = vmov 1966171168   ;;  %v2494_v56 = vld [vmem:[%s3109_s30 + $0x94] ss:$8 sps:$4 sm:$0xff]   ;;  %v2498_v58 = vld [vmem:[%s3109_s30 + $0x90] ss:$8 sps:$4 sm:$0xff]  }
  0x83   : > { %v1022_v54 = vunpack.c.l.s4 %v2714_v53  ;;  %v2496_v57 = vld [vmem:[%s3109_s30 + $0x294] ss:$8 sps:$4 sm:$0xff]   ;;  %v3151_v60 = vshrl.u32 %v1024_v55, 7  ;;  %v2499_v61 = vld [vmem:[%s3109_s30 + $0x290] ss:$8 sps:$4 sm:$0xff]   ;;  %p2358_p13 = scmp.ne.s32.totalorder %s2695_s14, 1 }
  0x84   : > { %1819 = vmatpush1.bf16.msra.mxu1 %v2462_v31  ;;  %v2500_v62 = vld [vmem:[%s3109_s30 + $0xa4] ss:$8 sps:$4 sm:$0xff]   ;;  %v2504_v0 = vld [vmem:[%s3109_s30 + $0xa0] ss:$8 sps:$4 sm:$0xff]   ;;  %v2506_v3 = vld [vmem:[%s3109_s30 + $0xb4] ss:$8 sps:$4 sm:$0xff]  }
  0x85   : > { %1901 = vmatpush1.bf16.msra.mxu0 %v2463_v32  ;;  %1820 = vmatprep.subr.bf16.mxu1 %v2464_v33  ;;  %v1023_v59 = vunpack.c.0.s8 %v1022_v54  ;;  %v2502_v63 = vld [vmem:[%s3109_s30 + $0x2a4] ss:$8 sps:$4 sm:$0xff]   ;;  %v2505_v1 = vld [vmem:[%s3109_s30 + $0x2a0] ss:$8 sps:$4 sm:$0xff]   ;;  %v2508_v4 = vld [vmem:[%s3109_s30 + $0x2b4] ss:$8 sps:$4 sm:$0xff]  }
  0x86   : > { %1902 = vmatprep.subr.bf16.mxu0 %v2466_v34  ;;  %v872_v5 = vld [vmem:[%s3099_s24] sm:$0xff]  ;;  %v2510_v6 = vld [vmem:[%s3109_s30 + $0xb0] ss:$8 sps:$4 sm:$0xff]   ;;  %v2512_v10 = vld [vmem:[%s3109_s30 + $0xc4] ss:$8 sps:$4 sm:$0xff]  }
  0x87   : > { %v3159_v2 = vsub.s32 %v1023_v59, %v3151_v60  ;;  %v1020_v8 = vcombine.high %v872_v5, %v872_v5  ;;  %v2511_v9 = vld [vmem:[%s3109_s30 + $0x2b0] ss:$8 sps:$4 sm:$0xff]   ;;  %v2514_v11 = vld [vmem:[%s3109_s30 + $0x2c4] ss:$8 sps:$4 sm:$0xff]   ;;  %v2516_v14 = vld [vmem:[%s3109_s30 + $0xc0] ss:$8 sps:$4 sm:$0xff]  }
  0x88   : > { %1821 = vmatpush1.bf16.msra.mxu1 %v2468_v35  ;;  %v2517_v17 = vld [vmem:[%s3109_s30 + $0x2c0] ss:$8 sps:$4 sm:$0xff]   ;;  %v2518_v18 = vld [vmem:[%s3109_s30 + $0xd4] ss:$8 sps:$4 sm:$0xff]   ;;  %v2522_v21 = vld [vmem:[%s3109_s30 + $0xd0] ss:$8 sps:$4 sm:$0xff]  }
  0x89   : > { %1903 = vmatpush1.bf16.msra.mxu0 %v2469_v36  ;;  %1822 = vmatprep.subr.bf16.mxu1 %v2470_v37  ;;  %v1027_v7 = vrot.slane %v872_v5, %v3159_v2  ;;  %v1034_v13 = vrot.slane %v1020_v8, %v3159_v2  ;;  %v2520_v19 = vld [vmem:[%s3109_s30 + $0x2d4] ss:$8 sps:$4 sm:$0xff]   ;;  %v2523_v22 = vld [vmem:[%s3109_s30 + $0x2d0] ss:$8 sps:$4 sm:$0xff]   ;;  %v2524_v23 = vld [vmem:[%s3109_s30 + $0xe4] ss:$8 sps:$4 sm:$0xff]  }
  0x8a   : > { %1904 = vmatprep.subr.bf16.mxu0 %v2472_v38  ;;  %v2526_v24 = vld [vmem:[%s3109_s30 + $0x2e4] ss:$8 sps:$4 sm:$0xff]   ;;  %v2528_v25 = vld [vmem:[%s3109_s30 + $0xe0] ss:$8 sps:$4 sm:$0xff]   ;;  %v2530_v27 = vld [vmem:[%s3109_s30 + $0xf4] ss:$8 sps:$4 sm:$0xff]  }
  0x8b   : > { %v1035_v12 = vcombine.high %v1027_v7, %v1027_v7  ;;  %v1036_v16 = vcombine.high %v1034_v13, %v1034_v13  ;;  %v2529_v26 = vld [vmem:[%s3109_s30 + $0x2e0] ss:$8 sps:$4 sm:$0xff]   ;;  %v2532_v28 = vld [vmem:[%s3109_s30 + $0x2f4] ss:$8 sps:$4 sm:$0xff]   ;;  %v2534_v29 = vld [vmem:[%s3109_s30 + $0xf0] ss:$8 sps:$4 sm:$0xff]   ;;  %v3190_v34 = vrot.slane %v1027_v7, %v3159_v2  ;;  %v3193_v35 = vrot.slane %v1034_v13, %v3159_v2 }
  0x8c   : > { %1823 = vmatpush1.bf16.msra.mxu1 %v2474_v39  ;;  %v2535_v30 = vld [vmem:[%s3109_s30 + $0x2f0] ss:$8 sps:$4 sm:$0xff]   ;;  %v2538_v31 = vld [vmem:[%s3109_s30 + $0x104] ss:$8 sps:$4 sm:$0xff]   ;;  %v2536_v33 = vld [vmem:[%s3109_s30 + $0x100] ss:$8 sps:$4 sm:$0xff]  }
  0x8d   : > { %1905 = vmatpush1.bf16.msra.mxu0 %v2475_v40  ;;  %1824 = vmatprep.subr.bf16.mxu1 %v2476_v41  ;;  %v1057_v15 = vrot.slane %v1035_v12, %v3159_v2  ;;  %v1064_v20 = vrot.slane %v1036_v16, %v3159_v2  ;;  %v2542_v32 = vld [vmem:[%s3109_s30 + $0x304] ss:$8 sps:$4 sm:$0xff]   ;;  %v2540_v36 = vld [vmem:[%s3109_s30 + $0x300] ss:$8 sps:$4 sm:$0xff]   ;;  %v2545_v37 = vld [vmem:[%s3109_s30 + $0x114] ss:$8 sps:$4 sm:$0xff]  }
  0x8e   : > { %1906 = vmatprep.subr.bf16.mxu0 %v2478_v42  ;;  %v2548_v38 = vld [vmem:[%s3109_s30 + $0x314] ss:$8 sps:$4 sm:$0xff]   ;;  %v2543_v41 = vld [vmem:[%s3109_s30 + $0x110] ss:$8 sps:$4 sm:$0xff]   ;;  %v2561_v53 = vld [vmem:[%s3109_s30 + $0x140] ss:$8 sps:$4 sm:$0xff]  }
  0x8f   : > { %1844 = vmatprep.mubr.bf16.mxu1 %v1057_v15  ;;  %1926 = vmatprep.mubr.bf16.mxu0 %v1064_v20  ;;  %v1067_v39 = vcombine.high %v1057_v15, %v1057_v15  ;;  %v1068_v40 = vcombine.high %v1064_v20, %v1064_v20  ;;  %v2546_v42 = vld [vmem:[%s3109_s30 + $0x310] ss:$8 sps:$4 sm:$0xff]   ;;  %v2564_v54 = vld [vmem:[%s3109_s30 + $0x340] ss:$8 sps:$4 sm:$0xff]   ;;  %v2569_v55 = vld [vmem:[%s3109_s30 + $0x154] ss:$8 sps:$4 sm:$0xff]  }
  0x90   : > { %1825 = vmatpush1.bf16.msra.mxu1 %v2480_v43  ;;  %v2551_v43 = vld [vmem:[%s3109_s30 + $0x124] ss:$8 sps:$4 sm:$0xff]   ;;  %v2585_v7 = vld [vmem:[%s3109_s30 + $0x180] ss:$8 sps:$4 sm:$0xff]   ;;  %v2594_v12 = vld [vmem:[%s3109_s30 + $0x390] ss:$8 sps:$4 sm:$0xff]  }
  0x91   : > { %1907 = vmatpush1.bf16.msra.mxu0 %v2481_v44  ;;  %1826 = vmatprep.subr.bf16.mxu1 %v2482_v45  ;;  %v2554_v44 = vld [vmem:[%s3109_s30 + $0x324] ss:$8 sps:$4 sm:$0xff]   ;;  %v2549_v45 = vld [vmem:[%s3109_s30 + $0x120] ss:$8 sps:$4 sm:$0xff]   ;;  %v2606_v20 = vld [vmem:[%s3109_s30 + $0x3b0] ss:$8 sps:$4 sm:$0xff]  }
  0x92   : > { %1908 = vmatprep.subr.bf16.mxu0 %v2484_v46  ;;  %v2552_v46 = vld [vmem:[%s3109_s30 + $0x320] ss:$8 sps:$4 sm:$0xff]   ;;  %v2575_v59 = vld [vmem:[%s3109_s30 + $0x164] ss:$8 sps:$4 sm:$0xff]  }
  0x93   : > { %v2587_v5 = vld [vmem:[%s3109_s30 + $0x184] ss:$8 sps:$4 sm:$0xff]   ;;  %v2588_v8 = vld [vmem:[%s3109_s30 + $0x380] ss:$8 sps:$4 sm:$0xff]  }
  0x94   : > { %1827 = vmatpush1.bf16.msra.mxu1 %v2486_v47  ;;  %v2557_v47 = vld [vmem:[%s3109_s30 + $0x134] ss:$8 sps:$4 sm:$0xff]   ;;  %v2599_v13 = vld [vmem:[%s3109_s30 + $0x1a4] ss:$8 sps:$4 sm:$0xff]   ;;  %v2597_v15 = vld [vmem:[%s3109_s30 + $0x1a0] ss:$8 sps:$4 sm:$0xff]  }
  0x95   : > { %1909 = vmatpush1.bf16.msra.mxu0 %v2487_v48  ;;  %1828 = vmatprep.subr.bf16.mxu1 %v2488_v49  ;;  %v2560_v48 = vld [vmem:[%s3109_s30 + $0x334] ss:$8 sps:$4 sm:$0xff]   ;;  %v2555_v49 = vld [vmem:[%s3109_s30 + $0x130] ss:$8 sps:$4 sm:$0xff]   ;;  %v2600_v16 = vld [vmem:[%s3109_s30 + $0x3a0] ss:$8 sps:$4 sm:$0xff]  }
  0x96   : > { %1910 = vmatprep.subr.bf16.mxu0 %v2490_v50  ;;  %v2558_v50 = vld [vmem:[%s3109_s30 + $0x330] ss:$8 sps:$4 sm:$0xff]  }
  0x98   : > { %1829 = vmatpush1.bf16.msra.mxu1 %v2492_v51  ;;  %v2563_v51 = vld [vmem:[%s3109_s30 + $0x144] ss:$8 sps:$4 sm:$0xff]  }
  0x99   : > { %1911 = vmatpush1.bf16.msra.mxu0 %v2493_v52  ;;  %1830 = vmatprep.subr.bf16.mxu1 %v2494_v56  ;;  %v2566_v52 = vld [vmem:[%s3109_s30 + $0x344] ss:$8 sps:$4 sm:$0xff]   ;;  %v2572_v56 = vld [vmem:[%s3109_s30 + $0x354] ss:$8 sps:$4 sm:$0xff]  }
  0x9a   : > { %1912 = vmatprep.subr.bf16.mxu0 %v2496_v57  ;;  %v2567_v57 = vld [vmem:[%s3109_s30 + $0x150] ss:$8 sps:$4 sm:$0xff]  }
  0x9c   : > { %1831 = vmatpush1.bf16.msra.mxu1 %v2498_v58  ;;  %v2570_v58 = vld [vmem:[%s3109_s30 + $0x350] ss:$8 sps:$4 sm:$0xff]  }
  0x9d   : > { %1913 = vmatpush1.bf16.msra.mxu0 %v2499_v61  ;;  %1832 = vmatprep.subr.bf16.mxu1 %v2500_v62  ;;  %v2578_v61 = vld [vmem:[%s3109_s30 + $0x364] ss:$8 sps:$4 sm:$0xff]   ;;  %v2573_v62 = vld [vmem:[%s3109_s30 + $0x160] ss:$8 sps:$4 sm:$0xff]  }
  0x9e   : > { %1914 = vmatprep.subr.bf16.mxu0 %v2502_v63  ;;  %v2576_v63 = vld [vmem:[%s3109_s30 + $0x360] ss:$8 sps:$4 sm:$0xff]  }
  0xa0   : > { %1833 = vmatpush1.bf16.msra.mxu1 %v2504_v0  ;;  %v2581_v0 = vld [vmem:[%s3109_s30 + $0x174] ss:$8 sps:$4 sm:$0xff]  }
  0xa1   : > { %1915 = vmatpush1.bf16.msra.mxu0 %v2505_v1  ;;  %1834 = vmatprep.subr.bf16.mxu1 %v2506_v3  ;;  %v2584_v1 = vld [vmem:[%s3109_s30 + $0x374] ss:$8 sps:$4 sm:$0xff]   ;;  %v2579_v3 = vld [vmem:[%s3109_s30 + $0x170] ss:$8 sps:$4 sm:$0xff]  }
  0xa2   : > { %1916 = vmatprep.subr.bf16.mxu0 %v2508_v4  ;;  %v2582_v4 = vld [vmem:[%s3109_s30 + $0x370] ss:$8 sps:$4 sm:$0xff]  }
  0xa4   : > { %1835 = vmatpush1.bf16.msra.mxu1 %v2510_v6  ;;  %v2590_v6 = vld [vmem:[%s3109_s30 + $0x384] ss:$8 sps:$4 sm:$0xff]  }
  0xa5   : > { %1917 = vmatpush1.bf16.msra.mxu0 %v2511_v9  ;;  %1836 = vmatprep.subr.bf16.mxu1 %v2512_v10  ;;  %v2593_v9 = vld [vmem:[%s3109_s30 + $0x194] ss:$8 sps:$4 sm:$0xff]  }
  0xa6   : > { %1918 = vmatprep.subr.bf16.mxu0 %v2514_v11  ;;  %v2596_v10 = vld [vmem:[%s3109_s30 + $0x394] ss:$8 sps:$4 sm:$0xff]   ;;  %v2591_v11 = vld [vmem:[%s3109_s30 + $0x190] ss:$8 sps:$4 sm:$0xff]  }
  0xa8   : > { %1837 = vmatpush1.bf16.msra.mxu1 %v2516_v14  ;;  %v2602_v14 = vld [vmem:[%s3109_s30 + $0x3a4] ss:$8 sps:$4 sm:$0xff]  }
  0xa9   : > { %1919 = vmatpush1.bf16.msra.mxu0 %v2517_v17  ;;  %1838 = vmatprep.subr.bf16.mxu1 %v2518_v18  ;;  %v2605_v17 = vld [vmem:[%s3109_s30 + $0x1b4] ss:$8 sps:$4 sm:$0xff]  }
  0xaa   : > { %1920 = vmatprep.subr.bf16.mxu0 %v2520_v19  ;;  %v2608_v18 = vld [vmem:[%s3109_s30 + $0x3b4] ss:$8 sps:$4 sm:$0xff]   ;;  %v2603_v19 = vld [vmem:[%s3109_s30 + $0x1b0] ss:$8 sps:$4 sm:$0xff]  }
  0xac   : > { %1839 = vmatpush1.bf16.msra.mxu1 %v2522_v21  ;;  %v2611_v21 = vld [vmem:[%s3109_s30 + $0x1c4] ss:$8 sps:$4 sm:$0xff]  }
  0xad   : > { %1921 = vmatpush1.bf16.msra.mxu0 %v2523_v22  ;;  %1840 = vmatprep.subr.bf16.mxu1 %v2524_v23  ;;  %v2614_v22 = vld [vmem:[%s3109_s30 + $0x3c4] ss:$8 sps:$4 sm:$0xff]   ;;  %v2609_v23 = vld [vmem:[%s3109_s30 + $0x1c0] ss:$8 sps:$4 sm:$0xff]  }
  0xae   : > { %1922 = vmatprep.subr.bf16.mxu0 %v2526_v24  ;;  %v2612_v24 = vld [vmem:[%s3109_s30 + $0x3c0] ss:$8 sps:$4 sm:$0xff]  }
  0xb0   : > { %1841 = vmatpush1.bf16.msra.mxu1 %v2528_v25  ;;  %v2617_v25 = vld [vmem:[%s3109_s30 + $0x1d4] ss:$8 sps:$4 sm:$0xff]  }
  0xb1   : > { %1923 = vmatpush1.bf16.msra.mxu0 %v2529_v26  ;;  %1842 = vmatprep.subr.bf16.mxu1 %v2530_v27  ;;  %v2620_v26 = vld [vmem:[%s3109_s30 + $0x3d4] ss:$8 sps:$4 sm:$0xff]   ;;  %v2615_v27 = vld [vmem:[%s3109_s30 + $0x1d0] ss:$8 sps:$4 sm:$0xff]  }
  0xb2   : > { %1924 = vmatprep.subr.bf16.mxu0 %v2532_v28  ;;  %v2618_v28 = vld [vmem:[%s3109_s30 + $0x3d0] ss:$8 sps:$4 sm:$0xff]  }
  0xb4   : > { %1843 = vmatpush1.bf16.msra.mxu1 %v2534_v29  ;;  %v2623_v29 = vld [vmem:[%s3109_s30 + $0x1e4] ss:$8 sps:$4 sm:$0xff]  }
  0xb5   : > { %1925 = vmatpush1.bf16.msra.mxu0 %v2535_v30  ;;  %1853 = vmatprep.subr.bf16.mxu1 %v2538_v31  ;;  %v2626_v30 = vld [vmem:[%s3109_s30 + $0x3e4] ss:$8 sps:$4 sm:$0xff]   ;;  %v2621_v31 = vld [vmem:[%s3109_s30 + $0x1e0] ss:$8 sps:$4 sm:$0xff]  }
  0xb6   : > { %1935 = vmatprep.subr.bf16.mxu0 %v2542_v32  ;;  %v2624_v32 = vld [vmem:[%s3109_s30 + $0x3e0] ss:$8 sps:$4 sm:$0xff]  }
  0xb7   : > { %1845 = vmatmul.mubr.bf16.vlgmr.msra.gmra.mrb[0].mxu1 %v3190_v34 }
  0xb8   : > { %1927 = vmatmul.mubr.bf16.vlgmr.msra.gmra.mrb[0].mxu0 %v3193_v35  ;;  %1854 = vmatpush1.bf16.msra.mxu1 %v2536_v33  ;;  %v2629_v33 = vld [vmem:[%s3109_s30 + $0x1f4] ss:$8 sps:$4 sm:$0xff]  }
  0xb9   : > { %1936 = vmatpush1.bf16.msra.mxu0 %v2540_v36  ;;  %1855 = vmatprep.subr.bf16.mxu1 %v2545_v37  ;;  %v2632_v36 = vld [vmem:[%s3109_s30 + $0x3f4] ss:$8 sps:$4 sm:$0xff]   ;;  %v2627_v37 = vld [vmem:[%s3109_s30 + $0x1f0] ss:$8 sps:$4 sm:$0xff]  }
  0xba   : > { %1937 = vmatprep.subr.bf16.mxu0 %v2548_v38  ;;  %1885 = vmatprep.mubr.bf16.mxu1 %v1067_v39  ;;  %v2630_v38 = vld [vmem:[%s3109_s30 + $0x3f0] ss:$8 sps:$4 sm:$0xff]   ;;  %v2635_v39 = vld [vmem:[%s3109_s30 + $0x404] ss:$8 sps:$4 sm:$0xff]  }
  0xbb   : > { %1967 = vmatprep.mubr.bf16.mxu0 %v1068_v40  ;;  %v1065_v40 = vcombine.high %v3190_v34, %v3190_v34  ;;  %v2641_v34 = vld [vmem:[%s3109_s30 + $0x424] ss:$8 sps:$4 sm:$0xff]  }
  0xbc   : > { %1856 = vmatpush1.bf16.msra.mxu1 %v2543_v41  ;;  %v1066_v41 = vcombine.high %v3193_v35, %v3193_v35  ;;  %v2639_v35 = vld [vmem:[%s3109_s30 + $0x420] ss:$8 sps:$4 sm:$0xff]  }
  0xbd   : > { %1938 = vmatpush1.bf16.msra.mxu0 %v2546_v42  ;;  %1857 = vmatprep.subr.bf16.mxu1 %v2551_v43  ;;  %v2633_v42 = vld [vmem:[%s3109_s30 + $0x400] ss:$8 sps:$4 sm:$0xff]   ;;  %v2638_v43 = vld [vmem:[%s3109_s30 + $0x414] ss:$8 sps:$4 sm:$0xff]  }
  0xbe   : > { %1939 = vmatprep.subr.bf16.mxu0 %v2554_v44  ;;  %v2636_v44 = vld [vmem:[%s3109_s30 + $0x410] ss:$8 sps:$4 sm:$0xff]  }
  0xc0   : > { %1858 = vmatpush1.bf16.msra.mxu1 %v2549_v45  ;;  %v2715_v45 = vmov 0  }
  0xc1   : > { %1940 = vmatpush1.bf16.msra.mxu0 %v2552_v46  ;;  %1859 = vmatprep.subr.bf16.mxu1 %v2557_v47  ;;  %v2644_v46 = vld [vmem:[%s3109_s30 + $0x434] ss:$8 sps:$4 sm:$0xff]   ;;  %v2642_v47 = vld [vmem:[%s3109_s30 + $0x430] ss:$8 sps:$4 sm:$0xff]  }
  0xc2   : > { %1941 = vmatprep.subr.bf16.mxu0 %v2560_v48  ;;  %v2647_v48 = vld [vmem:[%s3109_s30 + $0x444] ss:$8 sps:$4 sm:$0xff]  }
  0xc4   : > { %1860 = vmatpush1.bf16.msra.mxu1 %v2555_v49  ;;  %v2645_v49 = vld [vmem:[%s3109_s30 + $0x440] ss:$8 sps:$4 sm:$0xff]  }
  0xc5   : > { %1942 = vmatpush1.bf16.msra.mxu0 %v2558_v50  ;;  %1861 = vmatprep.subr.bf16.mxu1 %v2563_v51  ;;  %v2650_v50 = vld [vmem:[%s3109_s30 + $0x454] ss:$8 sps:$4 sm:$0xff]   ;;  %v2648_v51 = vld [vmem:[%s3109_s30 + $0x450] ss:$8 sps:$4 sm:$0xff]  }
  0xc6   : > { %1943 = vmatprep.subr.bf16.mxu0 %v2566_v52  ;;  %v2653_v52 = vld [vmem:[%s3109_s30 + $0x464] ss:$8 sps:$4 sm:$0xff]  }
  0xc8   : > { %1862 = vmatpush1.bf16.msra.mxu1 %v2561_v53  ;;  %v2651_v53 = vld [vmem:[%s3109_s30 + $0x460] ss:$8 sps:$4 sm:$0xff]  }
  0xc9   : > { %1944 = vmatpush1.bf16.msra.mxu0 %v2564_v54  ;;  %1863 = vmatprep.subr.bf16.mxu1 %v2569_v55  ;;  %v2656_v54 = vld [vmem:[%s3109_s30 + $0x474] ss:$8 sps:$4 sm:$0xff]   ;;  %v2654_v55 = vld [vmem:[%s3109_s30 + $0x470] ss:$8 sps:$4 sm:$0xff]  }
  0xca   : > { %1945 = vmatprep.subr.bf16.mxu0 %v2572_v56  ;;  %v2213_v56 = vld.sshfl [vmem:[%s3099_s24 + $0x8] sm:$0x1 pattern:$0x75316420] }
  0xcc   : > { %1864 = vmatpush1.bf16.msra.mxu1 %v2567_v57  ;;  %v1082_v57 = vrot.slane %v2213_v56, %v3159_v2 }
  0xcd   : > { %1946 = vmatpush1.bf16.msra.mxu0 %v2570_v58  ;;  %1865 = vmatprep.subr.bf16.mxu1 %v2575_v59 }
  0xce   : > { %1947 = vmatprep.subr.bf16.mxu0 %v2578_v61 }
  0xd0   : > { %1866 = vmatpush1.bf16.msra.mxu1 %v2573_v62 }
  0xd1   : > { %1948 = vmatpush1.bf16.msra.mxu0 %v2576_v63  ;;  %1867 = vmatprep.subr.bf16.mxu1 %v2581_v0  ;;  %v2716_v63 = vmov 1983009808  }
  0xd2   : > { %1949 = vmatprep.subr.bf16.mxu0 %v2584_v1  ;;  %v2021_v0 = vunpack.c.l.s4 %v2716_v63 }
  0xd4   : > { %1868 = vmatpush1.bf16.msra.mxu1 %v2579_v3  ;;  %v2022_v1 = vunpack.c.0.s8 %v2021_v0 }
  0xd5   : > { %1950 = vmatpush1.bf16.msra.mxu0 %v2582_v4  ;;  %1869 = vmatprep.subr.bf16.mxu1 %v2587_v5 }
  0xd6   : > { %1951 = vmatprep.subr.bf16.mxu0 %v2590_v6 }
  0xd8   : > { %1870 = vmatpush1.bf16.msra.mxu1 %v2585_v7  ;;  %v2025_v7 = vsub.s32 %v2022_v1, %v3151_v60 }
  0xd9   : > { %1952 = vmatpush1.bf16.msra.mxu0 %v2588_v8  ;;  %1871 = vmatprep.subr.bf16.mxu1 %v2593_v9 }
  0xda   : > { %1953 = vmatprep.subr.bf16.mxu0 %v2596_v10 }
  0xdc   : > { %1872 = vmatpush1.bf16.msra.mxu1 %v2591_v11  ;;  %v871_v11 = vld [vmem:[#allocation2] sm:$0xf] }
  0xdd   : > { %1954 = vmatpush1.bf16.msra.mxu0 %v2594_v12  ;;  %1873 = vmatprep.subr.bf16.mxu1 %v2599_v13 }
  0xde   : > { %1955 = vmatprep.subr.bf16.mxu0 %v2602_v14  ;;  %v2035_v14 = vld [vmem:[%s854_s28] sm:$0x3] (!%p2358_p13) }
  0xe0   : > { %1874 = vmatpush1.bf16.msra.mxu1 %v2597_v15  ;;  %v2039_v15 = vsub.s32 (!%p2358_p13), 0, %v3151_v60 }
  0xe1   : > { %1956 = vmatpush1.bf16.msra.mxu0 %v2600_v16  ;;  %1875 = vmatprep.subr.bf16.mxu1 %v2605_v17  ;;  %v2043_v16 = vsub.s32 (!%p2358_p13), 1, %v3151_v60 }
  0xe2   : > { %1957 = vmatprep.subr.bf16.mxu0 %v2608_v18  ;;  %v2040_v17 = vrot.slane (!%p2358_p13), %v2035_v14, %v2039_v15 }
  0xe3   : > { %v2044_v18 = vrot.slane (!%p2358_p13), %v2035_v14, %v2043_v16 }
  0xe4   : > { %1876 = vmatpush1.bf16.msra.mxu1 %v2603_v19 }
  0xe5   : > { %1958 = vmatpush1.bf16.msra.mxu0 %v2606_v20  ;;  %1877 = vmatprep.subr.bf16.mxu1 %v2611_v21  ;;  %v2045_v19 = vcombine.low (!%p2358_p13), %v2040_v17, %v2044_v18 }
  0xe6   : > { %1959 = vmatprep.subr.bf16.mxu0 %v2614_v22 }
  0xe7   : > { %v2052_v21 = vrot.slane (!%p2358_p13), %v2045_v19, %v2025_v7 }
  0xe8   : > { %1878 = vmatpush1.bf16.msra.mxu1 %v2609_v23 }
  0xe9   : > { %1960 = vmatpush1.bf16.msra.mxu0 %v2612_v24  ;;  %1879 = vmatprep.subr.bf16.mxu1 %v2617_v25 }
  0xea   : > { %1961 = vmatprep.subr.bf16.mxu0 %v2620_v26 }
  0xec   : > { %1880 = vmatpush1.bf16.msra.mxu1 %v2615_v27 }
  0xed   : > { %1962 = vmatpush1.bf16.msra.mxu0 %v2618_v28  ;;  %1881 = vmatprep.subr.bf16.mxu1 %v2623_v29 }
  0xee   : > { %1963 = vmatprep.subr.bf16.mxu0 %v2626_v30 }
  0xf0   : > { %1882 = vmatpush1.bf16.msra.mxu1 %v2621_v31 }
  0xf1   : > { %1964 = vmatpush1.bf16.msra.mxu0 %v2624_v32  ;;  %1883 = vmatprep.subr.bf16.mxu1 %v2629_v33 }
  0xf2   : > { %1965 = vmatprep.subr.bf16.mxu0 %v2632_v36 }
  0xf4   : > { %1884 = vmatpush1.bf16.msra.mxu1 %v2627_v37 }
  0xf5   : > { %1966 = vmatpush1.bf16.msra.mxu0 %v2630_v38 }
  0xf6   : > { %1976 = vmatprep.subr.bf16.mxu0 %v2635_v39 }
  0xf7   : > { %1886 = vmatmul.mubr.bf16.vlgmr.msra.gmra.mrb[0].mxu1 %v1065_v40 }
  0xf8   : > { %1968 = vmatmul.mubr.bf16.vlgmr.msra.gmra.mrb[0].mxu0 %v1066_v41 }
  0xf9   : > { %1977 = vmatpush1.bf16.msra.mxu0 %v2633_v42  ;;  %2008 = vmatprep.mubr.bf16.mxu0 %v2715_v45 }
  0xfa   : > { %1978 = vmatprep.subr.bf16.mxu0 %v2638_v43 }
  0xfd   : > { %1979 = vmatpush1.bf16.msra.mxu0 %v2636_v44 }
  0xfe   : > { %1980 = vmatprep.subr.bf16.mxu0 %v2641_v34 }
 0x101   : > { %1981 = vmatpush1.bf16.msra.mxu0 %v2639_v35 }
 0x102   : > { %1982 = vmatprep.subr.bf16.mxu0 %v2644_v46 }
 0x105   : > { %1983 = vmatpush1.bf16.msra.mxu0 %v2642_v47 }
 0x106   : > { %1984 = vmatprep.subr.bf16.mxu0 %v2647_v48 }
 0x109   : > { %1985 = vmatpush1.bf16.msra.mxu0 %v2645_v49 }
 0x10a   : > { %1986 = vmatprep.subr.bf16.mxu0 %v2650_v50 }
 0x10d   : > { %1987 = vmatpush1.bf16.msra.mxu0 %v2648_v51 }
 0x10e   : > { %1988 = vmatprep.subr.bf16.mxu0 %v2653_v52 }
 0x111   : > { %1989 = vmatpush1.bf16.msra.mxu0 %v2651_v53 }
 0x112   : > { %1990 = vmatprep.subr.bf16.mxu0 %v2656_v54 }
 0x115   : > { %1991 = vmatpush1.bf16.msra.mxu0 %v2654_v55 }
 0x118   : > { %2009 = vmatmul.mubr.bf16.vlgmr.msra.gmra.mrb[0].mxu0 %v1082_v57 }
 0x1ca   : > { %v1887_v58 = vpop.f32.mrb[0].mxu1 }
 0x1cb   : > { %v1889_v59 = vpop.f32.mrb[1].mxu1 }
 0x1cc   : > { %v1891_v61 = vpop.f32.mrb[2].mxu1 }
 0x1cd   : > { %v1892_v62 = vpop.f32.mrb[3].mxu1 }
 0x1eb   : > { %v2010_v3 = vpop.f32.mrb[0].mxu0 }
 0x1ec   : > { %v2364_v4 = vadd.f32 %v2010_v3, %v1887_v58  ;;  %v2012_v5 = vpop.f32.mrb[1].mxu0 }
 0x1ed   : > { %v2365_v6 = vadd.f32 %v2012_v5, %v1889_v59  ;;  %v2014_v8 = vpop.f32.mrb[2].mxu0 }
 0x1ee   : > { %v2015_v9 = vpop.f32.mrb[3].mxu0 }
 0x1ef   : > { %v2019_v10 = vcombine.low %v2364_v4, %v2365_v6  ;;  %2033 = sbr.rel (%p2358_p13) target bundleno = 522 (0x20a), region = 78 }
 0x1f1   : > { %v2026_v12 = vrot.slane %v2019_v10, %v2025_v7 }
 0x1f3   : > { %v2028_v13 = vadd.f32 %v2026_v12, %v871_v11 }
 0x1f5   : > { %2029 = vst [vmem:[#allocation2] sm:$0xf] %v2028_v13 }
 0x1fc   : > { %v2034_v20 = vld [vmem:[#allocation2] sm:$0xf] }
 0x1fd   : > { %v2054_v22 = vadd.f32 %v2052_v21, %v2034_v20 }
 0x1ff   : > { %v2055_v23 = vmax.f32 %v2054_v22, 0.0 }
 0x201   : > { %v2063_v24 = vrot.slane %v2055_v23, %v2025_v7 }
 0x203   : > { %v2064_v25 = vcombine.high %v2063_v24, %v2063_v24 }
 0x205   : > { %v2359_v26 = vpack.c.bf16 %v2064_v25, %v2063_v24 }
 0x207   : > { %v2078_v27 = vrot.slane %v2359_v26, %v3159_v2 }
 0x209   : > { %2360 = vst.sshfl [vmem:[%s863_s15] sm:$0x5 pattern:$0x73625140] %v2078_v27 }
 0x20a PF: > { %s13_s18 = sadd.s32 1, %s2711_s18   ;;  %s3320_s12 = smov %s2691_s13 }
 0x20b   : > { %p10_p0 = scmp.ge.s32.totalorder %s13_s18, 6   ;;  %s3321_s13 = smov %s2788_s25 }
 0x20c   : > { %s3322_s14 = smov %s2703_s16  ;;  %s3323_s15 = smov %s2707_s17 }
 0x20d   : > { %s3324_s16 = smov %s3327_s19  ;;  %s3325_s17 = smov %s3331_s20 }
 0x20e   :  { %12 = sbr.rel (!%p10_p0) target bundleno = 4 (0x4), region = 119 }

// kernel: encoder_forward.11
= control target key start
LH: loop header
LB: loop body
LE: loop exit
PB: predicated region body
PF: predicated region fallthrough
CT: control target
= control target key end

     0   :  { %14 = vsyncpa [#allocation3], 0  ;;  %v37_v22 = vlaneseq  ;;  %vm173_vm0 = vcmask 1041409   ;;  %s1455_s0 = inlined_call_operand.vmem [shape: bf16[2,1,512], index: 0, kind: input, shape index: {}]   ;;  %s1456_s1 = inlined_call_operand.vmem [shape: bf16[512,32], index: 1, kind: input, shape index: {}]   ;;  %s1457_s2 = inlined_call_operand.vmem [shape: bf16[512,32], index: 2, kind: input, shape index: {}]   ;;  %s1458_s3 = inlined_call_operand.vmem [shape: f32[1,32], index: 3, kind: input, shape index: {}]   ;;  %s1459_s4 = inlined_call_operand.vmem [shape: f32[1,32], index: 4, kind: input, shape index: {}]   ;;  %s1460_s5 = inlined_call_operand.vmem [shape: f32[2,32], index: 5, kind: input, shape index: {}]   ;;  %s1461_s6 = inlined_call_operand.hbm [shape: f32[2,32], index: 6, kind: output, shape index: {0}]   ;;  %s1462_s7 = inlined_call_operand.hbm [shape: f32[2,32], index: 7, kind: output, shape index: {1}]   ;;  %s1463_s8 = inlined_call_operand.hbm [shape: f32[2,32], index: 8, kind: output, shape index: {2}]  }
   0x1   :  { %v1016_v0 = vld [vmem:[%s1456_s1 + $0x40] sm:$0xff]   ;;  %v1020_v4 = vld [vmem:[%s1456_s1 + $0x48] sm:$0xff]   ;;  %v1024_v8 = vld [vmem:[%s1456_s1 + $0x50] sm:$0xff]  }
   0x2   :  { %v1017_v1 = vld [vmem:[%s1456_s1 + $0xc0] sm:$0xff]   ;;  %925 = vmatprep.subr.bf16.mxu0 %v1016_v0  ;;  %v1021_v5 = vld [vmem:[%s1456_s1 + $0xc8] sm:$0xff]   ;;  %v1025_v9 = vld [vmem:[%s1456_s1 + $0xd0] sm:$0xff]   ;;  %v38_v27 = vshrl.u32 %v37_v22, 7 }
   0x3   :  { %v1018_v2 = vld [vmem:[%s1456_s1] sm:$0xff]   ;;  %947 = vmatprep.subr.bf16.mxu1 %v1017_v1  ;;  %v1022_v6 = vld [vmem:[%s1456_s1 + $0x8] sm:$0xff]   ;;  %v1026_v10 = vld [vmem:[%s1456_s1 + $0x10] sm:$0xff]  }
   0x4   :  { %v1019_v3 = vld [vmem:[%s1456_s1 + $0x80] sm:$0xff]   ;;  %926 = vmatpush3.bf16.msra.mxu0 %v1018_v2  ;;  %v1023_v7 = vld [vmem:[%s1456_s1 + $0x88] sm:$0xff]   ;;  %v1027_v11 = vld [vmem:[%s1456_s1 + $0x90] sm:$0xff]   ;;  %v43_v32 = vsub.s32 2, %v38_v27  ;;  %v51_v34 = vsub.s32 6, %v38_v27  ;;  %v39_v36 = vsub.s32 0, %v38_v27 }
   0x5   :  { %948 = vmatpush3.bf16.msra.mxu1 %v1019_v3  ;;  %927 = vmatprep.subr.bf16.mxu0 %v1020_v4  ;;  %v1028_v12 = vld [vmem:[%s1456_s1 + $0x58] sm:$0xff]   ;;  %v1032_v16 = vld [vmem:[%s1456_s1 + $0x60] sm:$0xff]   ;;  %v1036_v20 = vld [vmem:[%s1456_s1 + $0x68] sm:$0xff]   ;;  %v47_v38 = vsub.s32 4, %v38_v27 }
   0x6   :  { %949 = vmatprep.subr.bf16.mxu1 %v1021_v5  ;;  %v1029_v13 = vld [vmem:[%s1456_s1 + $0xd8] sm:$0xff]   ;;  %v1033_v17 = vld [vmem:[%s1456_s1 + $0xe0] sm:$0xff]   ;;  %v1037_v21 = vld [vmem:[%s1456_s1 + $0xe8] sm:$0xff]  }
   0x7   :  { %v1030_v14 = vld [vmem:[%s1456_s1 + $0x18] sm:$0xff]   ;;  %v1034_v18 = vld [vmem:[%s1456_s1 + $0x20] sm:$0xff]   ;;  %v1038_v23 = vld [vmem:[%s1456_s1 + $0x28] sm:$0xff]  }
   0x8   :  { %928 = vmatpush3.bf16.msra.mxu0 %v1022_v6  ;;  %v1031_v15 = vld [vmem:[%s1456_s1 + $0x98] sm:$0xff]   ;;  %v1035_v19 = vld [vmem:[%s1456_s1 + $0xa0] sm:$0xff]   ;;  %v1039_v24 = vld [vmem:[%s1456_s1 + $0xa8] sm:$0xff]  }
   0x9   :  { %950 = vmatpush3.bf16.msra.mxu1 %v1023_v7  ;;  %929 = vmatprep.subr.bf16.mxu0 %v1024_v8  ;;  %v1040_v25 = vld [vmem:[%s1456_s1 + $0x70] sm:$0xff]   ;;  %v1044_v30 = vld [vmem:[%s1456_s1 + $0x78] sm:$0xff]   ;;  %v922_v37 = vld [vmem:[%s1455_s0] sm:$0xff]  }
   0xa   :  { %951 = vmatprep.subr.bf16.mxu1 %v1025_v9  ;;  %v1041_v26 = vld [vmem:[%s1456_s1 + $0xf0] sm:$0xff]   ;;  %v1045_v31 = vld [vmem:[%s1456_s1 + $0xf8] sm:$0xff]   ;;  %v923_v39 = vunpack.c.l.bf16 %v922_v37  ;;  %v924_v40 = vunpack.c.h.bf16 %v922_v37  ;;  %v1048_v41 = vld [vmem:[%s1457_s2 + $0x40] sm:$0xff]  }
   0xb   :  { %v1042_v28 = vld [vmem:[%s1456_s1 + $0x30] sm:$0xff]   ;;  %v1046_v33 = vld [vmem:[%s1456_s1 + $0x38] sm:$0xff]   ;;  %v1049_v42 = vld [vmem:[%s1457_s2 + $0xc0] sm:$0xff]  }
   0xc   :  { %930 = vmatpush3.bf16.msra.mxu0 %v1026_v10  ;;  %v1043_v29 = vld [vmem:[%s1456_s1 + $0xb0] sm:$0xff]   ;;  %v1047_v35 = vld [vmem:[%s1456_s1 + $0xb8] sm:$0xff]   ;;  %v44_v43 = vrot.slane %v923_v39, %v43_v32  ;;  %v60_v44 = vrot.slane %v924_v40, %v43_v32  ;;  %v52_v45 = vrot.slane %v923_v39, %v51_v34  ;;  %v68_v46 = vrot.slane %v924_v40, %v51_v34  ;;  %v1050_v7 = vld [vmem:[%s1457_s2] sm:$0xff]  }
   0xd   :  { %952 = vmatpush3.bf16.msra.mxu1 %v1027_v11  ;;  %931 = vmatprep.subr.bf16.mxu0 %v1028_v12  ;;  %v40_v47 = vrot.slane %v923_v39, %v39_v36  ;;  %v56_v48 = vrot.slane %v924_v40, %v39_v36  ;;  %v48_v49 = vrot.slane %v923_v39, %v47_v38  ;;  %v1051_v10 = vld [vmem:[%s1457_s2 + $0x80] sm:$0xff]   ;;  %v1057_v22 = vld [vmem:[%s1457_s2 + $0xd0] sm:$0xff]   ;;  %v1062_v27 = vld [vmem:[%s1457_s2 + $0x18] sm:$0xff]  }
   0xe   :  { %953 = vmatprep.subr.bf16.mxu1 %v1029_v13  ;;  %v64_v50 = vrot.slane %v924_v40, %v47_v38  ;;  %v78_v51 = vpack.c.bf16 %v44_v43, %v44_v43  ;;  %v82_v52 = vpack.c.bf16 %v60_v44, %v60_v44  ;;  %v80_v53 = vpack.c.bf16 %v52_v45, %v52_v45  ;;  %v1067_v32 = vld [vmem:[%s1457_s2 + $0xa0] sm:$0xff]   ;;  %v1069_v34 = vld [vmem:[%s1457_s2 + $0xe8] sm:$0xff]  }
   0xf   :  { %v84_v54 = vpack.c.bf16 %v68_v46, %v68_v46  ;;  %v77_v55 = vpack.c.bf16 %v40_v47, %v40_v47  ;;  %v81_v56 = vpack.c.bf16 %v56_v48, %v56_v48  ;;  %v79_v57 = vpack.c.bf16 %v48_v49, %v48_v49  ;;  %v1071_v36 = vld [vmem:[%s1457_s2 + $0xa8] sm:$0xff]  }
  0x10   :  { %932 = vmatpush3.bf16.msra.mxu0 %v1030_v14  ;;  %v83_v58 = vpack.c.bf16 %v64_v50, %v64_v50  ;;  %v165_v59 = vunpack.c.l.b16 %v78_v51  ;;  %v169_v60 = vunpack.c.l.b16 %v82_v52  ;;  %v167_v61 = vunpack.c.l.b16 %v80_v53 }
  0x11   :  { %954 = vmatpush3.bf16.msra.mxu1 %v1031_v15  ;;  %933 = vmatprep.subr.bf16.mxu0 %v1032_v16  ;;  %v171_v62 = vunpack.c.l.b16 %v84_v54  ;;  %v164_v63 = vunpack.c.l.b16 %v77_v55  ;;  %v168_v0 = vunpack.c.l.b16 %v81_v56  ;;  %v166_v1 = vunpack.c.l.b16 %v79_v57  ;;  %v1052_v15 = vld [vmem:[%s1457_s2 + $0x48] sm:$0xff]  }
  0x12   :  { %955 = vmatprep.subr.bf16.mxu1 %v1033_v17  ;;  %v170_v2 = vunpack.c.l.b16 %v83_v58  ;;  %v175_v3 = vrot.slane %v169_v60, 7 }
  0x13   :  { %v179_v4 = vrot.slane %v171_v62, 7  ;;  %v172_v5 = vrot.slane %v168_v0, 7 }
  0x14   :  { %934 = vmatpush3.bf16.msra.mxu0 %v1034_v18  ;;  %v177_v6 = vrot.slane %v170_v2, 7  ;;  %v176_v8 = vsel %vm173_vm0, %v175_v3, %v165_v59  ;;  %v1053_v18 = vld [vmem:[%s1457_s2 + $0xc8] sm:$0xff]  }
  0x15   :  { %956 = vmatpush3.bf16.msra.mxu1 %v1035_v19  ;;  %935 = vmatprep.subr.bf16.mxu0 %v1036_v20  ;;  %v180_v9 = vsel %vm173_vm0, %v179_v4, %v167_v61  ;;  %v182_v11 = vpack.c.b16 %v176_v8, %v176_v8  ;;  %v174_v13 = vsel %vm173_vm0, %v172_v5, %v164_v63  ;;  %v1054_v19 = vld [vmem:[%s1457_s2 + $0x8] sm:$0xff]  }
  0x16   :  { %957 = vmatprep.subr.bf16.mxu1 %v1037_v21  ;;  %v184_v12 = vpack.c.b16 %v180_v9, %v180_v9  ;;  %v178_v14 = vsel %vm173_vm0, %v177_v6, %v166_v1  ;;  %v1318_v16 = vpack.c.b16 %v174_v13, %v174_v13  ;;  %v1055_v20 = vld [vmem:[%s1457_s2 + $0x88] sm:$0xff]   ;;  %v1056_v21 = vld [vmem:[%s1457_s2 + $0x50] sm:$0xff]  }
  0x17   :  { %v1320_v17 = vpack.c.b16 %v178_v14, %v178_v14  ;;  %413 = vmatprep.mubr.bf16.mxu0 %v182_v11 }
  0x18   :  { %936 = vmatpush3.bf16.msra.mxu0 %v1038_v23  ;;  %453 = vmatprep.mubr.bf16.mxu1 %v184_v12  ;;  %v1058_v23 = vld [vmem:[%s1457_s2 + $0x10] sm:$0xff]  }
  0x19   :  { %958 = vmatpush3.bf16.msra.mxu1 %v1039_v24  ;;  %937 = vmatprep.subr.bf16.mxu0 %v1040_v25  ;;  %v1059_v24 = vld [vmem:[%s1457_s2 + $0x90] sm:$0xff]   ;;  %v1060_v25 = vld [vmem:[%s1457_s2 + $0x58] sm:$0xff]  }
  0x1a   :  { %959 = vmatprep.subr.bf16.mxu1 %v1041_v26  ;;  %v1061_v26 = vld [vmem:[%s1457_s2 + $0xd8] sm:$0xff]  }
  0x1c   :  { %938 = vmatpush3.bf16.msra.mxu0 %v1042_v28  ;;  %v1063_v28 = vld [vmem:[%s1457_s2 + $0x98] sm:$0xff]  }
  0x1d   :  { %960 = vmatpush3.bf16.msra.mxu1 %v1043_v29  ;;  %939 = vmatprep.subr.bf16.mxu0 %v1044_v30  ;;  %v1064_v29 = vld [vmem:[%s1457_s2 + $0x60] sm:$0xff]  }
  0x1e   :  { %961 = vmatprep.subr.bf16.mxu1 %v1045_v31  ;;  %v1065_v30 = vld [vmem:[%s1457_s2 + $0xe0] sm:$0xff]  }
  0x1f   :  { %v1066_v31 = vld [vmem:[%s1457_s2 + $0x20] sm:$0xff]  }
  0x20   :  { %940 = vmatpush3.bf16.msra.mxu0 %v1046_v33  ;;  %v1068_v33 = vld [vmem:[%s1457_s2 + $0x68] sm:$0xff]  }
  0x21   :  { %962 = vmatpush3.bf16.msra.mxu1 %v1047_v35  ;;  %969 = vmatprep.subr.bf16.mxu0 %v1048_v41  ;;  %v1070_v35 = vld [vmem:[%s1457_s2 + $0x28] sm:$0xff]  }
  0x22   :  { %991 = vmatprep.subr.bf16.mxu1 %v1049_v42 }
  0x23   :  { %414 = vmatmul.mubr.bf16.vlgmr.msra.gmra.mrb[0].mxu0 %v1318_v16 }
  0x24   :  { %454 = vmatmul.mubr.bf16.vlgmr.msra.gmra.mrb[0].mxu1 %v1320_v17  ;;  %970 = vmatpush3.bf16.msra.mxu0 %v1050_v7 }
  0x25   :  { %992 = vmatpush3.bf16.msra.mxu1 %v1051_v10  ;;  %971 = vmatprep.subr.bf16.mxu0 %v1052_v15 }
  0x26   :  { %993 = vmatprep.subr.bf16.mxu1 %v1053_v18  ;;  %756 = vmatprep.mubr.bf16.mxu0 %v182_v11 }
  0x27   :  { %796 = vmatprep.mubr.bf16.mxu1 %v184_v12 }
  0x28   :  { %972 = vmatpush3.bf16.msra.mxu0 %v1054_v19 }
  0x29   :  { %994 = vmatpush3.bf16.msra.mxu1 %v1055_v20  ;;  %973 = vmatprep.subr.bf16.mxu0 %v1056_v21 }
  0x2a   :  { %995 = vmatprep.subr.bf16.mxu1 %v1057_v22 }
  0x2c   :  { %974 = vmatpush3.bf16.msra.mxu0 %v1058_v23 }
  0x2d   :  { %996 = vmatpush3.bf16.msra.mxu1 %v1059_v24  ;;  %975 = vmatprep.subr.bf16.mxu0 %v1060_v25 }
  0x2e   :  { %997 = vmatprep.subr.bf16.mxu1 %v1061_v26 }
  0x30   :  { %976 = vmatpush3.bf16.msra.mxu0 %v1062_v27 }
  0x31   :  { %998 = vmatpush3.bf16.msra.mxu1 %v1063_v28  ;;  %977 = vmatprep.subr.bf16.mxu0 %v1064_v29 }
  0x32   :  { %999 = vmatprep.subr.bf16.mxu1 %v1065_v30 }
  0x34   :  { %978 = vmatpush3.bf16.msra.mxu0 %v1066_v31 }
  0x35   :  { %1000 = vmatpush3.bf16.msra.mxu1 %v1067_v32 }
  0x36   :  { %15 = vsyncpa [#allocation5], 0  ;;  %979 = vmatprep.subr.bf16.mxu0 %v1068_v33  ;;  %1001 = vmatprep.subr.bf16.mxu1 %v1069_v34  ;;  %v1072_v37 = vld [vmem:[%s1457_s2 + $0x70] sm:$0xff]   ;;  %v1076_v41 = vld [vmem:[%s1457_s2 + $0x78] sm:$0xff]   ;;  %vm804_vm1 = vcmask 254976  }
  0x37   :  { %v1073_v38 = vld [vmem:[%s1457_s2 + $0xf0] sm:$0xff]   ;;  %v1077_v42 = vld [vmem:[%s1457_s2 + $0xf8] sm:$0xff]   ;;  %v855_v47 = vld [vmem:[%s1458_s3] ss:$0 sm:$0xff] }
  0x38   :  { %980 = vmatpush3.bf16.msra.mxu0 %v1070_v35  ;;  %v1074_v39 = vld [vmem:[%s1457_s2 + $0x30] sm:$0xff]   ;;  %v1078_v43 = vld [vmem:[%s1457_s2 + $0x38] sm:$0xff]  }
  0x39   :  { %1002 = vmatpush3.bf16.msra.mxu1 %v1071_v36  ;;  %v1075_v40 = vld [vmem:[%s1457_s2 + $0xb0] sm:$0xff]   ;;  %981 = vmatprep.subr.bf16.mxu0 %v1072_v37  ;;  %v1079_v44 = vld [vmem:[%s1457_s2 + $0xb8] sm:$0xff]   ;;  %s1152_s2 = smov [#allocation4]  }
  0x3a   :  { %1003 = vmatprep.subr.bf16.mxu1 %v1073_v38  ;;  %s830_s21 = sshll.u32 %s1152_s2, 4  ;;  %s831_s21 = int_to_ptr.vmem [resolvable:$true] %s830_s21 }
  0x3b   :  { %s1082_s22 = scalar_lea.vmem %s831_s21, 32  ;;  %p1087_p1 = scmp.lt.s32.totalorder %s831_s21, %s831_s21 }
  0x3c   :  { %982 = vmatpush3.bf16.msra.mxu0 %v1074_v39  ;;  %p1083_p0 = scmp.ne.s32.totalorder %s831_s21, %s1082_s22  ;;  %p1088_p2 = scmp.lt.s32.totalorder %s1082_s22, %s1082_s22 }
  0x3d   :  { %1004 = vmatpush3.bf16.msra.mxu1 %v1075_v40  ;;  %983 = vmatprep.subr.bf16.mxu0 %v1076_v41 }
  0x3e   :  { %1005 = vmatprep.subr.bf16.mxu1 %v1077_v42  ;;  %p1089_p3 = por %p1088_p2, %p1087_p1 }
  0x40   :  { %984 = vmatpush3.bf16.msra.mxu0 %v1078_v43  ;;  %p1090_p4 = pnand %p1089_p3, %p1083_p0 }
  0x41   :  { %1006 = vmatpush3.bf16.msra.mxu1 %v1079_v44 }
  0x43   :  { %757 = vmatmul.mubr.bf16.vlgmr.msra.gmra.mrb[4].mxu0 %v1318_v16 }
  0x44   :  { %797 = vmatmul.mubr.bf16.vlgmr.msra.gmra.mrb[4].mxu1 %v1320_v17 }
  0xf6   :  { %v941_v45 = vpop.f32.mrb[0].mxu0 }
  0xf7   :  { %v963_v46 = vpop.f32.mrb[0].mxu1  ;;  %v942_v48 = vpop.f32.mrb[1].mxu0 }
  0xf8   :  { %v964_v49 = vpop.f32.mrb[1].mxu1  ;;  %v943_v50 = vadd.f32 %v942_v48, %v941_v45  ;;  %v944_v52 = vpop.f32.mrb[2].mxu0 }
  0xf9   :  { %v965_v51 = vadd.f32 %v964_v49, %v963_v46  ;;  %v966_v53 = vpop.f32.mrb[2].mxu1  ;;  %v945_v54 = vpop.f32.mrb[3].mxu0 }
  0xfa   :  { %v967_v55 = vpop.f32.mrb[3].mxu1  ;;  %v416_v56 = vadd.f32 %v943_v50, %v855_v47 }
  0xfc   :  { %v456_v57 = vadd.f32 %v965_v51, %v416_v56 }
  0xfe   :  { %805 = vst.msk [vmem:[#allocation4] sm:$0x3] %vm804_vm1, %v456_v57 }
  0xff   :  { %1093 = shalt.err (!%p1090_p4)
}
 0x100   :  { %s1094_s24 = scalar_lea.hbm %s1462_s7, 32 }
 0x101   :  { %p1095_p5 = scmp.ne.s32.totalorder %s1462_s7, %s1094_s24  ;;  %p1098_p6 = scmp.lt.u32.totalorder %s1094_s24, %s1462_s7 }
 0x103   :  { %p1100_p7 = pnand %p1098_p6, %p1095_p5 }
 0x105   :  { %1103 = shalt.err (!%p1100_p7)
}
 0x106   :  { %833 = dma.vmem_to_hbm [thread:$0]  %s831_s21, 32, %s1462_s7, [#allocation5]   ;;  %v888_v60 = vld [vmem:[%s1459_s4] ss:$0 sm:$0xff] }
 0x107   :  { %s1153_s9 = smov [#allocation6]  }
 0x108   :  { %s840_s10 = sshll.u32 %s1153_s9, 4  ;;  %s841_s10 = int_to_ptr.vmem [resolvable:$true] %s840_s10 }
 0x109   :  { %s1104_s7 = scalar_lea.vmem %s841_s10, 32  ;;  %p1109_p9 = scmp.lt.s32.totalorder %s841_s10, %s841_s10 }
 0x10a   :  { %p1105_p8 = scmp.ne.s32.totalorder %s841_s10, %s1104_s7  ;;  %p1110_p10 = scmp.lt.s32.totalorder %s1104_s7, %s1104_s7 }
 0x10c   :  { %p1111_p11 = por %p1110_p10, %p1109_p9 }
 0x10e   :  { %p1112_p12 = pnand %p1111_p11, %p1105_p8 }
 0x116   :  { %v985_v58 = vpop.f32.mrb[4].mxu0 }
 0x117   :  { %v1007_v59 = vpop.f32.mrb[4].mxu1  ;;  %v986_v61 = vpop.f32.mrb[5].mxu0 }
 0x118   :  { %v1008_v62 = vpop.f32.mrb[5].mxu1  ;;  %v987_v63 = vadd.f32 %v986_v61, %v985_v58  ;;  %v988_v1 = vpop.f32.mrb[6].mxu0 }
 0x119   :  { %v1009_v0 = vadd.f32 %v1008_v62, %v1007_v59  ;;  %v1010_v2 = vpop.f32.mrb[6].mxu1  ;;  %v989_v3 = vpop.f32.mrb[7].mxu0 }
 0x11a   :  { %v1011_v4 = vpop.f32.mrb[7].mxu1  ;;  %v759_v5 = vadd.f32 %v987_v63, %v888_v60 }
 0x11c   :  { %v799_v6 = vadd.f32 %v1009_v0, %v759_v5 }
 0x11e   :  { %v808_v7 = vmul.f32 0.5, %v799_v6  ;;  %806 = vst.msk [vmem:[#allocation6] sm:$0x3] %vm804_vm1, %v799_v6 }
 0x11f   :  { %1115 = shalt.err (!%p1112_p12)
}
 0x120   :  { %s1116_s12 = scalar_lea.hbm %s1463_s8, 32 }
 0x121   :  { %p1117_p13 = scmp.ne.s32.totalorder %s1463_s8, %s1116_s12  ;;  %p1120_p0 = scmp.lt.u32.totalorder %s1116_s12, %s1463_s8 }
 0x123   :  { %p1122_p1 = pnand %p1120_p0, %p1117_p13 }
 0x125   :  { %1125 = shalt.err (!%p1122_p1)
}
 0x126   :  { %843 = dma.vmem_to_hbm [thread:$0]  %s841_s10, 32, %s1463_s8, [#allocation5]   ;;  %v809_v8 = vmul.f32 1.442695, %v808_v7  ;;  %v807_v9 = vld [vmem:[%s1460_s5] sm:$0x3] }
 0x127   :  { %s1154_s2 = smov [#allocation2]  }
 0x128   :  { %1080 = vpow2.f32 %v809_v8  ;;  %s820_s21 = sshll.u32 %s1154_s2, 4  ;;  %s821_s21 = int_to_ptr.vmem [resolvable:$true] %s820_s21 }
 0x129   :  { %s1126_s22 = scalar_lea.vmem %s821_s21, 32  ;;  %p1131_p3 = scmp.lt.s32.totalorder %s821_s21, %s821_s21 }
 0x12a   :  { %p1127_p2 = scmp.ne.s32.totalorder %s821_s21, %s1126_s22  ;;  %p1132_p4 = scmp.lt.s32.totalorder %s1126_s22, %s1126_s22 }
 0x12c   :  { %p1133_p5 = por %p1132_p4, %p1131_p3 }
 0x12e   :  { %p1134_p6 = pnand %p1133_p5, %p1127_p2 }
 0x132   :  { %v1081_v10 = vpop.eup %1080 }
 0x133   :  { %v811_v11 = vmul.f32 %v1081_v10, %v807_v9 }
 0x135   :  { %v812_v12 = vadd.f32 %v811_v11, %v456_v57 }
 0x137   :  { %813 = vst.msk [vmem:[#allocation2] sm:$0x3] %vm804_vm1, %v812_v12 }
 0x138   :  { %1137 = shalt.err (!%p1134_p6)
}
 0x139   :  { %s1138_s23 = scalar_lea.hbm %s1461_s6, 32 }
 0x13a   :  { %p1139_p7 = scmp.ne.s32.totalorder %s1461_s6, %s1138_s23  ;;  %p1142_p8 = scmp.lt.u32.totalorder %s1138_s23, %s1461_s6 }
 0x13c   :  { %p1144_p9 = pnand %p1142_p8, %p1139_p7 }
 0x13e   :  { %1147 = shalt.err (!%p1144_p9)
}
 0x13f   :  { %823 = dma.vmem_to_hbm [thread:$0]  %s821_s21, 32, %s1461_s6, [#allocation3]  }
 0x140   :  { %1148 = dma.done.wait [#allocation3], 32  }
 0x141   :  { %1149 = vsyncadd [#allocation3], 4294967264 }
 0x142   :  { %1150 = dma.done.wait [#allocation5], 64  }
 0x143   :  { %1151 = vsyncadd [#allocation5], 4294967232 }
 0x144   :  { %853 = vsyncpa [#allocation3], 1 }
 0x145   :  { %854 = vsyncpa [#allocation5], 1 }

</bundles_post_ra>
